<compile_context>
chip_gen: v6e
topology: v6e:2x2x1
jax: 0.10.0
libtpu: 0.0.40
codegen_flags: <defaults>
</compile_context>

<pallas_src>
import functools

import jax
import jax.numpy as jnp
from jax import lax
from jax.experimental import pallas as pl
from jax.experimental.pallas import tpu as pltpu


def _pick_out_rows(ho, wo, wp, cin, hidden, cout, stride, budget=4 << 20):
    """Output rows per grid step: largest divisor of `ho` whose per-strip VMEM
    footprint fits `budget` and whose flattened output width is a multiple of
    128 (unless the strip covers the whole image)."""
    def footprint(r):
        rows_in = r * stride + 2
        per_pix = 4 * (3 * hidden + cin + max(cout, 8))
        return rows_in * (wp + stride) * per_pix
    for r in sorted([d for d in range(1, ho + 1) if ho % d == 0], reverse=True):
        if footprint(r) <= budget and (r == ho or (r * wo) % 128 == 0):
            return r
    return ho  # TODO(synk): row-block the input via manual DMA for huge images.


# -----------------------------------------------------------------------------
# Fused kernel: one (batch, output-row-strip) step of the whole block.
# -----------------------------------------------------------------------------
def _fused_kernel(*refs, expansion, identity, out_rows, Wo,
                  phase_cols, phase_extra, taps):
    it = iter(refs)
    n_phase = len(phase_cols)
    x_refs = [next(it) for _ in range(n_phase)]       # (1, R*C, Cin) per phase
    if expansion != 1:
        m_refs = [next(it) for _ in range(n_phase)]   # (R*C, 1) border masks
        w_exp = next(it)[...]                         # (Cin, hidden) bf16
        b1 = next(it)[...]                            # (1, hidden)   f32
    w_dw = next(it)[...]                              # (3, 3, hidden) f32
    b2 = next(it)[...]                                # (1, hidden)    f32
    w_pj = next(it)[...]                              # (Cout, hidden) bf16
    b3 = next(it)[...]                                # (Cout, 1)      f32
    xres_ref = next(it) if identity else None         # (1, Cin, out_rows*W)
    o_ref = next(it)                                  # (1, Cout, out_rows*Wo)

    row0 = pl.program_id(1) * out_rows                # phase-local strip start

    # ---- Stage 1: expand 1x1 conv, ONE 2-D MXU matmul per stride-phase.
    h = []
    for p in range(n_phase):
        cols = phase_cols[p]
        length = (out_rows + phase_extra[p]) * cols
        xs = x_refs[p][0, pl.ds(row0 * cols, length), :]          # (length, Cin)
        if expansion != 1:
            hp = jnp.dot(xs.astype(jnp.bfloat16), w_exp,
                         preferred_element_type=jnp.float32)
            hp = jnp.clip(hp + b1, 0.0, 6.0)
            hp = hp * m_refs[p][pl.ds(row0 * cols, length), :]    # zero border
        else:
            hp = xs                                   # borders already zero
        h.append(hp)

    # Hoist depthwise tap weights (indexed once, not per output row).
    w_tap = [w_dw[dy, dx] for (_, _, _, dy, dx) in taps]          # each (hidden,)

    # ---- Stage 2: depthwise 3x3 on the VPU; every tap is a contiguous slice.
    acc_rows = []
    for i in range(out_rows):
        acc = None
        for t, (p, ro, co, _, _) in enumerate(taps):
            start = (ro + i) * phase_cols[p] + co
            tap = lax.slice_in_dim(h[p], start, start + Wo, axis=0)  # (Wo, hidden)
            term = tap * w_tap[t]
            acc = term if acc is None else acc + term
        acc_rows.append(acc)
    acc_all = jnp.concatenate(acc_rows, axis=0)                   # (out_rows*Wo, hidden)
    acc_all = jnp.clip(acc_all + b2, 0.0, 6.0)

    # ---- Stage 3: project 1x1 conv, computed channel-major (A @ B^T) so the
    # result is already NCHW-flat and the store is lane-dense.
    y = lax.dot_general(w_pj, acc_all.astype(jnp.bfloat16),
                        (((1,), (1,)), ((), ())),
                        preferred_element_type=jnp.float32)       # (Cout, out_rows*Wo)
    y = y + b3
    if identity:
        y = y + xres_ref[0]                                       # residual (NCHW-flat)
    o_ref[0] = y.astype(o_ref.dtype)


# -----------------------------------------------------------------------------
# Public wrapper (NCHW in / NCHW out, like the PyTorch module)
# -----------------------------------------------------------------------------
def prepare_params(raw, *, expansion):
    """One-time prep: fold BN scales into conv weights, cast MXU weights to bf16."""
    prep = {}
    if expansion != 1:
        prep["w_expand"] = (raw["w_expand"] * raw["s1"][None, :]).astype(jnp.bfloat16)
        prep["b1"] = raw["b1"].reshape(1, -1).astype(jnp.float32)
    prep["w_dw"] = (raw["w_dw"] * raw["s2"][None, None, :]).astype(jnp.float32)
    prep["b2"] = raw["b2"].reshape(1, -1).astype(jnp.float32)
    wp = raw["w_proj"] * raw["s3"][None, :]
    prep["w_proj"] = wp.astype(jnp.bfloat16)          # (hidden, Cout) for the reference
    prep["w_proj_t"] = wp.T.astype(jnp.bfloat16)      # (Cout, hidden) for the kernel
    prep["b3"] = raw["b3"].reshape(1, -1).astype(jnp.float32)
    prep["b3_t"] = raw["b3"].reshape(-1, 1).astype(jnp.float32)
    return prep


def inverted_residual(x_nchw, prep, *, stride, expansion):
    if stride not in (1, 2):
        raise ValueError("InvertedResidual only supports stride 1 or 2.")
    N, Cin, H, W = x_nchw.shape
    hidden = prep["w_dw"].shape[-1]
    Cout = prep["w_proj_t"].shape[0]
    Ho = (H - 1) // stride + 1
    Wo = (W - 1) // stride + 1
    Hp, Wp = H + 2, W + 2
    identity = (stride == 1) and (Cin == Cout)

    out_rows = _pick_out_rows(Ho, Wo, Wp, Cin, hidden, Cout, stride)
    n_strips = Ho // out_rows

    x = jnp.transpose(x_nchw, (0, 2, 3, 1)).astype(jnp.float32)   # NCHW -> NHWC
    xpad = jnp.pad(x, ((0, 0), (1, 1), (1, 1), (0, 0)))

    if stride == 1:
        phase_list, phase_extra = [(0, 0)], [2]
    else:
        phase_list, phase_extra = [(0, 0), (0, 1), (1, 0), (1, 1)], [1, 1, 0, 0]
    phase_index = {pp: i for i, pp in enumerate(phase_list)}

    args, in_specs, phase_cols = [], [], []
    mask_args, mask_specs = [], []
    for (pr, pc) in phase_list:
        xp = xpad[:, pr::stride, pc::stride, :]
        R, C = xp.shape[1], xp.shape[2]
        phase_cols.append(C)
        args.append(xp.reshape(N, R * C, Cin))
        in_specs.append(pl.BlockSpec((1, R * C, Cin), lambda n, j: (n, 0, 0)))
        if expansion != 1:
            rr = jnp.arange(R) * stride + pr
            cc = jnp.arange(C) * stride + pc
            interior = (((rr > 0) & (rr < Hp - 1))[:, None]
                        & ((cc > 0) & (cc < Wp - 1))[None, :])
            mask_args.append(interior.astype(jnp.float32).reshape(R * C, 1))
            mask_specs.append(pl.BlockSpec((R * C, 1), lambda n, j: (0, 0)))
    args += mask_args
    in_specs += mask_specs

    if expansion != 1:
        args += [prep["w_expand"], prep["b1"]]
        in_specs += [pl.BlockSpec((Cin, hidden), lambda n, j: (0, 0)),
                     pl.BlockSpec((1, hidden), lambda n, j: (0, 0))]
    args += [prep["w_dw"], prep["b2"], prep["w_proj_t"], prep["b3_t"]]
    in_specs += [pl.BlockSpec((3, 3, hidden), lambda n, j: (0, 0, 0)),
                 pl.BlockSpec((1, hidden), lambda n, j: (0, 0)),
                 pl.BlockSpec((Cout, hidden), lambda n, j: (0, 0)),
                 pl.BlockSpec((Cout, 1), lambda n, j: (0, 0))]
    if identity:
        args.append(x_nchw.reshape(N, Cin, H * W).astype(jnp.float32))
        in_specs.append(pl.BlockSpec((1, Cin, out_rows * W), lambda n, j: (n, 0, j)))

    taps = []
    for dy in range(3):
        for dx in range(3):
            taps.append((phase_index[(dy % stride, dx % stride)],
                         dy // stride, dx // stride, dy, dx))

    kernel = functools.partial(
        _fused_kernel, expansion=expansion, identity=identity,
        out_rows=out_rows, Wo=Wo, phase_cols=tuple(phase_cols),
        phase_extra=tuple(phase_extra), taps=tuple(taps))

    flops = 2 * N * Ho * Wo * hidden * (9 + Cout)
    if expansion != 1:
        flops += 2 * N * Hp * Wp * Cin * hidden
    bytes_accessed = (sum(int(a.size) * a.dtype.itemsize for a in args)
                      + 4 * N * Cout * Ho * Wo)

    out = pl.pallas_call(
        kernel,
        out_shape=jax.ShapeDtypeStruct((N, Cout, Ho * Wo), jnp.float32),
        grid=(N, n_strips),
        in_specs=in_specs,
        out_specs=pl.BlockSpec((1, Cout, out_rows * Wo), lambda n, j: (n, 0, j)),
        compiler_params=pltpu.CompilerParams(
            dimension_semantics=("parallel", "parallel")),
        cost_estimate=pl.CostEstimate(flops=int(flops), transcendentals=0,
                                      bytes_accessed=int(bytes_accessed)),
    )(*args)
    return out.reshape(N, Cout, Ho, Wo)   # already channel-major: metadata reshape only


# -----------------------------------------------------------------------------
# Deterministic parameters (BN expressed as scale/bias) and a pure-JAX reference
# -----------------------------------------------------------------------------
def make_params(key, cin, cout, expansion):
    hidden = cin * expansion
    eps = 1e-5
    keys = jax.random.split(key, 16)

    def bn(kg, kb, km, kv, c):
        gamma = 0.5 + jax.random.uniform(kg, (c,), jnp.float32)
        beta = 0.1 * jax.random.normal(kb, (c,), jnp.float32)
        mean = 0.1 * jax.random.normal(km, (c,), jnp.float32)
        var = 0.5 + jax.random.uniform(kv, (c,), jnp.float32)
        s = gamma / jnp.sqrt(var + eps)
        b = beta - mean * s
        return s, b

    raw = {}
    raw["w_expand"] = 0.2 * jax.random.normal(keys[0], (cin, hidden), jnp.float32)
    raw["s1"], raw["b1"] = bn(keys[1], keys[2], keys[3], keys[4], hidden)
    raw["w_dw"] = 0.2 * jax.random.normal(keys[5], (3, 3, hidden), jnp.float32)
    raw["s2"], raw["b2"] = bn(keys[6], keys[7], keys[8], keys[9], hidden)
    raw["w_proj"] = 0.2 * jax.random.normal(keys[10], (hidden, cout), jnp.float32)
    raw["s3"], raw["b3"] = bn(keys[11], keys[12], keys[13], keys[14], cout)
    return raw


def reference(x_nchw, prep, *, stride, expansion):
    """Plain-JAX reference with the same folded weights / bf16 matmul operands."""
    x = jnp.transpose(x_nchw, (0, 2, 3, 1)).astype(jnp.float32)
    N, H, W, Cin = x.shape
    if expansion != 1:
        h = lax.dot_general(x.astype(jnp.bfloat16), prep["w_expand"],
                            (((3,), (0,)), ((), ())),
                            preferred_element_type=jnp.float32)
        h = jnp.clip(h + prep["b1"][0], 0.0, 6.0)
    else:
        h = x
    C = h.shape[-1]
    hp = jnp.pad(h, ((0, 0), (1, 1), (1, 1), (0, 0)))
    Ho = (H - 1) // stride + 1
    Wo = (W - 1) // stride + 1
    acc = jnp.zeros((N, Ho, Wo, C), jnp.float32)
    for dy in range(3):
        for dx in range(3):
            patch = lax.slice(
                hp, (0, dy, dx, 0),
                (N, dy + stride * (Ho - 1) + 1, dx + stride * (Wo - 1) + 1, C),
                (1, stride, stride, 1))
            acc = acc + patch * prep["w_dw"][dy, dx]
    acc = jnp.clip(acc + prep["b2"][0], 0.0, 6.0)
    y = lax.dot_general(acc.astype(jnp.bfloat16), prep["w_proj"],
                        (((3,), (0,)), ((), ())),
                        preferred_element_type=jnp.float32)
    y = y + prep["b3"][0]
    if stride == 1 and Cin == prep["w_proj"].shape[-1]:
        y = y + x
    return jnp.transpose(y, (0, 3, 1, 2))


if __name__ == "__main__":
    N, Cin, H, W = 2, 8, 16, 16
    root = jax.random.PRNGKey(0)
    kx, kp1, kp2, kp3 = jax.random.split(root, 4)
    x = jax.random.normal(kx, (N, Cin, H, W), jnp.float32)   # NCHW like PyTorch

    # Config 1: expansion=2, stride=1, Cout=Cin -> identity residual active.
    raw1 = make_params(kp1, Cin, Cin, 2)
    prep1 = prepare_params(raw1, expansion=2)
    out1 = jax.block_until_ready(inverted_residual(x, prep1, stride=1, expansion=2))
    ref1 = reference(x, prep1, stride=1, expansion=2)
    assert out1.shape == ref1.shape, (out1.shape, ref1.shape)
    assert jnp.allclose(out1, ref1, rtol=2e-2, atol=2e-2), float(
        jnp.max(jnp.abs(out1 - ref1)))

    # Config 2: expansion=2, stride=2, Cout=16 -> downsampling (phase split).
    raw2 = make_params(kp2, Cin, 16, 2)
    prep2 = prepare_params(raw2, expansion=2)
    out2 = jax.block_until_ready(inverted_residual(x, prep2, stride=2, expansion=2))
    ref2 = reference(x, prep2, stride=2, expansion=2)
    assert out2.shape == ref2.shape, (out2.shape, ref2.shape)
    assert jnp.allclose(out2, ref2, rtol=2e-2, atol=2e-2), float(
        jnp.max(jnp.abs(out2 - ref2)))

    # Config 3: expansion=1, stride=1, Cout=Cin -> no expand conv, identity.
    raw3 = make_params(kp3, Cin, Cin, 1)
    prep3 = prepare_params(raw3, expansion=1)
    out3 = jax.block_until_ready(inverted_residual(x, prep3, stride=1, expansion=1))
    ref3 = reference(x, prep3, stride=1, expansion=1)
    assert out3.shape == ref3.shape, (out3.shape, ref3.shape)
    assert jnp.allclose(out3, ref3, rtol=2e-2, atol=2e-2), float(
        jnp.max(jnp.abs(out3 - ref3)))

    print("KERNEL_OK")
</pallas_src>

<mosaic_0001>
module attributes {stable_mosaic.version = 11 : i64} {
  func.func @_fused_kernel(%arg0: i32, %arg1: i32, %arg2: memref<1x324x8xf32, #tpu.memory_space<vmem>>, %arg3: memref<324x1xf32, #tpu.memory_space<vmem>>, %arg4: memref<8x16xbf16, #tpu.memory_space<vmem>>, %arg5: memref<1x16xf32, #tpu.memory_space<vmem>>, %arg6: memref<3x3x16xf32, #tpu.memory_space<vmem>>, %arg7: memref<1x16xf32, #tpu.memory_space<vmem>>, %arg8: memref<8x16xbf16, #tpu.memory_space<vmem>>, %arg9: memref<8x1xf32, #tpu.memory_space<vmem>>, %arg10: memref<1x8x256xf32, #tpu.memory_space<vmem>>, %arg11: memref<1x8x256xf32, #tpu.memory_space<vmem>>) attributes {dimension_semantics = [#tpu.dimension_semantics<parallel>, #tpu.dimension_semantics<parallel>], iteration_bounds = array<i64: 2, 1>, scalar_prefetch = 0 : i64, scratch_operands = 0 : i64, tpu.core_type = #tpu.core_type<tc>, window_params = [{transform_indices = @transform_0, window_bounds = array<i64: 1, 324, 8>}, {pipeline_mode = #tpu.pipeline_mode<synchronous>, transform_indices = @transform_1, window_bounds = array<i64: 324, 1>}, {pipeline_mode = #tpu.pipeline_mode<synchronous>, transform_indices = @transform_2, window_bounds = array<i64: 8, 16>}, {pipeline_mode = #tpu.pipeline_mode<synchronous>, transform_indices = @transform_3, window_bounds = array<i64: 1, 16>}, {pipeline_mode = #tpu.pipeline_mode<synchronous>, transform_indices = @transform_4, window_bounds = array<i64: 3, 3, 16>}, {pipeline_mode = #tpu.pipeline_mode<synchronous>, transform_indices = @transform_5, window_bounds = array<i64: 1, 16>}, {pipeline_mode = #tpu.pipeline_mode<synchronous>, transform_indices = @transform_6, window_bounds = array<i64: 8, 16>}, {pipeline_mode = #tpu.pipeline_mode<synchronous>, transform_indices = @transform_7, window_bounds = array<i64: 8, 1>}, {transform_indices = @transform_8, window_bounds = array<i64: 1, 8, 256>}, {transform_indices = @transform_9, window_bounds = array<i64: 1, 8, 256>}]} {
    %c0 = arith.constant 0 : index
    %c0_0 = arith.constant 0 : index
    %0 = vector.load %arg4[%c0, %c0_0] : memref<8x16xbf16, #tpu.memory_space<vmem>>, vector<8x16xbf16>
    %c0_1 = arith.constant 0 : index
    %c0_2 = arith.constant 0 : index
    %1 = vector.load %arg5[%c0_1, %c0_2] : memref<1x16xf32, #tpu.memory_space<vmem>>, vector<1x16xf32>
    %c0_3 = arith.constant 0 : index
    %c0_4 = arith.constant 0 : index
    %c0_5 = arith.constant 0 : index
    %2 = vector.load %arg6[%c0_3, %c0_4, %c0_5] : memref<3x3x16xf32, #tpu.memory_space<vmem>>, vector<3x3x16xf32>
    %c0_6 = arith.constant 0 : index
    %c0_7 = arith.constant 0 : index
    %3 = vector.load %arg7[%c0_6, %c0_7] : memref<1x16xf32, #tpu.memory_space<vmem>>, vector<1x16xf32>
    %c0_8 = arith.constant 0 : index
    %c0_9 = arith.constant 0 : index
    %4 = vector.load %arg8[%c0_8, %c0_9] : memref<8x16xbf16, #tpu.memory_space<vmem>>, vector<8x16xbf16>
    %c0_10 = arith.constant 0 : index
    %c0_11 = arith.constant 0 : index
    %5 = vector.load %arg9[%c0_10, %c0_11] : memref<8x1xf32, #tpu.memory_space<vmem>>, vector<8x1xf32>
    %c16_i32 = arith.constant 16 : i32
    %6 = arith.muli %arg1, %c16_i32 : i32
    %c18_i32 = arith.constant 18 : i32
    %7 = arith.muli %6, %c18_i32 : i32
    %c0_12 = arith.constant 0 : index
    %8 = arith.index_cast %7 : i32 to index
    %c0_13 = arith.constant 0 : index
    %9 = vector.load %arg2[%c0_12, %8, %c0_13] : memref<1x324x8xf32, #tpu.memory_space<vmem>>, vector<1x324x8xf32>
    %10 = vector.shape_cast %9 : vector<1x324x8xf32> to vector<324x8xf32>
    %11 = arith.truncf %10 : vector<324x8xf32> to vector<324x8xbf16>
    %cst = arith.constant dense<0.000000e+00> : vector<324x16xf32>
    %12 = tpu.matmul %11, %0, %cst {dimension_numbers = #tpu.dot_dimension_numbers<[1], [0], [0], [1], [0, 0, 1, 1], [], []>} : vector<324x8xbf16>, vector<8x16xbf16>, vector<324x16xf32> -> vector<324x16xf32>
    %13 = vector.broadcast %1 : vector<1x16xf32> to vector<324x16xf32>
    %14 = arith.addf %12, %13 : vector<324x16xf32>
    %cst_14 = arith.constant 0.000000e+00 : f32
    %cst_15 = arith.constant 6.000000e+00 : f32
    %15 = vector.broadcast %cst_14 : f32 to vector<324x16xf32>
    %16 = arith.maximumf %15, %14 : vector<324x16xf32>
    %17 = vector.broadcast %cst_15 : f32 to vector<324x16xf32>
    %18 = arith.minimumf %17, %16 : vector<324x16xf32>
    %c18_i32_16 = arith.constant 18 : i32
    %19 = arith.muli %6, %c18_i32_16 : i32
    %20 = arith.index_cast %19 : i32 to index
    %c0_17 = arith.constant 0 : index
    %21 = vector.load %arg3[%20, %c0_17] : memref<324x1xf32, #tpu.memory_space<vmem>>, vector<324x1xf32>
    %22 = vector.broadcast %21 : vector<324x1xf32> to vector<324x16xf32>
    %23 = arith.mulf %18, %22 : vector<324x16xf32>
    %24 = vector.extract_strided_slice %2 {offsets = [0, 0, 0], sizes = [1, 1, 16], strides = [1, 1, 1]} : vector<3x3x16xf32> to vector<1x1x16xf32>
    %25 = vector.shape_cast %24 : vector<1x1x16xf32> to vector<16xf32>
    %26 = vector.extract_strided_slice %2 {offsets = [0, 1, 0], sizes = [1, 1, 16], strides = [1, 1, 1]} : vector<3x3x16xf32> to vector<1x1x16xf32>
    %27 = vector.shape_cast %26 : vector<1x1x16xf32> to vector<16xf32>
    %28 = vector.extract_strided_slice %2 {offsets = [0, 2, 0], sizes = [1, 1, 16], strides = [1, 1, 1]} : vector<3x3x16xf32> to vector<1x1x16xf32>
    %29 = vector.shape_cast %28 : vector<1x1x16xf32> to vector<16xf32>
    %30 = vector.extract_strided_slice %2 {offsets = [1, 0, 0], sizes = [1, 1, 16], strides = [1, 1, 1]} : vector<3x3x16xf32> to vector<1x1x16xf32>
    %31 = vector.shape_cast %30 : vector<1x1x16xf32> to vector<16xf32>
    %32 = vector.extract_strided_slice %2 {offsets = [1, 1, 0], sizes = [1, 1, 16], strides = [1, 1, 1]} : vector<3x3x16xf32> to vector<1x1x16xf32>
    %33 = vector.shape_cast %32 : vector<1x1x16xf32> to vector<16xf32>
    %34 = vector.extract_strided_slice %2 {offsets = [1, 2, 0], sizes = [1, 1, 16], strides = [1, 1, 1]} : vector<3x3x16xf32> to vector<1x1x16xf32>
    %35 = vector.shape_cast %34 : vector<1x1x16xf32> to vector<16xf32>
    %36 = vector.extract_strided_slice %2 {offsets = [2, 0, 0], sizes = [1, 1, 16], strides = [1, 1, 1]} : vector<3x3x16xf32> to vector<1x1x16xf32>
    %37 = vector.shape_cast %36 : vector<1x1x16xf32> to vector<16xf32>
    %38 = vector.extract_strided_slice %2 {offsets = [2, 1, 0], sizes = [1, 1, 16], strides = [1, 1, 1]} : vector<3x3x16xf32> to vector<1x1x16xf32>
    %39 = vector.shape_cast %38 : vector<1x1x16xf32> to vector<16xf32>
    %40 = vector.extract_strided_slice %2 {offsets = [2, 2, 0], sizes = [1, 1, 16], strides = [1, 1, 1]} : vector<3x3x16xf32> to vector<1x1x16xf32>
    %41 = vector.shape_cast %40 : vector<1x1x16xf32> to vector<16xf32>
    %42 = vector.extract_strided_slice %23 {offsets = [0, 0], sizes = [16, 16], strides = [1, 1]} : vector<324x16xf32> to vector<16x16xf32>
    %43 = vector.shape_cast %25 : vector<16xf32> to vector<1x16xf32>
    %44 = vector.broadcast %43 : vector<1x16xf32> to vector<16x16xf32>
    %45 = arith.mulf %42, %44 : vector<16x16xf32>
    %46 = vector.extract_strided_slice %23 {offsets = [1, 0], sizes = [16, 16], strides = [1, 1]} : vector<324x16xf32> to vector<16x16xf32>
    %47 = vector.shape_cast %27 : vector<16xf32> to vector<1x16xf32>
    %48 = vector.broadcast %47 : vector<1x16xf32> to vector<16x16xf32>
    %49 = arith.mulf %46, %48 : vector<16x16xf32>
    %50 = arith.addf %45, %49 : vector<16x16xf32>
    %51 = vector.extract_strided_slice %23 {offsets = [2, 0], sizes = [16, 16], strides = [1, 1]} : vector<324x16xf32> to vector<16x16xf32>
    %52 = vector.shape_cast %29 : vector<16xf32> to vector<1x16xf32>
    %53 = vector.broadcast %52 : vector<1x16xf32> to vector<16x16xf32>
    %54 = arith.mulf %51, %53 : vector<16x16xf32>
    %55 = arith.addf %50, %54 : vector<16x16xf32>
    %56 = vector.extract_strided_slice %23 {offsets = [18, 0], sizes = [16, 16], strides = [1, 1]} : vector<324x16xf32> to vector<16x16xf32>
    %57 = vector.shape_cast %31 : vector<16xf32> to vector<1x16xf32>
    %58 = vector.broadcast %57 : vector<1x16xf32> to vector<16x16xf32>
    %59 = arith.mulf %56, %58 : vector<16x16xf32>
    %60 = arith.addf %55, %59 : vector<16x16xf32>
    %61 = vector.extract_strided_slice %23 {offsets = [19, 0], sizes = [16, 16], strides = [1, 1]} : vector<324x16xf32> to vector<16x16xf32>
    %62 = vector.shape_cast %33 : vector<16xf32> to vector<1x16xf32>
    %63 = vector.broadcast %62 : vector<1x16xf32> to vector<16x16xf32>
    %64 = arith.mulf %61, %63 : vector<16x16xf32>
    %65 = arith.addf %60, %64 : vector<16x16xf32>
    %66 = vector.extract_strided_slice %23 {offsets = [20, 0], sizes = [16, 16], strides = [1, 1]} : vector<324x16xf32> to vector<16x16xf32>
    %67 = vector.shape_cast %35 : vector<16xf32> to vector<1x16xf32>
    %68 = vector.broadcast %67 : vector<1x16xf32> to vector<16x16xf32>
    %69 = arith.mulf %66, %68 : vector<16x16xf32>
    %70 = arith.addf %65, %69 : vector<16x16xf32>
    %71 = vector.extract_strided_slice %23 {offsets = [36, 0], sizes = [16, 16], strides = [1, 1]} : vector<324x16xf32> to vector<16x16xf32>
    %72 = vector.shape_cast %37 : vector<16xf32> to vector<1x16xf32>
    %73 = vector.broadcast %72 : vector<1x16xf32> to vector<16x16xf32>
    %74 = arith.mulf %71, %73 : vector<16x16xf32>
    %75 = arith.addf %70, %74 : vector<16x16xf32>
    %76 = vector.extract_strided_slice %23 {offsets = [37, 0], sizes = [16, 16], strides = [1, 1]} : vector<324x16xf32> to vector<16x16xf32>
    %77 = vector.shape_cast %39 : vector<16xf32> to vector<1x16xf32>
    %78 = vector.broadcast %77 : vector<1x16xf32> to vector<16x16xf32>
    %79 = arith.mulf %76, %78 : vector<16x16xf32>
    %80 = arith.addf %75, %79 : vector<16x16xf32>
    %81 = vector.extract_strided_slice %23 {offsets = [38, 0], sizes = [16, 16], strides = [1, 1]} : vector<324x16xf32> to vector<16x16xf32>
    %82 = vector.shape_cast %41 : vector<16xf32> to vector<1x16xf32>
    %83 = vector.broadcast %82 : vector<1x16xf32> to vector<16x16xf32>
    %84 = arith.mulf %81, %83 : vector<16x16xf32>
    %85 = arith.addf %80, %84 : vector<16x16xf32>
    %86 = vector.extract_strided_slice %23 {offsets = [18, 0], sizes = [16, 16], strides = [1, 1]} : vector<324x16xf32> to vector<16x16xf32>
    %87 = vector.shape_cast %25 : vector<16xf32> to vector<1x16xf32>
    %88 = vector.broadcast %87 : vector<1x16xf32> to vector<16x16xf32>
    %89 = arith.mulf %86, %88 : vector<16x16xf32>
    %90 = vector.extract_strided_slice %23 {offsets = [19, 0], sizes = [16, 16], strides = [1, 1]} : vector<324x16xf32> to vector<16x16xf32>
    %91 = vector.shape_cast %27 : vector<16xf32> to vector<1x16xf32>
    %92 = vector.broadcast %91 : vector<1x16xf32> to vector<16x16xf32>
    %93 = arith.mulf %90, %92 : vector<16x16xf32>
    %94 = arith.addf %89, %93 : vector<16x16xf32>
    %95 = vector.extract_strided_slice %23 {offsets = [20, 0], sizes = [16, 16], strides = [1, 1]} : vector<324x16xf32> to vector<16x16xf32>
    %96 = vector.shape_cast %29 : vector<16xf32> to vector<1x16xf32>
    %97 = vector.broadcast %96 : vector<1x16xf32> to vector<16x16xf32>
    %98 = arith.mulf %95, %97 : vector<16x16xf32>
    %99 = arith.addf %94, %98 : vector<16x16xf32>
    %100 = vector.extract_strided_slice %23 {offsets = [36, 0], sizes = [16, 16], strides = [1, 1]} : vector<324x16xf32> to vector<16x16xf32>
    %101 = vector.shape_cast %31 : vector<16xf32> to vector<1x16xf32>
    %102 = vector.broadcast %101 : vector<1x16xf32> to vector<16x16xf32>
    %103 = arith.mulf %100, %102 : vector<16x16xf32>
    %104 = arith.addf %99, %103 : vector<16x16xf32>
    %105 = vector.extract_strided_slice %23 {offsets = [37, 0], sizes = [16, 16], strides = [1, 1]} : vector<324x16xf32> to vector<16x16xf32>
    %106 = vector.shape_cast %33 : vector<16xf32> to vector<1x16xf32>
    %107 = vector.broadcast %106 : vector<1x16xf32> to vector<16x16xf32>
    %108 = arith.mulf %105, %107 : vector<16x16xf32>
    %109 = arith.addf %104, %108 : vector<16x16xf32>
    %110 = vector.extract_strided_slice %23 {offsets = [38, 0], sizes = [16, 16], strides = [1, 1]} : vector<324x16xf32> to vector<16x16xf32>
    %111 = vector.shape_cast %35 : vector<16xf32> to vector<1x16xf32>
    %112 = vector.broadcast %111 : vector<1x16xf32> to vector<16x16xf32>
    %113 = arith.mulf %110, %112 : vector<16x16xf32>
    %114 = arith.addf %109, %113 : vector<16x16xf32>
    %115 = vector.extract_strided_slice %23 {offsets = [54, 0], sizes = [16, 16], strides = [1, 1]} : vector<324x16xf32> to vector<16x16xf32>
    %116 = vector.shape_cast %37 : vector<16xf32> to vector<1x16xf32>
    %117 = vector.broadcast %116 : vector<1x16xf32> to vector<16x16xf32>
    %118 = arith.mulf %115, %117 : vector<16x16xf32>
    %119 = arith.addf %114, %118 : vector<16x16xf32>
    %120 = vector.extract_strided_slice %23 {offsets = [55, 0], sizes = [16, 16], strides = [1, 1]} : vector<324x16xf32> to vector<16x16xf32>
    %121 = vector.shape_cast %39 : vector<16xf32> to vector<1x16xf32>
    %122 = vector.broadcast %121 : vector<1x16xf32> to vector<16x16xf32>
    %123 = arith.mulf %120, %122 : vector<16x16xf32>
    %124 = arith.addf %119, %123 : vector<16x16xf32>
    %125 = vector.extract_strided_slice %23 {offsets = [56, 0], sizes = [16, 16], strides = [1, 1]} : vector<324x16xf32> to vector<16x16xf32>
    %126 = vector.shape_cast %41 : vector<16xf32> to vector<1x16xf32>
    %127 = vector.broadcast %126 : vector<1x16xf32> to vector<16x16xf32>
    %128 = arith.mulf %125, %127 : vector<16x16xf32>
    %129 = arith.addf %124, %128 : vector<16x16xf32>
    %130 = vector.extract_strided_slice %23 {offsets = [36, 0], sizes = [16, 16], strides = [1, 1]} : vector<324x16xf32> to vector<16x16xf32>
    %131 = vector.shape_cast %25 : vector<16xf32> to vector<1x16xf32>
    %132 = vector.broadcast %131 : vector<1x16xf32> to vector<16x16xf32>
    %133 = arith.mulf %130, %132 : vector<16x16xf32>
    %134 = vector.extract_strided_slice %23 {offsets = [37, 0], sizes = [16, 16], strides = [1, 1]} : vector<324x16xf32> to vector<16x16xf32>
    %135 = vector.shape_cast %27 : vector<16xf32> to vector<1x16xf32>
    %136 = vector.broadcast %135 : vector<1x16xf32> to vector<16x16xf32>
    %137 = arith.mulf %134, %136 : vector<16x16xf32>
    %138 = arith.addf %133, %137 : vector<16x16xf32>
    %139 = vector.extract_strided_slice %23 {offsets = [38, 0], sizes = [16, 16], strides = [1, 1]} : vector<324x16xf32> to vector<16x16xf32>
    %140 = vector.shape_cast %29 : vector<16xf32> to vector<1x16xf32>
    %141 = vector.broadcast %140 : vector<1x16xf32> to vector<16x16xf32>
    %142 = arith.mulf %139, %141 : vector<16x16xf32>
    %143 = arith.addf %138, %142 : vector<16x16xf32>
    %144 = vector.extract_strided_slice %23 {offsets = [54, 0], sizes = [16, 16], strides = [1, 1]} : vector<324x16xf32> to vector<16x16xf32>
    %145 = vector.shape_cast %31 : vector<16xf32> to vector<1x16xf32>
    %146 = vector.broadcast %145 : vector<1x16xf32> to vector<16x16xf32>
    %147 = arith.mulf %144, %146 : vector<16x16xf32>
    %148 = arith.addf %143, %147 : vector<16x16xf32>
    %149 = vector.extract_strided_slice %23 {offsets = [55, 0], sizes = [16, 16], strides = [1, 1]} : vector<324x16xf32> to vector<16x16xf32>
    %150 = vector.shape_cast %33 : vector<16xf32> to vector<1x16xf32>
    %151 = vector.broadcast %150 : vector<1x16xf32> to vector<16x16xf32>
    %152 = arith.mulf %149, %151 : vector<16x16xf32>
    %153 = arith.addf %148, %152 : vector<16x16xf32>
    %154 = vector.extract_strided_slice %23 {offsets = [56, 0], sizes = [16, 16], strides = [1, 1]} : vector<324x16xf32> to vector<16x16xf32>
    %155 = vector.shape_cast %35 : vector<16xf32> to vector<1x16xf32>
    %156 = vector.broadcast %155 : vector<1x16xf32> to vector<16x16xf32>
    %157 = arith.mulf %154, %156 : vector<16x16xf32>
    %158 = arith.addf %153, %157 : vector<16x16xf32>
    %159 = vector.extract_strided_slice %23 {offsets = [72, 0], sizes = [16, 16], strides = [1, 1]} : vector<324x16xf32> to vector<16x16xf32>
    %160 = vector.shape_cast %37 : vector<16xf32> to vector<1x16xf32>
    %161 = vector.broadcast %160 : vector<1x16xf32> to vector<16x16xf32>
    %162 = arith.mulf %159, %161 : vector<16x16xf32>
    %163 = arith.addf %158, %162 : vector<16x16xf32>
    %164 = vector.extract_strided_slice %23 {offsets = [73, 0], sizes = [16, 16], strides = [1, 1]} : vector<324x16xf32> to vector<16x16xf32>
    %165 = vector.shape_cast %39 : vector<16xf32> to vector<1x16xf32>
    %166 = vector.broadcast %165 : vector<1x16xf32> to vector<16x16xf32>
    %167 = arith.mulf %164, %166 : vector<16x16xf32>
    %168 = arith.addf %163, %167 : vector<16x16xf32>
    %169 = vector.extract_strided_slice %23 {offsets = [74, 0], sizes = [16, 16], strides = [1, 1]} : vector<324x16xf32> to vector<16x16xf32>
    %170 = vector.shape_cast %41 : vector<16xf32> to vector<1x16xf32>
    %171 = vector.broadcast %170 : vector<1x16xf32> to vector<16x16xf32>
    %172 = arith.mulf %169, %171 : vector<16x16xf32>
    %173 = arith.addf %168, %172 : vector<16x16xf32>
    %174 = vector.extract_strided_slice %23 {offsets = [54, 0], sizes = [16, 16], strides = [1, 1]} : vector<324x16xf32> to vector<16x16xf32>
    %175 = vector.shape_cast %25 : vector<16xf32> to vector<1x16xf32>
    %176 = vector.broadcast %175 : vector<1x16xf32> to vector<16x16xf32>
    %177 = arith.mulf %174, %176 : vector<16x16xf32>
    %178 = vector.extract_strided_slice %23 {offsets = [55, 0], sizes = [16, 16], strides = [1, 1]} : vector<324x16xf32> to vector<16x16xf32>
    %179 = vector.shape_cast %27 : vector<16xf32> to vector<1x16xf32>
    %180 = vector.broadcast %179 : vector<1x16xf32> to vector<16x16xf32>
    %181 = arith.mulf %178, %180 : vector<16x16xf32>
    %182 = arith.addf %177, %181 : vector<16x16xf32>
    %183 = vector.extract_strided_slice %23 {offsets = [56, 0], sizes = [16, 16], strides = [1, 1]} : vector<324x16xf32> to vector<16x16xf32>
    %184 = vector.shape_cast %29 : vector<16xf32> to vector<1x16xf32>
    %185 = vector.broadcast %184 : vector<1x16xf32> to vector<16x16xf32>
    %186 = arith.mulf %183, %185 : vector<16x16xf32>
    %187 = arith.addf %182, %186 : vector<16x16xf32>
    %188 = vector.extract_strided_slice %23 {offsets = [72, 0], sizes = [16, 16], strides = [1, 1]} : vector<324x16xf32> to vector<16x16xf32>
    %189 = vector.shape_cast %31 : vector<16xf32> to vector<1x16xf32>
    %190 = vector.broadcast %189 : vector<1x16xf32> to vector<16x16xf32>
    %191 = arith.mulf %188, %190 : vector<16x16xf32>
    %192 = arith.addf %187, %191 : vector<16x16xf32>
    %193 = vector.extract_strided_slice %23 {offsets = [73, 0], sizes = [16, 16], strides = [1, 1]} : vector<324x16xf32> to vector<16x16xf32>
    %194 = vector.shape_cast %33 : vector<16xf32> to vector<1x16xf32>
    %195 = vector.broadcast %194 : vector<1x16xf32> to vector<16x16xf32>
    %196 = arith.mulf %193, %195 : vector<16x16xf32>
    %197 = arith.addf %192, %196 : vector<16x16xf32>
    %198 = vector.extract_strided_slice %23 {offsets = [74, 0], sizes = [16, 16], strides = [1, 1]} : vector<324x16xf32> to vector<16x16xf32>
    %199 = vector.shape_cast %35 : vector<16xf32> to vector<1x16xf32>
    %200 = vector.broadcast %199 : vector<1x16xf32> to vector<16x16xf32>
    %201 = arith.mulf %198, %200 : vector<16x16xf32>
    %202 = arith.addf %197, %201 : vector<16x16xf32>
    %203 = vector.extract_strided_slice %23 {offsets = [90, 0], sizes = [16, 16], strides = [1, 1]} : vector<324x16xf32> to vector<16x16xf32>
    %204 = vector.shape_cast %37 : vector<16xf32> to vector<1x16xf32>
    %205 = vector.broadcast %204 : vector<1x16xf32> to vector<16x16xf32>
    %206 = arith.mulf %203, %205 : vector<16x16xf32>
    %207 = arith.addf %202, %206 : vector<16x16xf32>
    %208 = vector.extract_strided_slice %23 {offsets = [91, 0], sizes = [16, 16], strides = [1, 1]} : vector<324x16xf32> to vector<16x16xf32>
    %209 = vector.shape_cast %39 : vector<16xf32> to vector<1x16xf32>
    %210 = vector.broadcast %209 : vector<1x16xf32> to vector<16x16xf32>
    %211 = arith.mulf %208, %210 : vector<16x16xf32>
    %212 = arith.addf %207, %211 : vector<16x16xf32>
    %213 = vector.extract_strided_slice %23 {offsets = [92, 0], sizes = [16, 16], strides = [1, 1]} : vector<324x16xf32> to vector<16x16xf32>
    %214 = vector.shape_cast %41 : vector<16xf32> to vector<1x16xf32>
    %215 = vector.broadcast %214 : vector<1x16xf32> to vector<16x16xf32>
    %216 = arith.mulf %213, %215 : vector<16x16xf32>
    %217 = arith.addf %212, %216 : vector<16x16xf32>
    %218 = vector.extract_strided_slice %23 {offsets = [72, 0], sizes = [16, 16], strides = [1, 1]} : vector<324x16xf32> to vector<16x16xf32>
    %219 = vector.shape_cast %25 : vector<16xf32> to vector<1x16xf32>
    %220 = vector.broadcast %219 : vector<1x16xf32> to vector<16x16xf32>
    %221 = arith.mulf %218, %220 : vector<16x16xf32>
    %222 = vector.extract_strided_slice %23 {offsets = [73, 0], sizes = [16, 16], strides = [1, 1]} : vector<324x16xf32> to vector<16x16xf32>
    %223 = vector.shape_cast %27 : vector<16xf32> to vector<1x16xf32>
    %224 = vector.broadcast %223 : vector<1x16xf32> to vector<16x16xf32>
    %225 = arith.mulf %222, %224 : vector<16x16xf32>
    %226 = arith.addf %221, %225 : vector<16x16xf32>
    %227 = vector.extract_strided_slice %23 {offsets = [74, 0], sizes = [16, 16], strides = [1, 1]} : vector<324x16xf32> to vector<16x16xf32>
    %228 = vector.shape_cast %29 : vector<16xf32> to vector<1x16xf32>
    %229 = vector.broadcast %228 : vector<1x16xf32> to vector<16x16xf32>
    %230 = arith.mulf %227, %229 : vector<16x16xf32>
    %231 = arith.addf %226, %230 : vector<16x16xf32>
    %232 = vector.extract_strided_slice %23 {offsets = [90, 0], sizes = [16, 16], strides = [1, 1]} : vector<324x16xf32> to vector<16x16xf32>
    %233 = vector.shape_cast %31 : vector<16xf32> to vector<1x16xf32>
    %234 = vector.broadcast %233 : vector<1x16xf32> to vector<16x16xf32>
    %235 = arith.mulf %232, %234 : vector<16x16xf32>
    %236 = arith.addf %231, %235 : vector<16x16xf32>
    %237 = vector.extract_strided_slice %23 {offsets = [91, 0], sizes = [16, 16], strides = [1, 1]} : vector<324x16xf32> to vector<16x16xf32>
    %238 = vector.shape_cast %33 : vector<16xf32> to vector<1x16xf32>
    %239 = vector.broadcast %238 : vector<1x16xf32> to vector<16x16xf32>
    %240 = arith.mulf %237, %239 : vector<16x16xf32>
    %241 = arith.addf %236, %240 : vector<16x16xf32>
    %242 = vector.extract_strided_slice %23 {offsets = [92, 0], sizes = [16, 16], strides = [1, 1]} : vector<324x16xf32> to vector<16x16xf32>
    %243 = vector.shape_cast %35 : vector<16xf32> to vector<1x16xf32>
    %244 = vector.broadcast %243 : vector<1x16xf32> to vector<16x16xf32>
    %245 = arith.mulf %242, %244 : vector<16x16xf32>
    %246 = arith.addf %241, %245 : vector<16x16xf32>
    %247 = vector.extract_strided_slice %23 {offsets = [108, 0], sizes = [16, 16], strides = [1, 1]} : vector<324x16xf32> to vector<16x16xf32>
    %248 = vector.shape_cast %37 : vector<16xf32> to vector<1x16xf32>
    %249 = vector.broadcast %248 : vector<1x16xf32> to vector<16x16xf32>
    %250 = arith.mulf %247, %249 : vector<16x16xf32>
    %251 = arith.addf %246, %250 : vector<16x16xf32>
    %252 = vector.extract_strided_slice %23 {offsets = [109, 0], sizes = [16, 16], strides = [1, 1]} : vector<324x16xf32> to vector<16x16xf32>
    %253 = vector.shape_cast %39 : vector<16xf32> to vector<1x16xf32>
    %254 = vector.broadcast %253 : vector<1x16xf32> to vector<16x16xf32>
    %255 = arith.mulf %252, %254 : vector<16x16xf32>
    %256 = arith.addf %251, %255 : vector<16x16xf32>
    %257 = vector.extract_strided_slice %23 {offsets = [110, 0], sizes = [16, 16], strides = [1, 1]} : vector<324x16xf32> to vector<16x16xf32>
    %258 = vector.shape_cast %41 : vector<16xf32> to vector<1x16xf32>
    %259 = vector.broadcast %258 : vector<1x16xf32> to vector<16x16xf32>
    %260 = arith.mulf %257, %259 : vector<16x16xf32>
    %261 = arith.addf %256, %260 : vector<16x16xf32>
    %262 = vector.extract_strided_slice %23 {offsets = [90, 0], sizes = [16, 16], strides = [1, 1]} : vector<324x16xf32> to vector<16x16xf32>
    %263 = vector.shape_cast %25 : vector<16xf32> to vector<1x16xf32>
    %264 = vector.broadcast %263 : vector<1x16xf32> to vector<16x16xf32>
    %265 = arith.mulf %262, %264 : vector<16x16xf32>
    %266 = vector.extract_strided_slice %23 {offsets = [91, 0], sizes = [16, 16], strides = [1, 1]} : vector<324x16xf32> to vector<16x16xf32>
    %267 = vector.shape_cast %27 : vector<16xf32> to vector<1x16xf32>
    %268 = vector.broadcast %267 : vector<1x16xf32> to vector<16x16xf32>
    %269 = arith.mulf %266, %268 : vector<16x16xf32>
    %270 = arith.addf %265, %269 : vector<16x16xf32>
    %271 = vector.extract_strided_slice %23 {offsets = [92, 0], sizes = [16, 16], strides = [1, 1]} : vector<324x16xf32> to vector<16x16xf32>
    %272 = vector.shape_cast %29 : vector<16xf32> to vector<1x16xf32>
    %273 = vector.broadcast %272 : vector<1x16xf32> to vector<16x16xf32>
    %274 = arith.mulf %271, %273 : vector<16x16xf32>
    %275 = arith.addf %270, %274 : vector<16x16xf32>
    %276 = vector.extract_strided_slice %23 {offsets = [108, 0], sizes = [16, 16], strides = [1, 1]} : vector<324x16xf32> to vector<16x16xf32>
    %277 = vector.shape_cast %31 : vector<16xf32> to vector<1x16xf32>
    %278 = vector.broadcast %277 : vector<1x16xf32> to vector<16x16xf32>
    %279 = arith.mulf %276, %278 : vector<16x16xf32>
    %280 = arith.addf %275, %279 : vector<16x16xf32>
    %281 = vector.extract_strided_slice %23 {offsets = [109, 0], sizes = [16, 16], strides = [1, 1]} : vector<324x16xf32> to vector<16x16xf32>
    %282 = vector.shape_cast %33 : vector<16xf32> to vector<1x16xf32>
    %283 = vector.broadcast %282 : vector<1x16xf32> to vector<16x16xf32>
    %284 = arith.mulf %281, %283 : vector<16x16xf32>
    %285 = arith.addf %280, %284 : vector<16x16xf32>
    %286 = vector.extract_strided_slice %23 {offsets = [110, 0], sizes = [16, 16], strides = [1, 1]} : vector<324x16xf32> to vector<16x16xf32>
    %287 = vector.shape_cast %35 : vector<16xf32> to vector<1x16xf32>
    %288 = vector.broadcast %287 : vector<1x16xf32> to vector<16x16xf32>
    %289 = arith.mulf %286, %288 : vector<16x16xf32>
    %290 = arith.addf %285, %289 : vector<16x16xf32>
    %291 = vector.extract_strided_slice %23 {offsets = [126, 0], sizes = [16, 16], strides = [1, 1]} : vector<324x16xf32> to vector<16x16xf32>
    %292 = vector.shape_cast %37 : vector<16xf32> to vector<1x16xf32>
    %293 = vector.broadcast %292 : vector<1x16xf32> to vector<16x16xf32>
    %294 = arith.mulf %291, %293 : vector<16x16xf32>
    %295 = arith.addf %290, %294 : vector<16x16xf32>
    %296 = vector.extract_strided_slice %23 {offsets = [127, 0], sizes = [16, 16], strides = [1, 1]} : vector<324x16xf32> to vector<16x16xf32>
    %297 = vector.shape_cast %39 : vector<16xf32> to vector<1x16xf32>
    %298 = vector.broadcast %297 : vector<1x16xf32> to vector<16x16xf32>
    %299 = arith.mulf %296, %298 : vector<16x16xf32>
    %300 = arith.addf %295, %299 : vector<16x16xf32>
    %301 = vector.extract_strided_slice %23 {offsets = [128, 0], sizes = [16, 16], strides = [1, 1]} : vector<324x16xf32> to vector<16x16xf32>
    %302 = vector.shape_cast %41 : vector<16xf32> to vector<1x16xf32>
    %303 = vector.broadcast %302 : vector<1x16xf32> to vector<16x16xf32>
    %304 = arith.mulf %301, %303 : vector<16x16xf32>
    %305 = arith.addf %300, %304 : vector<16x16xf32>
    %306 = vector.extract_strided_slice %23 {offsets = [108, 0], sizes = [16, 16], strides = [1, 1]} : vector<324x16xf32> to vector<16x16xf32>
    %307 = vector.shape_cast %25 : vector<16xf32> to vector<1x16xf32>
    %308 = vector.broadcast %307 : vector<1x16xf32> to vector<16x16xf32>
    %309 = arith.mulf %306, %308 : vector<16x16xf32>
    %310 = vector.extract_strided_slice %23 {offsets = [109, 0], sizes = [16, 16], strides = [1, 1]} : vector<324x16xf32> to vector<16x16xf32>
    %311 = vector.shape_cast %27 : vector<16xf32> to vector<1x16xf32>
    %312 = vector.broadcast %311 : vector<1x16xf32> to vector<16x16xf32>
    %313 = arith.mulf %310, %312 : vector<16x16xf32>
    %314 = arith.addf %309, %313 : vector<16x16xf32>
    %315 = vector.extract_strided_slice %23 {offsets = [110, 0], sizes = [16, 16], strides = [1, 1]} : vector<324x16xf32> to vector<16x16xf32>
    %316 = vector.shape_cast %29 : vector<16xf32> to vector<1x16xf32>
    %317 = vector.broadcast %316 : vector<1x16xf32> to vector<16x16xf32>
    %318 = arith.mulf %315, %317 : vector<16x16xf32>
    %319 = arith.addf %314, %318 : vector<16x16xf32>
    %320 = vector.extract_strided_slice %23 {offsets = [126, 0], sizes = [16, 16], strides = [1, 1]} : vector<324x16xf32> to vector<16x16xf32>
    %321 = vector.shape_cast %31 : vector<16xf32> to vector<1x16xf32>
    %322 = vector.broadcast %321 : vector<1x16xf32> to vector<16x16xf32>
    %323 = arith.mulf %320, %322 : vector<16x16xf32>
    %324 = arith.addf %319, %323 : vector<16x16xf32>
    %325 = vector.extract_strided_slice %23 {offsets = [127, 0], sizes = [16, 16], strides = [1, 1]} : vector<324x16xf32> to vector<16x16xf32>
    %326 = vector.shape_cast %33 : vector<16xf32> to vector<1x16xf32>
    %327 = vector.broadcast %326 : vector<1x16xf32> to vector<16x16xf32>
    %328 = arith.mulf %325, %327 : vector<16x16xf32>
    %329 = arith.addf %324, %328 : vector<16x16xf32>
    %330 = vector.extract_strided_slice %23 {offsets = [128, 0], sizes = [16, 16], strides = [1, 1]} : vector<324x16xf32> to vector<16x16xf32>
    %331 = vector.shape_cast %35 : vector<16xf32> to vector<1x16xf32>
    %332 = vector.broadcast %331 : vector<1x16xf32> to vector<16x16xf32>
    %333 = arith.mulf %330, %332 : vector<16x16xf32>
    %334 = arith.addf %329, %333 : vector<16x16xf32>
    %335 = vector.extract_strided_slice %23 {offsets = [144, 0], sizes = [16, 16], strides = [1, 1]} : vector<324x16xf32> to vector<16x16xf32>
    %336 = vector.shape_cast %37 : vector<16xf32> to vector<1x16xf32>
    %337 = vector.broadcast %336 : vector<1x16xf32> to vector<16x16xf32>
    %338 = arith.mulf %335, %337 : vector<16x16xf32>
    %339 = arith.addf %334, %338 : vector<16x16xf32>
    %340 = vector.extract_strided_slice %23 {offsets = [145, 0], sizes = [16, 16], strides = [1, 1]} : vector<324x16xf32> to vector<16x16xf32>
    %341 = vector.shape_cast %39 : vector<16xf32> to vector<1x16xf32>
    %342 = vector.broadcast %341 : vector<1x16xf32> to vector<16x16xf32>
    %343 = arith.mulf %340, %342 : vector<16x16xf32>
    %344 = arith.addf %339, %343 : vector<16x16xf32>
    %345 = vector.extract_strided_slice %23 {offsets = [146, 0], sizes = [16, 16], strides = [1, 1]} : vector<324x16xf32> to vector<16x16xf32>
    %346 = vector.shape_cast %41 : vector<16xf32> to vector<1x16xf32>
    %347 = vector.broadcast %346 : vector<1x16xf32> to vector<16x16xf32>
    %348 = arith.mulf %345, %347 : vector<16x16xf32>
    %349 = arith.addf %344, %348 : vector<16x16xf32>
    %350 = vector.extract_strided_slice %23 {offsets = [126, 0], sizes = [16, 16], strides = [1, 1]} : vector<324x16xf32> to vector<16x16xf32>
    %351 = vector.shape_cast %25 : vector<16xf32> to vector<1x16xf32>
    %352 = vector.broadcast %351 : vector<1x16xf32> to vector<16x16xf32>
    %353 = arith.mulf %350, %352 : vector<16x16xf32>
    %354 = vector.extract_strided_slice %23 {offsets = [127, 0], sizes = [16, 16], strides = [1, 1]} : vector<324x16xf32> to vector<16x16xf32>
    %355 = vector.shape_cast %27 : vector<16xf32> to vector<1x16xf32>
    %356 = vector.broadcast %355 : vector<1x16xf32> to vector<16x16xf32>
    %357 = arith.mulf %354, %356 : vector<16x16xf32>
    %358 = arith.addf %353, %357 : vector<16x16xf32>
    %359 = vector.extract_strided_slice %23 {offsets = [128, 0], sizes = [16, 16], strides = [1, 1]} : vector<324x16xf32> to vector<16x16xf32>
    %360 = vector.shape_cast %29 : vector<16xf32> to vector<1x16xf32>
    %361 = vector.broadcast %360 : vector<1x16xf32> to vector<16x16xf32>
    %362 = arith.mulf %359, %361 : vector<16x16xf32>
    %363 = arith.addf %358, %362 : vector<16x16xf32>
    %364 = vector.extract_strided_slice %23 {offsets = [144, 0], sizes = [16, 16], strides = [1, 1]} : vector<324x16xf32> to vector<16x16xf32>
    %365 = vector.shape_cast %31 : vector<16xf32> to vector<1x16xf32>
    %366 = vector.broadcast %365 : vector<1x16xf32> to vector<16x16xf32>
    %367 = arith.mulf %364, %366 : vector<16x16xf32>
    %368 = arith.addf %363, %367 : vector<16x16xf32>
    %369 = vector.extract_strided_slice %23 {offsets = [145, 0], sizes = [16, 16], strides = [1, 1]} : vector<324x16xf32> to vector<16x16xf32>
    %370 = vector.shape_cast %33 : vector<16xf32> to vector<1x16xf32>
    %371 = vector.broadcast %370 : vector<1x16xf32> to vector<16x16xf32>
    %372 = arith.mulf %369, %371 : vector<16x16xf32>
    %373 = arith.addf %368, %372 : vector<16x16xf32>
    %374 = vector.extract_strided_slice %23 {offsets = [146, 0], sizes = [16, 16], strides = [1, 1]} : vector<324x16xf32> to vector<16x16xf32>
    %375 = vector.shape_cast %35 : vector<16xf32> to vector<1x16xf32>
    %376 = vector.broadcast %375 : vector<1x16xf32> to vector<16x16xf32>
    %377 = arith.mulf %374, %376 : vector<16x16xf32>
    %378 = arith.addf %373, %377 : vector<16x16xf32>
    %379 = vector.extract_strided_slice %23 {offsets = [162, 0], sizes = [16, 16], strides = [1, 1]} : vector<324x16xf32> to vector<16x16xf32>
    %380 = vector.shape_cast %37 : vector<16xf32> to vector<1x16xf32>
    %381 = vector.broadcast %380 : vector<1x16xf32> to vector<16x16xf32>
    %382 = arith.mulf %379, %381 : vector<16x16xf32>
    %383 = arith.addf %378, %382 : vector<16x16xf32>
    %384 = vector.extract_strided_slice %23 {offsets = [163, 0], sizes = [16, 16], strides = [1, 1]} : vector<324x16xf32> to vector<16x16xf32>
    %385 = vector.shape_cast %39 : vector<16xf32> to vector<1x16xf32>
    %386 = vector.broadcast %385 : vector<1x16xf32> to vector<16x16xf32>
    %387 = arith.mulf %384, %386 : vector<16x16xf32>
    %388 = arith.addf %383, %387 : vector<16x16xf32>
    %389 = vector.extract_strided_slice %23 {offsets = [164, 0], sizes = [16, 16], strides = [1, 1]} : vector<324x16xf32> to vector<16x16xf32>
    %390 = vector.shape_cast %41 : vector<16xf32> to vector<1x16xf32>
    %391 = vector.broadcast %390 : vector<1x16xf32> to vector<16x16xf32>
    %392 = arith.mulf %389, %391 : vector<16x16xf32>
    %393 = arith.addf %388, %392 : vector<16x16xf32>
    %394 = vector.extract_strided_slice %23 {offsets = [144, 0], sizes = [16, 16], strides = [1, 1]} : vector<324x16xf32> to vector<16x16xf32>
    %395 = vector.shape_cast %25 : vector<16xf32> to vector<1x16xf32>
    %396 = vector.broadcast %395 : vector<1x16xf32> to vector<16x16xf32>
    %397 = arith.mulf %394, %396 : vector<16x16xf32>
    %398 = vector.extract_strided_slice %23 {offsets = [145, 0], sizes = [16, 16], strides = [1, 1]} : vector<324x16xf32> to vector<16x16xf32>
    %399 = vector.shape_cast %27 : vector<16xf32> to vector<1x16xf32>
    %400 = vector.broadcast %399 : vector<1x16xf32> to vector<16x16xf32>
    %401 = arith.mulf %398, %400 : vector<16x16xf32>
    %402 = arith.addf %397, %401 : vector<16x16xf32>
    %403 = vector.extract_strided_slice %23 {offsets = [146, 0], sizes = [16, 16], strides = [1, 1]} : vector<324x16xf32> to vector<16x16xf32>
    %404 = vector.shape_cast %29 : vector<16xf32> to vector<1x16xf32>
    %405 = vector.broadcast %404 : vector<1x16xf32> to vector<16x16xf32>
    %406 = arith.mulf %403, %405 : vector<16x16xf32>
    %407 = arith.addf %402, %406 : vector<16x16xf32>
    %408 = vector.extract_strided_slice %23 {offsets = [162, 0], sizes = [16, 16], strides = [1, 1]} : vector<324x16xf32> to vector<16x16xf32>
    %409 = vector.shape_cast %31 : vector<16xf32> to vector<1x16xf32>
    %410 = vector.broadcast %409 : vector<1x16xf32> to vector<16x16xf32>
    %411 = arith.mulf %408, %410 : vector<16x16xf32>
    %412 = arith.addf %407, %411 : vector<16x16xf32>
    %413 = vector.extract_strided_slice %23 {offsets = [163, 0], sizes = [16, 16], strides = [1, 1]} : vector<324x16xf32> to vector<16x16xf32>
    %414 = vector.shape_cast %33 : vector<16xf32> to vector<1x16xf32>
    %415 = vector.broadcast %414 : vector<1x16xf32> to vector<16x16xf32>
    %416 = arith.mulf %413, %415 : vector<16x16xf32>
    %417 = arith.addf %412, %416 : vector<16x16xf32>
    %418 = vector.extract_strided_slice %23 {offsets = [164, 0], sizes = [16, 16], strides = [1, 1]} : vector<324x16xf32> to vector<16x16xf32>
    %419 = vector.shape_cast %35 : vector<16xf32> to vector<1x16xf32>
    %420 = vector.broadcast %419 : vector<1x16xf32> to vector<16x16xf32>
    %421 = arith.mulf %418, %420 : vector<16x16xf32>
    %422 = arith.addf %417, %421 : vector<16x16xf32>
    %423 = vector.extract_strided_slice %23 {offsets = [180, 0], sizes = [16, 16], strides = [1, 1]} : vector<324x16xf32> to vector<16x16xf32>
    %424 = vector.shape_cast %37 : vector<16xf32> to vector<1x16xf32>
    %425 = vector.broadcast %424 : vector<1x16xf32> to vector<16x16xf32>
    %426 = arith.mulf %423, %425 : vector<16x16xf32>
    %427 = arith.addf %422, %426 : vector<16x16xf32>
    %428 = vector.extract_strided_slice %23 {offsets = [181, 0], sizes = [16, 16], strides = [1, 1]} : vector<324x16xf32> to vector<16x16xf32>
    %429 = vector.shape_cast %39 : vector<16xf32> to vector<1x16xf32>
    %430 = vector.broadcast %429 : vector<1x16xf32> to vector<16x16xf32>
    %431 = arith.mulf %428, %430 : vector<16x16xf32>
    %432 = arith.addf %427, %431 : vector<16x16xf32>
    %433 = vector.extract_strided_slice %23 {offsets = [182, 0], sizes = [16, 16], strides = [1, 1]} : vector<324x16xf32> to vector<16x16xf32>
    %434 = vector.shape_cast %41 : vector<16xf32> to vector<1x16xf32>
    %435 = vector.broadcast %434 : vector<1x16xf32> to vector<16x16xf32>
    %436 = arith.mulf %433, %435 : vector<16x16xf32>
    %437 = arith.addf %432, %436 : vector<16x16xf32>
    %438 = vector.extract_strided_slice %23 {offsets = [162, 0], sizes = [16, 16], strides = [1, 1]} : vector<324x16xf32> to vector<16x16xf32>
    %439 = vector.shape_cast %25 : vector<16xf32> to vector<1x16xf32>
    %440 = vector.broadcast %439 : vector<1x16xf32> to vector<16x16xf32>
    %441 = arith.mulf %438, %440 : vector<16x16xf32>
    %442 = vector.extract_strided_slice %23 {offsets = [163, 0], sizes = [16, 16], strides = [1, 1]} : vector<324x16xf32> to vector<16x16xf32>
    %443 = vector.shape_cast %27 : vector<16xf32> to vector<1x16xf32>
    %444 = vector.broadcast %443 : vector<1x16xf32> to vector<16x16xf32>
    %445 = arith.mulf %442, %444 : vector<16x16xf32>
    %446 = arith.addf %441, %445 : vector<16x16xf32>
    %447 = vector.extract_strided_slice %23 {offsets = [164, 0], sizes = [16, 16], strides = [1, 1]} : vector<324x16xf32> to vector<16x16xf32>
    %448 = vector.shape_cast %29 : vector<16xf32> to vector<1x16xf32>
    %449 = vector.broadcast %448 : vector<1x16xf32> to vector<16x16xf32>
    %450 = arith.mulf %447, %449 : vector<16x16xf32>
    %451 = arith.addf %446, %450 : vector<16x16xf32>
    %452 = vector.extract_strided_slice %23 {offsets = [180, 0], sizes = [16, 16], strides = [1, 1]} : vector<324x16xf32> to vector<16x16xf32>
    %453 = vector.shape_cast %31 : vector<16xf32> to vector<1x16xf32>
    %454 = vector.broadcast %453 : vector<1x16xf32> to vector<16x16xf32>
    %455 = arith.mulf %452, %454 : vector<16x16xf32>
    %456 = arith.addf %451, %455 : vector<16x16xf32>
    %457 = vector.extract_strided_slice %23 {offsets = [181, 0], sizes = [16, 16], strides = [1, 1]} : vector<324x16xf32> to vector<16x16xf32>
    %458 = vector.shape_cast %33 : vector<16xf32> to vector<1x16xf32>
    %459 = vector.broadcast %458 : vector<1x16xf32> to vector<16x16xf32>
    %460 = arith.mulf %457, %459 : vector<16x16xf32>
    %461 = arith.addf %456, %460 : vector<16x16xf32>
    %462 = vector.extract_strided_slice %23 {offsets = [182, 0], sizes = [16, 16], strides = [1, 1]} : vector<324x16xf32> to vector<16x16xf32>
    %463 = vector.shape_cast %35 : vector<16xf32> to vector<1x16xf32>
    %464 = vector.broadcast %463 : vector<1x16xf32> to vector<16x16xf32>
    %465 = arith.mulf %462, %464 : vector<16x16xf32>
    %466 = arith.addf %461, %465 : vector<16x16xf32>
    %467 = vector.extract_strided_slice %23 {offsets = [198, 0], sizes = [16, 16], strides = [1, 1]} : vector<324x16xf32> to vector<16x16xf32>
    %468 = vector.shape_cast %37 : vector<16xf32> to vector<1x16xf32>
    %469 = vector.broadcast %468 : vector<1x16xf32> to vector<16x16xf32>
    %470 = arith.mulf %467, %469 : vector<16x16xf32>
    %471 = arith.addf %466, %470 : vector<16x16xf32>
    %472 = vector.extract_strided_slice %23 {offsets = [199, 0], sizes = [16, 16], strides = [1, 1]} : vector<324x16xf32> to vector<16x16xf32>
    %473 = vector.shape_cast %39 : vector<16xf32> to vector<1x16xf32>
    %474 = vector.broadcast %473 : vector<1x16xf32> to vector<16x16xf32>
    %475 = arith.mulf %472, %474 : vector<16x16xf32>
    %476 = arith.addf %471, %475 : vector<16x16xf32>
    %477 = vector.extract_strided_slice %23 {offsets = [200, 0], sizes = [16, 16], strides = [1, 1]} : vector<324x16xf32> to vector<16x16xf32>
    %478 = vector.shape_cast %41 : vector<16xf32> to vector<1x16xf32>
    %479 = vector.broadcast %478 : vector<1x16xf32> to vector<16x16xf32>
    %480 = arith.mulf %477, %479 : vector<16x16xf32>
    %481 = arith.addf %476, %480 : vector<16x16xf32>
    %482 = vector.extract_strided_slice %23 {offsets = [180, 0], sizes = [16, 16], strides = [1, 1]} : vector<324x16xf32> to vector<16x16xf32>
    %483 = vector.shape_cast %25 : vector<16xf32> to vector<1x16xf32>
    %484 = vector.broadcast %483 : vector<1x16xf32> to vector<16x16xf32>
    %485 = arith.mulf %482, %484 : vector<16x16xf32>
    %486 = vector.extract_strided_slice %23 {offsets = [181, 0], sizes = [16, 16], strides = [1, 1]} : vector<324x16xf32> to vector<16x16xf32>
    %487 = vector.shape_cast %27 : vector<16xf32> to vector<1x16xf32>
    %488 = vector.broadcast %487 : vector<1x16xf32> to vector<16x16xf32>
    %489 = arith.mulf %486, %488 : vector<16x16xf32>
    %490 = arith.addf %485, %489 : vector<16x16xf32>
    %491 = vector.extract_strided_slice %23 {offsets = [182, 0], sizes = [16, 16], strides = [1, 1]} : vector<324x16xf32> to vector<16x16xf32>
    %492 = vector.shape_cast %29 : vector<16xf32> to vector<1x16xf32>
    %493 = vector.broadcast %492 : vector<1x16xf32> to vector<16x16xf32>
    %494 = arith.mulf %491, %493 : vector<16x16xf32>
    %495 = arith.addf %490, %494 : vector<16x16xf32>
    %496 = vector.extract_strided_slice %23 {offsets = [198, 0], sizes = [16, 16], strides = [1, 1]} : vector<324x16xf32> to vector<16x16xf32>
    %497 = vector.shape_cast %31 : vector<16xf32> to vector<1x16xf32>
    %498 = vector.broadcast %497 : vector<1x16xf32> to vector<16x16xf32>
    %499 = arith.mulf %496, %498 : vector<16x16xf32>
    %500 = arith.addf %495, %499 : vector<16x16xf32>
    %501 = vector.extract_strided_slice %23 {offsets = [199, 0], sizes = [16, 16], strides = [1, 1]} : vector<324x16xf32> to vector<16x16xf32>
    %502 = vector.shape_cast %33 : vector<16xf32> to vector<1x16xf32>
    %503 = vector.broadcast %502 : vector<1x16xf32> to vector<16x16xf32>
    %504 = arith.mulf %501, %503 : vector<16x16xf32>
    %505 = arith.addf %500, %504 : vector<16x16xf32>
    %506 = vector.extract_strided_slice %23 {offsets = [200, 0], sizes = [16, 16], strides = [1, 1]} : vector<324x16xf32> to vector<16x16xf32>
    %507 = vector.shape_cast %35 : vector<16xf32> to vector<1x16xf32>
    %508 = vector.broadcast %507 : vector<1x16xf32> to vector<16x16xf32>
    %509 = arith.mulf %506, %508 : vector<16x16xf32>
    %510 = arith.addf %505, %509 : vector<16x16xf32>
    %511 = vector.extract_strided_slice %23 {offsets = [216, 0], sizes = [16, 16], strides = [1, 1]} : vector<324x16xf32> to vector<16x16xf32>
    %512 = vector.shape_cast %37 : vector<16xf32> to vector<1x16xf32>
    %513 = vector.broadcast %512 : vector<1x16xf32> to vector<16x16xf32>
    %514 = arith.mulf %511, %513 : vector<16x16xf32>
    %515 = arith.addf %510, %514 : vector<16x16xf32>
    %516 = vector.extract_strided_slice %23 {offsets = [217, 0], sizes = [16, 16], strides = [1, 1]} : vector<324x16xf32> to vector<16x16xf32>
    %517 = vector.shape_cast %39 : vector<16xf32> to vector<1x16xf32>
    %518 = vector.broadcast %517 : vector<1x16xf32> to vector<16x16xf32>
    %519 = arith.mulf %516, %518 : vector<16x16xf32>
    %520 = arith.addf %515, %519 : vector<16x16xf32>
    %521 = vector.extract_strided_slice %23 {offsets = [218, 0], sizes = [16, 16], strides = [1, 1]} : vector<324x16xf32> to vector<16x16xf32>
    %522 = vector.shape_cast %41 : vector<16xf32> to vector<1x16xf32>
    %523 = vector.broadcast %522 : vector<1x16xf32> to vector<16x16xf32>
    %524 = arith.mulf %521, %523 : vector<16x16xf32>
    %525 = arith.addf %520, %524 : vector<16x16xf32>
    %526 = vector.extract_strided_slice %23 {offsets = [198, 0], sizes = [16, 16], strides = [1, 1]} : vector<324x16xf32> to vector<16x16xf32>
    %527 = vector.shape_cast %25 : vector<16xf32> to vector<1x16xf32>
    %528 = vector.broadcast %527 : vector<1x16xf32> to vector<16x16xf32>
    %529 = arith.mulf %526, %528 : vector<16x16xf32>
    %530 = vector.extract_strided_slice %23 {offsets = [199, 0], sizes = [16, 16], strides = [1, 1]} : vector<324x16xf32> to vector<16x16xf32>
    %531 = vector.shape_cast %27 : vector<16xf32> to vector<1x16xf32>
    %532 = vector.broadcast %531 : vector<1x16xf32> to vector<16x16xf32>
    %533 = arith.mulf %530, %532 : vector<16x16xf32>
    %534 = arith.addf %529, %533 : vector<16x16xf32>
    %535 = vector.extract_strided_slice %23 {offsets = [200, 0], sizes = [16, 16], strides = [1, 1]} : vector<324x16xf32> to vector<16x16xf32>
    %536 = vector.shape_cast %29 : vector<16xf32> to vector<1x16xf32>
    %537 = vector.broadcast %536 : vector<1x16xf32> to vector<16x16xf32>
    %538 = arith.mulf %535, %537 : vector<16x16xf32>
    %539 = arith.addf %534, %538 : vector<16x16xf32>
    %540 = vector.extract_strided_slice %23 {offsets = [216, 0], sizes = [16, 16], strides = [1, 1]} : vector<324x16xf32> to vector<16x16xf32>
    %541 = vector.shape_cast %31 : vector<16xf32> to vector<1x16xf32>
    %542 = vector.broadcast %541 : vector<1x16xf32> to vector<16x16xf32>
    %543 = arith.mulf %540, %542 : vector<16x16xf32>
    %544 = arith.addf %539, %543 : vector<16x16xf32>
    %545 = vector.extract_strided_slice %23 {offsets = [217, 0], sizes = [16, 16], strides = [1, 1]} : vector<324x16xf32> to vector<16x16xf32>
    %546 = vector.shape_cast %33 : vector<16xf32> to vector<1x16xf32>
    %547 = vector.broadcast %546 : vector<1x16xf32> to vector<16x16xf32>
    %548 = arith.mulf %545, %547 : vector<16x16xf32>
    %549 = arith.addf %544, %548 : vector<16x16xf32>
    %550 = vector.extract_strided_slice %23 {offsets = [218, 0], sizes = [16, 16], strides = [1, 1]} : vector<324x16xf32> to vector<16x16xf32>
    %551 = vector.shape_cast %35 : vector<16xf32> to vector<1x16xf32>
    %552 = vector.broadcast %551 : vector<1x16xf32> to vector<16x16xf32>
    %553 = arith.mulf %550, %552 : vector<16x16xf32>
    %554 = arith.addf %549, %553 : vector<16x16xf32>
    %555 = vector.extract_strided_slice %23 {offsets = [234, 0], sizes = [16, 16], strides = [1, 1]} : vector<324x16xf32> to vector<16x16xf32>
    %556 = vector.shape_cast %37 : vector<16xf32> to vector<1x16xf32>
    %557 = vector.broadcast %556 : vector<1x16xf32> to vector<16x16xf32>
    %558 = arith.mulf %555, %557 : vector<16x16xf32>
    %559 = arith.addf %554, %558 : vector<16x16xf32>
    %560 = vector.extract_strided_slice %23 {offsets = [235, 0], sizes = [16, 16], strides = [1, 1]} : vector<324x16xf32> to vector<16x16xf32>
    %561 = vector.shape_cast %39 : vector<16xf32> to vector<1x16xf32>
    %562 = vector.broadcast %561 : vector<1x16xf32> to vector<16x16xf32>
    %563 = arith.mulf %560, %562 : vector<16x16xf32>
    %564 = arith.addf %559, %563 : vector<16x16xf32>
    %565 = vector.extract_strided_slice %23 {offsets = [236, 0], sizes = [16, 16], strides = [1, 1]} : vector<324x16xf32> to vector<16x16xf32>
    %566 = vector.shape_cast %41 : vector<16xf32> to vector<1x16xf32>
    %567 = vector.broadcast %566 : vector<1x16xf32> to vector<16x16xf32>
    %568 = arith.mulf %565, %567 : vector<16x16xf32>
    %569 = arith.addf %564, %568 : vector<16x16xf32>
    %570 = vector.extract_strided_slice %23 {offsets = [216, 0], sizes = [16, 16], strides = [1, 1]} : vector<324x16xf32> to vector<16x16xf32>
    %571 = vector.shape_cast %25 : vector<16xf32> to vector<1x16xf32>
    %572 = vector.broadcast %571 : vector<1x16xf32> to vector<16x16xf32>
    %573 = arith.mulf %570, %572 : vector<16x16xf32>
    %574 = vector.extract_strided_slice %23 {offsets = [217, 0], sizes = [16, 16], strides = [1, 1]} : vector<324x16xf32> to vector<16x16xf32>
    %575 = vector.shape_cast %27 : vector<16xf32> to vector<1x16xf32>
    %576 = vector.broadcast %575 : vector<1x16xf32> to vector<16x16xf32>
    %577 = arith.mulf %574, %576 : vector<16x16xf32>
    %578 = arith.addf %573, %577 : vector<16x16xf32>
    %579 = vector.extract_strided_slice %23 {offsets = [218, 0], sizes = [16, 16], strides = [1, 1]} : vector<324x16xf32> to vector<16x16xf32>
    %580 = vector.shape_cast %29 : vector<16xf32> to vector<1x16xf32>
    %581 = vector.broadcast %580 : vector<1x16xf32> to vector<16x16xf32>
    %582 = arith.mulf %579, %581 : vector<16x16xf32>
    %583 = arith.addf %578, %582 : vector<16x16xf32>
    %584 = vector.extract_strided_slice %23 {offsets = [234, 0], sizes = [16, 16], strides = [1, 1]} : vector<324x16xf32> to vector<16x16xf32>
    %585 = vector.shape_cast %31 : vector<16xf32> to vector<1x16xf32>
    %586 = vector.broadcast %585 : vector<1x16xf32> to vector<16x16xf32>
    %587 = arith.mulf %584, %586 : vector<16x16xf32>
    %588 = arith.addf %583, %587 : vector<16x16xf32>
    %589 = vector.extract_strided_slice %23 {offsets = [235, 0], sizes = [16, 16], strides = [1, 1]} : vector<324x16xf32> to vector<16x16xf32>
    %590 = vector.shape_cast %33 : vector<16xf32> to vector<1x16xf32>
    %591 = vector.broadcast %590 : vector<1x16xf32> to vector<16x16xf32>
    %592 = arith.mulf %589, %591 : vector<16x16xf32>
    %593 = arith.addf %588, %592 : vector<16x16xf32>
    %594 = vector.extract_strided_slice %23 {offsets = [236, 0], sizes = [16, 16], strides = [1, 1]} : vector<324x16xf32> to vector<16x16xf32>
    %595 = vector.shape_cast %35 : vector<16xf32> to vector<1x16xf32>
    %596 = vector.broadcast %595 : vector<1x16xf32> to vector<16x16xf32>
    %597 = arith.mulf %594, %596 : vector<16x16xf32>
    %598 = arith.addf %593, %597 : vector<16x16xf32>
    %599 = vector.extract_strided_slice %23 {offsets = [252, 0], sizes = [16, 16], strides = [1, 1]} : vector<324x16xf32> to vector<16x16xf32>
    %600 = vector.shape_cast %37 : vector<16xf32> to vector<1x16xf32>
    %601 = vector.broadcast %600 : vector<1x16xf32> to vector<16x16xf32>
    %602 = arith.mulf %599, %601 : vector<16x16xf32>
    %603 = arith.addf %598, %602 : vector<16x16xf32>
    %604 = vector.extract_strided_slice %23 {offsets = [253, 0], sizes = [16, 16], strides = [1, 1]} : vector<324x16xf32> to vector<16x16xf32>
    %605 = vector.shape_cast %39 : vector<16xf32> to vector<1x16xf32>
    %606 = vector.broadcast %605 : vector<1x16xf32> to vector<16x16xf32>
    %607 = arith.mulf %604, %606 : vector<16x16xf32>
    %608 = arith.addf %603, %607 : vector<16x16xf32>
    %609 = vector.extract_strided_slice %23 {offsets = [254, 0], sizes = [16, 16], strides = [1, 1]} : vector<324x16xf32> to vector<16x16xf32>
    %610 = vector.shape_cast %41 : vector<16xf32> to vector<1x16xf32>
    %611 = vector.broadcast %610 : vector<1x16xf32> to vector<16x16xf32>
    %612 = arith.mulf %609, %611 : vector<16x16xf32>
    %613 = arith.addf %608, %612 : vector<16x16xf32>
    %614 = vector.extract_strided_slice %23 {offsets = [234, 0], sizes = [16, 16], strides = [1, 1]} : vector<324x16xf32> to vector<16x16xf32>
    %615 = vector.shape_cast %25 : vector<16xf32> to vector<1x16xf32>
    %616 = vector.broadcast %615 : vector<1x16xf32> to vector<16x16xf32>
    %617 = arith.mulf %614, %616 : vector<16x16xf32>
    %618 = vector.extract_strided_slice %23 {offsets = [235, 0], sizes = [16, 16], strides = [1, 1]} : vector<324x16xf32> to vector<16x16xf32>
    %619 = vector.shape_cast %27 : vector<16xf32> to vector<1x16xf32>
    %620 = vector.broadcast %619 : vector<1x16xf32> to vector<16x16xf32>
    %621 = arith.mulf %618, %620 : vector<16x16xf32>
    %622 = arith.addf %617, %621 : vector<16x16xf32>
    %623 = vector.extract_strided_slice %23 {offsets = [236, 0], sizes = [16, 16], strides = [1, 1]} : vector<324x16xf32> to vector<16x16xf32>
    %624 = vector.shape_cast %29 : vector<16xf32> to vector<1x16xf32>
    %625 = vector.broadcast %624 : vector<1x16xf32> to vector<16x16xf32>
    %626 = arith.mulf %623, %625 : vector<16x16xf32>
    %627 = arith.addf %622, %626 : vector<16x16xf32>
    %628 = vector.extract_strided_slice %23 {offsets = [252, 0], sizes = [16, 16], strides = [1, 1]} : vector<324x16xf32> to vector<16x16xf32>
    %629 = vector.shape_cast %31 : vector<16xf32> to vector<1x16xf32>
    %630 = vector.broadcast %629 : vector<1x16xf32> to vector<16x16xf32>
    %631 = arith.mulf %628, %630 : vector<16x16xf32>
    %632 = arith.addf %627, %631 : vector<16x16xf32>
    %633 = vector.extract_strided_slice %23 {offsets = [253, 0], sizes = [16, 16], strides = [1, 1]} : vector<324x16xf32> to vector<16x16xf32>
    %634 = vector.shape_cast %33 : vector<16xf32> to vector<1x16xf32>
    %635 = vector.broadcast %634 : vector<1x16xf32> to vector<16x16xf32>
    %636 = arith.mulf %633, %635 : vector<16x16xf32>
    %637 = arith.addf %632, %636 : vector<16x16xf32>
    %638 = vector.extract_strided_slice %23 {offsets = [254, 0], sizes = [16, 16], strides = [1, 1]} : vector<324x16xf32> to vector<16x16xf32>
    %639 = vector.shape_cast %35 : vector<16xf32> to vector<1x16xf32>
    %640 = vector.broadcast %639 : vector<1x16xf32> to vector<16x16xf32>
    %641 = arith.mulf %638, %640 : vector<16x16xf32>
    %642 = arith.addf %637, %641 : vector<16x16xf32>
    %643 = vector.extract_strided_slice %23 {offsets = [270, 0], sizes = [16, 16], strides = [1, 1]} : vector<324x16xf32> to vector<16x16xf32>
    %644 = vector.shape_cast %37 : vector<16xf32> to vector<1x16xf32>
    %645 = vector.broadcast %644 : vector<1x16xf32> to vector<16x16xf32>
    %646 = arith.mulf %643, %645 : vector<16x16xf32>
    %647 = arith.addf %642, %646 : vector<16x16xf32>
    %648 = vector.extract_strided_slice %23 {offsets = [271, 0], sizes = [16, 16], strides = [1, 1]} : vector<324x16xf32> to vector<16x16xf32>
    %649 = vector.shape_cast %39 : vector<16xf32> to vector<1x16xf32>
    %650 = vector.broadcast %649 : vector<1x16xf32> to vector<16x16xf32>
    %651 = arith.mulf %648, %650 : vector<16x16xf32>
    %652 = arith.addf %647, %651 : vector<16x16xf32>
    %653 = vector.extract_strided_slice %23 {offsets = [272, 0], sizes = [16, 16], strides = [1, 1]} : vector<324x16xf32> to vector<16x16xf32>
    %654 = vector.shape_cast %41 : vector<16xf32> to vector<1x16xf32>
    %655 = vector.broadcast %654 : vector<1x16xf32> to vector<16x16xf32>
    %656 = arith.mulf %653, %655 : vector<16x16xf32>
    %657 = arith.addf %652, %656 : vector<16x16xf32>
    %658 = vector.extract_strided_slice %23 {offsets = [252, 0], sizes = [16, 16], strides = [1, 1]} : vector<324x16xf32> to vector<16x16xf32>
    %659 = vector.shape_cast %25 : vector<16xf32> to vector<1x16xf32>
    %660 = vector.broadcast %659 : vector<1x16xf32> to vector<16x16xf32>
    %661 = arith.mulf %658, %660 : vector<16x16xf32>
    %662 = vector.extract_strided_slice %23 {offsets = [253, 0], sizes = [16, 16], strides = [1, 1]} : vector<324x16xf32> to vector<16x16xf32>
    %663 = vector.shape_cast %27 : vector<16xf32> to vector<1x16xf32>
    %664 = vector.broadcast %663 : vector<1x16xf32> to vector<16x16xf32>
    %665 = arith.mulf %662, %664 : vector<16x16xf32>
    %666 = arith.addf %661, %665 : vector<16x16xf32>
    %667 = vector.extract_strided_slice %23 {offsets = [254, 0], sizes = [16, 16], strides = [1, 1]} : vector<324x16xf32> to vector<16x16xf32>
    %668 = vector.shape_cast %29 : vector<16xf32> to vector<1x16xf32>
    %669 = vector.broadcast %668 : vector<1x16xf32> to vector<16x16xf32>
    %670 = arith.mulf %667, %669 : vector<16x16xf32>
    %671 = arith.addf %666, %670 : vector<16x16xf32>
    %672 = vector.extract_strided_slice %23 {offsets = [270, 0], sizes = [16, 16], strides = [1, 1]} : vector<324x16xf32> to vector<16x16xf32>
    %673 = vector.shape_cast %31 : vector<16xf32> to vector<1x16xf32>
    %674 = vector.broadcast %673 : vector<1x16xf32> to vector<16x16xf32>
    %675 = arith.mulf %672, %674 : vector<16x16xf32>
    %676 = arith.addf %671, %675 : vector<16x16xf32>
    %677 = vector.extract_strided_slice %23 {offsets = [271, 0], sizes = [16, 16], strides = [1, 1]} : vector<324x16xf32> to vector<16x16xf32>
    %678 = vector.shape_cast %33 : vector<16xf32> to vector<1x16xf32>
    %679 = vector.broadcast %678 : vector<1x16xf32> to vector<16x16xf32>
    %680 = arith.mulf %677, %679 : vector<16x16xf32>
    %681 = arith.addf %676, %680 : vector<16x16xf32>
    %682 = vector.extract_strided_slice %23 {offsets = [272, 0], sizes = [16, 16], strides = [1, 1]} : vector<324x16xf32> to vector<16x16xf32>
    %683 = vector.shape_cast %35 : vector<16xf32> to vector<1x16xf32>
    %684 = vector.broadcast %683 : vector<1x16xf32> to vector<16x16xf32>
    %685 = arith.mulf %682, %684 : vector<16x16xf32>
    %686 = arith.addf %681, %685 : vector<16x16xf32>
    %687 = vector.extract_strided_slice %23 {offsets = [288, 0], sizes = [16, 16], strides = [1, 1]} : vector<324x16xf32> to vector<16x16xf32>
    %688 = vector.shape_cast %37 : vector<16xf32> to vector<1x16xf32>
    %689 = vector.broadcast %688 : vector<1x16xf32> to vector<16x16xf32>
    %690 = arith.mulf %687, %689 : vector<16x16xf32>
    %691 = arith.addf %686, %690 : vector<16x16xf32>
    %692 = vector.extract_strided_slice %23 {offsets = [289, 0], sizes = [16, 16], strides = [1, 1]} : vector<324x16xf32> to vector<16x16xf32>
    %693 = vector.shape_cast %39 : vector<16xf32> to vector<1x16xf32>
    %694 = vector.broadcast %693 : vector<1x16xf32> to vector<16x16xf32>
    %695 = arith.mulf %692, %694 : vector<16x16xf32>
    %696 = arith.addf %691, %695 : vector<16x16xf32>
    %697 = vector.extract_strided_slice %23 {offsets = [290, 0], sizes = [16, 16], strides = [1, 1]} : vector<324x16xf32> to vector<16x16xf32>
    %698 = vector.shape_cast %41 : vector<16xf32> to vector<1x16xf32>
    %699 = vector.broadcast %698 : vector<1x16xf32> to vector<16x16xf32>
    %700 = arith.mulf %697, %699 : vector<16x16xf32>
    %701 = arith.addf %696, %700 : vector<16x16xf32>
    %702 = vector.extract_strided_slice %23 {offsets = [270, 0], sizes = [16, 16], strides = [1, 1]} : vector<324x16xf32> to vector<16x16xf32>
    %703 = vector.shape_cast %25 : vector<16xf32> to vector<1x16xf32>
    %704 = vector.broadcast %703 : vector<1x16xf32> to vector<16x16xf32>
    %705 = arith.mulf %702, %704 : vector<16x16xf32>
    %706 = vector.extract_strided_slice %23 {offsets = [271, 0], sizes = [16, 16], strides = [1, 1]} : vector<324x16xf32> to vector<16x16xf32>
    %707 = vector.shape_cast %27 : vector<16xf32> to vector<1x16xf32>
    %708 = vector.broadcast %707 : vector<1x16xf32> to vector<16x16xf32>
    %709 = arith.mulf %706, %708 : vector<16x16xf32>
    %710 = arith.addf %705, %709 : vector<16x16xf32>
    %711 = vector.extract_strided_slice %23 {offsets = [272, 0], sizes = [16, 16], strides = [1, 1]} : vector<324x16xf32> to vector<16x16xf32>
    %712 = vector.shape_cast %29 : vector<16xf32> to vector<1x16xf32>
    %713 = vector.broadcast %712 : vector<1x16xf32> to vector<16x16xf32>
    %714 = arith.mulf %711, %713 : vector<16x16xf32>
    %715 = arith.addf %710, %714 : vector<16x16xf32>
    %716 = vector.extract_strided_slice %23 {offsets = [288, 0], sizes = [16, 16], strides = [1, 1]} : vector<324x16xf32> to vector<16x16xf32>
    %717 = vector.shape_cast %31 : vector<16xf32> to vector<1x16xf32>
    %718 = vector.broadcast %717 : vector<1x16xf32> to vector<16x16xf32>
    %719 = arith.mulf %716, %718 : vector<16x16xf32>
    %720 = arith.addf %715, %719 : vector<16x16xf32>
    %721 = vector.extract_strided_slice %23 {offsets = [289, 0], sizes = [16, 16], strides = [1, 1]} : vector<324x16xf32> to vector<16x16xf32>
    %722 = vector.shape_cast %33 : vector<16xf32> to vector<1x16xf32>
    %723 = vector.broadcast %722 : vector<1x16xf32> to vector<16x16xf32>
    %724 = arith.mulf %721, %723 : vector<16x16xf32>
    %725 = arith.addf %720, %724 : vector<16x16xf32>
    %726 = vector.extract_strided_slice %23 {offsets = [290, 0], sizes = [16, 16], strides = [1, 1]} : vector<324x16xf32> to vector<16x16xf32>
    %727 = vector.shape_cast %35 : vector<16xf32> to vector<1x16xf32>
    %728 = vector.broadcast %727 : vector<1x16xf32> to vector<16x16xf32>
    %729 = arith.mulf %726, %728 : vector<16x16xf32>
    %730 = arith.addf %725, %729 : vector<16x16xf32>
    %731 = vector.extract_strided_slice %23 {offsets = [306, 0], sizes = [16, 16], strides = [1, 1]} : vector<324x16xf32> to vector<16x16xf32>
    %732 = vector.shape_cast %37 : vector<16xf32> to vector<1x16xf32>
    %733 = vector.broadcast %732 : vector<1x16xf32> to vector<16x16xf32>
    %734 = arith.mulf %731, %733 : vector<16x16xf32>
    %735 = arith.addf %730, %734 : vector<16x16xf32>
    %736 = vector.extract_strided_slice %23 {offsets = [307, 0], sizes = [16, 16], strides = [1, 1]} : vector<324x16xf32> to vector<16x16xf32>
    %737 = vector.shape_cast %39 : vector<16xf32> to vector<1x16xf32>
    %738 = vector.broadcast %737 : vector<1x16xf32> to vector<16x16xf32>
    %739 = arith.mulf %736, %738 : vector<16x16xf32>
    %740 = arith.addf %735, %739 : vector<16x16xf32>
    %741 = vector.extract_strided_slice %23 {offsets = [308, 0], sizes = [16, 16], strides = [1, 1]} : vector<324x16xf32> to vector<16x16xf32>
    %742 = vector.shape_cast %41 : vector<16xf32> to vector<1x16xf32>
    %743 = vector.broadcast %742 : vector<1x16xf32> to vector<16x16xf32>
    %744 = arith.mulf %741, %743 : vector<16x16xf32>
    %745 = arith.addf %740, %744 : vector<16x16xf32>
    %746 = tpu.concatenate %85, %129, %173, %217, %261, %305, %349, %393, %437, %481, %525, %569, %613, %657, %701, %745 in 0 : vector<16x16xf32>, vector<16x16xf32>, vector<16x16xf32>, vector<16x16xf32>, vector<16x16xf32>, vector<16x16xf32>, vector<16x16xf32>, vector<16x16xf32>, vector<16x16xf32>, vector<16x16xf32>, vector<16x16xf32>, vector<16x16xf32>, vector<16x16xf32>, vector<16x16xf32>, vector<16x16xf32>, vector<16x16xf32> -> vector<256x16xf32>
    %747 = vector.broadcast %3 : vector<1x16xf32> to vector<256x16xf32>
    %748 = arith.addf %746, %747 : vector<256x16xf32>
    %cst_18 = arith.constant 0.000000e+00 : f32
    %cst_19 = arith.constant 6.000000e+00 : f32
    %749 = vector.broadcast %cst_18 : f32 to vector<256x16xf32>
    %750 = arith.maximumf %749, %748 : vector<256x16xf32>
    %751 = vector.broadcast %cst_19 : f32 to vector<256x16xf32>
    %752 = arith.minimumf %751, %750 : vector<256x16xf32>
    %753 = arith.truncf %752 : vector<256x16xf32> to vector<256x16xbf16>
    %cst_20 = arith.constant dense<0.000000e+00> : vector<8x256xf32>
    %754 = tpu.matmul %4, %753, %cst_20 {dimension_numbers = #tpu.dot_dimension_numbers<[1], [1], [0], [0], [0, 0, 1, 0], [], []>} : vector<8x16xbf16>, vector<256x16xbf16>, vector<8x256xf32> -> vector<8x256xf32>
    %755 = vector.broadcast %5 : vector<8x1xf32> to vector<8x256xf32>
    %756 = arith.addf %754, %755 : vector<8x256xf32>
    %c0_21 = arith.constant 0 : index
    %c0_22 = arith.constant 0 : index
    %c0_23 = arith.constant 0 : index
    %757 = vector.load %arg10[%c0_21, %c0_22, %c0_23] : memref<1x8x256xf32, #tpu.memory_space<vmem>>, vector<1x8x256xf32>
    %758 = vector.shape_cast %757 : vector<1x8x256xf32> to vector<8x256xf32>
    %759 = arith.addf %756, %758 : vector<8x256xf32>
    %c0_24 = arith.constant 0 : index
    %c0_25 = arith.constant 0 : index
    %c0_26 = arith.constant 0 : index
    %760 = vector.load %arg11[%c0_24, %c0_25, %c0_26] : memref<1x8x256xf32, #tpu.memory_space<vmem>>, vector<1x8x256xf32>
    %761 = vector.shape_cast %760 : vector<1x8x256xf32> to vector<8x256xf32>
    %762 = vector.shape_cast %759 : vector<8x256xf32> to vector<1x8x256xf32>
    tpu.vector_store %arg11[%c0_24, %c0_25, %c0_26], %762 {strides = array<i32>} : memref<1x8x256xf32, #tpu.memory_space<vmem>>, vector<1x8x256xf32>,
    return
  }
  func.func @transform_0(%arg0: i32, %arg1: i32) -> (i32, i32, i32) {
    %c0_i32 = arith.constant 0 : i32
    %c0_i32_0 = arith.constant 0 : i32
    %c0_i32_1 = arith.constant 0 : i32
    return %arg0, %c0_i32, %c0_i32_0 : i32, i32, i32
  }
  func.func @transform_1(%arg0: i32, %arg1: i32) -> (i32, i32) {
    %c0_i32 = arith.constant 0 : i32
    %c0_i32_0 = arith.constant 0 : i32
    %c0_i32_1 = arith.constant 0 : i32
    return %c0_i32, %c0_i32_0 : i32, i32
  }
  func.func @transform_2(%arg0: i32, %arg1: i32) -> (i32, i32) {
    %c0_i32 = arith.constant 0 : i32
    %c0_i32_0 = arith.constant 0 : i32
    %c0_i32_1 = arith.constant 0 : i32
    return %c0_i32, %c0_i32_0 : i32, i32
  }
  func.func @transform_3(%arg0: i32, %arg1: i32) -> (i32, i32) {
    %c0_i32 = arith.constant 0 : i32
    %c0_i32_0 = arith.constant 0 : i32
    %c0_i32_1 = arith.constant 0 : i32
    return %c0_i32, %c0_i32_0 : i32, i32
  }
  func.func @transform_4(%arg0: i32, %arg1: i32) -> (i32, i32, i32) {
    %c0_i32 = arith.constant 0 : i32
    %c0_i32_0 = arith.constant 0 : i32
    %c0_i32_1 = arith.constant 0 : i32
    %c0_i32_2 = arith.constant 0 : i32
    return %c0_i32, %c0_i32_0, %c0_i32_1 : i32, i32, i32
  }
  func.func @transform_5(%arg0: i32, %arg1: i32) -> (i32, i32) {
    %c0_i32 = arith.constant 0 : i32
    %c0_i32_0 = arith.constant 0 : i32
    %c0_i32_1 = arith.constant 0 : i32
    return %c0_i32, %c0_i32_0 : i32, i32
  }
  func.func @transform_6(%arg0: i32, %arg1: i32) -> (i32, i32) {
    %c0_i32 = arith.constant 0 : i32
    %c0_i32_0 = arith.constant 0 : i32
    %c0_i32_1 = arith.constant 0 : i32
    return %c0_i32, %c0_i32_0 : i32, i32
  }
  func.func @transform_7(%arg0: i32, %arg1: i32) -> (i32, i32) {
    %c0_i32 = arith.constant 0 : i32
    %c0_i32_0 = arith.constant 0 : i32
    %c0_i32_1 = arith.constant 0 : i32
    return %c0_i32, %c0_i32_0 : i32, i32
  }
  func.func @transform_8(%arg0: i32, %arg1: i32) -> (i32, i32, i32) {
    %c0_i32 = arith.constant 0 : i32
    %c0_i32_0 = arith.constant 0 : i32
    return %arg0, %c0_i32, %arg1 : i32, i32, i32
  }
  func.func @transform_9(%arg0: i32, %arg1: i32) -> (i32, i32, i32) {
    %c0_i32 = arith.constant 0 : i32
    %c0_i32_0 = arith.constant 0 : i32
    return %arg0, %c0_i32, %arg1 : i32, i32, i32
  }
}

</mosaic_0001>

<bundles_post_ra>
// kernel: tpu_custom_call.1
= control target key start
LH: loop header
LB: loop body
LE: loop exit
PB: predicated region body
PF: predicated region fallthrough
CT: control target
= control target key end

     0   :  { %14 = vsyncpa [#allocation3], 0  ;;  %s6010_s0 = inlined_call_operand.vmem [shape: f32[2,324,8], index: 0, kind: input, shape index: {}]   ;;  %s6011_s1 = inlined_call_operand.vmem [shape: f32[324,1], index: 1, kind: input, shape index: {}]   ;;  %s6012_s2 = inlined_call_operand.vmem [shape: bf16[8,16], index: 2, kind: input, shape index: {}]   ;;  %s6013_s3 = inlined_call_operand.vmem [shape: f32[1,16], index: 3, kind: input, shape index: {}]   ;;  %s6014_s4 = inlined_call_operand.vmem [shape: f32[3,3,16], index: 4, kind: input, shape index: {}]   ;;  %s6015_s5 = inlined_call_operand.vmem [shape: f32[1,16], index: 5, kind: input, shape index: {}]   ;;  %s6016_s6 = inlined_call_operand.vmem [shape: bf16[8,16], index: 6, kind: input, shape index: {}]   ;;  %s6017_s7 = inlined_call_operand.vmem [shape: f32[8,1], index: 7, kind: input, shape index: {}]   ;;  %s6018_s8 = inlined_call_operand.vmem [shape: f32[2,8,256], index: 8, kind: input, shape index: {}]   ;;  %s6019_s9 = inlined_call_operand.hbm [shape: f32[2,8,256], index: 9, kind: output, shape index: {}]  }
   0x1   :  { %16 = vsyncpa [#allocation3 + $0x1], 0  ;;  %s3817_s30 = smov 0   ;;  %s3819_s10 = smov 0  }
   0x2   :  { %s3821_s11 = smov 0   ;;  %s3823_s12 = smov 0  }
   0x3   :  { %s3825_s13 = smov 0   ;;  %s3827_s14 = smov 0  }
   0x4 LB: > { %s3446_s15 = sadd.s32 4294967295, %s3761_s14   ;;  %s3447_s16 = sadd.s32 4294967294, %s3761_s14   ;;  %s3761_s14 = sphi %s3827_s14, %s22_s14   ;;  %s3757_s13 = sphi %s3825_s13, %s6339_s13   ;;  %s3753_s12 = sphi %s3823_s12, %s6338_s12   ;;  %s3749_s11 = sphi %s3821_s11, %s6337_s11   ;;  %s3745_s10 = sphi %s3819_s10, %s6336_s10   ;;  %s3741_s30 = sphi %s3817_s30, %s6335_s30  }
   0x5   : > { %s34_s17 = sadd.s32 1, %s3757_s13  ;;  %s244_s18 = sadd.s32 1, %s3749_s11 }
   0x6   : > { %p36_p0 = scmp.ge.s32.totalorder %s34_s17, 2  ;;  %p254_p1 = scmp.ne.s32.totalorder %s3749_s11, %s3745_s10 }
   0x7   : > { %p255_p2 = scmp.eq.s32.totalorder %s3446_s15, 1  ;;  %p260_p3 = scmp.ne.s32.totalorder %s3745_s10, %s3741_s30 }
   0x8   : > { %s6341_s17 = smov (%p36_p0, %s34_s17), 0  ;;  %p261_p5 = scmp.eq.s32.totalorder %s3447_s16, 1 }
   0x9   : > { %p3857_p4 = por %p255_p2, %p254_p1  ;;  %s239_s20 = ssub.s32 %s3757_s13, %s6341_s17 }
   0xa   : > { %p3450_p6 = scmp.ge.s32.totalorder %s3761_s14, 1  ;;  %p242_p7 = scmp.eq.s32.totalorder %s239_s20, 0 }
   0xb   : > { %p3864_p8 = por %p261_p5, %p260_p3  ;;  %p321_p9 = scmp.lt.s32.totalorder %s3761_s14, 3 }
   0xc   : > { %s3870_s22 = scalar_select %p242_p7, %s3749_s11, %s244_s18  }
   0xd   : > { %p322_p10 = pnand %p3450_p6, %p321_p9 }
   0xf   : > { %325 = sbr.rel (%p322_p10) target bundleno = 865 (0x361), region = 56 }
  0x14   : > { %v383_v0 = vld [vmem:[%s6012_s2] sm:$0xf]  ;;  %vm525_vm0 = vcmask 1043456   ;;  %v3763_v1 = vmov 0.0   ;;  %v829_v3 = vld [vmem:[%s6011_s1 + $0x88] sm:$0xff]  ;;  %v827_v4 = vld [vmem:[%s6011_s1 + $0x78] sm:$0xff] }
  0x15   : > { %3526 = vmatprep.subr.bf16.mxu0 %v3763_v1  ;;  %3612 = vmatprep.subr.bf16.mxu1 %v3763_v1  ;;  %v527_v2 = vsel %vm525_vm0, %v383_v0, 0  ;;  %p366_p11 = scmp.lt.s32.totalorder %s3753_s12, 1  ;;  %v3764_v5 = vmov 0   ;;  %vm3765_vm1 = vmmov 0   ;;  %v845_v6 = vld [vmem:[%s6011_s1 + $0x108] sm:$0xff]  ;;  %v828_v7 = vld [vmem:[%s6011_s1 + $0x80] sm:$0xff] }
  0x16   : > { %3527 = vmatpush3.bf16.msra.mxu0 %v527_v2  ;;  %3613 = vmatpush3.bf16.msra.mxu1 %v527_v2  ;;  %vm461_vm2 = vcmask 64512   ;;  %v847_v13 = vld [vmem:[%s6011_s1 + $0x118] sm:$0xff]  ;;  %v846_v15 = vld [vmem:[%s6011_s1 + $0x110] sm:$0xff]  ;;  %v849_v24 = vld [vmem:[%s6011_s1 + $0x128] sm:$0xff]  ;;  %vm1115_vm3 = vcmask 1046528   ;;  %vm1135_vm4 = vcmask 1045504  }
  0x17   : > { %3682 = vset.pattern.permute.xlu1 %v3764_v5  ;;  %3681 = vset.pattern.permute.xlu0 %v3764_v5  ;;  %s3886_s29 = scalar_select %p366_p11, %s3753_s12, 1  ;;  %v831_v20 = vld [vmem:[%s6011_s1 + $0x98] sm:$0xff]  ;;  %v830_v21 = vld [vmem:[%s6011_s1 + $0x90] sm:$0xff]  ;;  %v848_v25 = vld [vmem:[%s6011_s1 + $0x120] sm:$0xff]  ;;  %vm1174_vm5 = vcmask 1044480   ;;  %vm1232_vm6 = vcmask 1042432  }
  0x18   : > { %940 = vperm.xlu1 %3682, %v829_v3   ;;  %930 = vperm.xlu0 %3681, %v827_v4   ;;  %v850_v30 = vld [vmem:[%s6011_s1 + $0x130] sm:$0xff]  ;;  %v832_v31 = vld [vmem:[%s6011_s1 + $0xa0] sm:$0xff]  ;;  %v825_v35 = vld [vmem:[%s6011_s1 + $0x68] sm:$0xff]  ;;  %vm1252_vm7 = vcmask 1041408   ;;  %vm3238_vm8 = vcmask 130048   ;;  %s363_s27 = sand.u32 1, %s3745_s10  }
  0x19   : > { %3528 = vmatprep.mubr.msk.bf16.mxu0 %vm3765_vm1, %v3763_v1  ;;  %3572 = vmatprep.mubr.msk.bf16.mxu1 %vm3765_vm1, %v3763_v1  ;;  %s3622_s15 = smul.u32 328, %s3886_s29  ;;  %v826_v34 = vld [vmem:[%s6011_s1 + $0x70] sm:$0xff]  ;;  %v844_v40 = vld [vmem:[%s6011_s1 + $0x100] sm:$0xff]  ;;  %v843_v41 = vld [vmem:[%s6011_s1 + $0xf8] sm:$0xff]  ;;  %s3484_s28 = sshll.u32 %s3886_s29, 4 }
  0x1a   : > { %v834_v44 = vld [vmem:[%s6011_s1 + $0xb0] sm:$0xff]  ;;  %v833_v45 = vld [vmem:[%s6011_s1 + $0xa8] sm:$0xff]  ;;  %v852_v50 = vld [vmem:[%s6011_s1 + $0x140] sm:$0xf]  ;;  %s379_s18 = scalar_lea.vmem %s6018_s8, %s3484_s28  ;;  %s3485_s20 = sshll.u32 %s3753_s12, 8 }
  0x1b   : > { %s3902_s26 = scalar_lea.vmem %s6010_s0, %s3622_s15  ;;  %v851_v51 = vld [vmem:[%s6011_s1 + $0x138] sm:$0xff]  ;;  %v824_v54 = vld [vmem:[%s6011_s1 + $0x60] sm:$0xff]  ;;  %v842_v60 = vld [vmem:[%s6011_s1 + $0xf0] sm:$0xff]  ;;  %s3451_s15 = sshll.u32 %s363_s27, 4 }
  0x1c   : > { %v393_v8 = vld [vmem:[%s3902_s26] sm:$0xff]  ;;  %v394_v9 = vld [vmem:[%s3902_s26 + $0x8] sm:$0xff]  ;;  %v415_v10 = vld [vmem:[%s3902_s26 + $0xb0] sm:$0xff]  ;;  %1020 = vperm.xlu1 %3682, %v845_v6   ;;  %935 = vperm.xlu0 %3681, %v828_v7   ;;  %s365_s23 = scalar_lea.vmem [#allocation2], %s3451_s15  ;;  %s5970_s16 = scalar_lea.hbm %s6019_s9, %s3485_s20 }
  0x1d   : > { %v434_v11 = vpack.c.bf16 %v394_v9, %v393_v8  ;;  %v416_v12 = vld [vmem:[%s3902_s26 + $0xb8] sm:$0xff]  ;;  %v395_v16 = vld [vmem:[%s3902_s26 + $0x10] sm:$0xff]  ;;  %v417_v18 = vld [vmem:[%s3902_s26 + $0xc0] sm:$0xff]  ;;  %s3354_s24 = sshll.u32 %s365_s23, 4  ;;  %s3338_s28 = scalar_lea.sflag [#allocation3], %s363_s27  ;;  %s3355_s24 = int_to_ptr.vmem [resolvable:$true] %s3354_s24 }
  0x1e   : > { %v445_v14 = vpack.c.bf16 %v416_v12, %v415_v10  ;;  %v396_v17 = vld [vmem:[%s3902_s26 + $0x18] sm:$0xff]  ;;  %v418_v19 = vld [vmem:[%s3902_s26 + $0xc8] sm:$0xff]  ;;  %v397_v26 = vld [vmem:[%s3902_s26 + $0x20] sm:$0xff]  ;;  %s3766_s12 = smov [#allocation2]  }
  0x1f   : > { %3529 = vmatmul.mubr.msk.bf16.vlgmr.msra.gmra.mxu0 %vm461_vm2, %v434_v11  ;;  %v435_v22 = vpack.c.bf16 %v396_v17, %v395_v16  ;;  %v446_v23 = vpack.c.bf16 %v418_v19, %v417_v18  ;;  %v398_v27 = vld [vmem:[%s3902_s26 + $0x28] sm:$0xff]  ;;  %v419_v28 = vld [vmem:[%s3902_s26 + $0xd0] sm:$0xff]  ;;  %v420_v29 = vld [vmem:[%s3902_s26 + $0xd8] sm:$0xff]  ;;  %s3689_s15 = sshll.u32 %s3766_s12, 4  ;;  %s3690_s15 = int_to_ptr.vmem [resolvable:$false] %s3689_s15 }
  0x20   : > { %3573 = vmatmul.mubr.msk.bf16.vlgmr.msra.gmra.mxu1 %vm461_vm2, %v445_v14  ;;  %1030 = vperm.xlu1 %3682, %v847_v13   ;;  %v436_v32 = vpack.c.bf16 %v398_v27, %v397_v26  ;;  %v447_v33 = vpack.c.bf16 %v420_v29, %v419_v28  ;;  %v399_v36 = vld [vmem:[%s3902_s26 + $0x30] sm:$0xff]  ;;  %v400_v37 = vld [vmem:[%s3902_s26 + $0x38] sm:$0xff]  ;;  %v421_v38 = vld [vmem:[%s3902_s26 + $0xe0] sm:$0xff]  ;;  %p3692_p1 = scmp.lt.s32.totalorder %s3355_s24, %s3690_s15 }
  0x21   : > { %1025 = vperm.xlu0 %3681, %v846_v15   ;;  %3532 = vmatprep.mubr.msk.bf16.mxu0 %vm3765_vm1, %v3763_v1  ;;  %v422_v39 = vld [vmem:[%s3902_s26 + $0xe8] sm:$0xff]  ;;  %v437_v42 = vpack.c.bf16 %v400_v37, %v399_v36  ;;  %v401_v46 = vld [vmem:[%s3902_s26 + $0x40] sm:$0xff]  ;;  %v423_v48 = vld [vmem:[%s3902_s26 + $0xf0] sm:$0xff] }
  0x22   : > { %3576 = vmatprep.mubr.msk.bf16.mxu1 %vm3765_vm1, %v3763_v1  ;;  %v448_v43 = vpack.c.bf16 %v422_v39, %v421_v38  ;;  %v402_v47 = vld [vmem:[%s3902_s26 + $0x48] sm:$0xff]  ;;  %v424_v49 = vld [vmem:[%s3902_s26 + $0xf8] sm:$0xff]  ;;  %v403_v56 = vld [vmem:[%s3902_s26 + $0x50] sm:$0xff] }
  0x23   : > { %v438_v52 = vpack.c.bf16 %v402_v47, %v401_v46  ;;  %v449_v53 = vpack.c.bf16 %v424_v49, %v423_v48  ;;  %v823_v55 = vld [vmem:[%s6011_s1 + $0x58] sm:$0xff]  ;;  %v425_v58 = vld [vmem:[%s3902_s26 + $0x100] sm:$0xff]  ;;  %v426_v59 = vld [vmem:[%s3902_s26 + $0x108] sm:$0xff] }
  0x24   : > { %950 = vperm.xlu1 %3682, %v831_v20   ;;  %v404_v57 = vld [vmem:[%s3902_s26 + $0x58] sm:$0xff]  ;;  %v841_v61 = vld [vmem:[%s6011_s1 + $0xe8] sm:$0xff]  ;;  %v450_v63 = vpack.c.bf16 %v426_v59, %v425_v58  ;;  %v822_v0 = vld [vmem:[%s6011_s1 + $0x50] sm:$0xff] }
  0x25   : > { %945 = vperm.xlu0 %3681, %v830_v21   ;;  %v439_v62 = vpack.c.bf16 %v404_v57, %v403_v56  ;;  %v821_v2 = vld [vmem:[%s6011_s1 + $0x48] sm:$0xff]  ;;  %v405_v3 = vld [vmem:[%s3902_s26 + $0x60] sm:$0xff]  ;;  %v427_v5 = vld [vmem:[%s3902_s26 + $0x110] sm:$0xff] }
  0x26   : > { %v406_v4 = vld [vmem:[%s3902_s26 + $0x68] sm:$0xff]  ;;  %v428_v6 = vld [vmem:[%s3902_s26 + $0x118] sm:$0xff]  ;;  %v840_v7 = vld [vmem:[%s6011_s1 + $0xe0] sm:$0xff] }
  0x27   : > { %3533 = vmatmul.mubr.msk.bf16.gmra.mxu0 %vm461_vm2, %v435_v22  ;;  %v839_v8 = vld [vmem:[%s6011_s1 + $0xd8] sm:$0xff]  ;;  %v440_v9 = vpack.c.bf16 %v406_v4, %v405_v3  ;;  %v451_v10 = vpack.c.bf16 %v428_v6, %v427_v5  ;;  %v818_v12 = vld [vmem:[%s6011_s1 + $0x30] sm:$0xff]  ;;  %v429_v15 = vld [vmem:[%s3902_s26 + $0x120] sm:$0xff] }
  0x28   : > { %3577 = vmatmul.mubr.msk.bf16.gmra.mxu1 %vm461_vm2, %v446_v23  ;;  %1040 = vperm.xlu1 %3682, %v849_v24   ;;  %v819_v11 = vld [vmem:[%s6011_s1 + $0x38] sm:$0xff]  ;;  %v407_v13 = vld [vmem:[%s3902_s26 + $0x70] sm:$0xff]  ;;  %v430_v16 = vld [vmem:[%s3902_s26 + $0x128] sm:$0xff] }
  0x29   : > { %1035 = vperm.xlu0 %3681, %v848_v25   ;;  %3536 = vmatprep.mubr.msk.bf16.mxu0 %vm3765_vm1, %v3763_v1  ;;  %v408_v14 = vld [vmem:[%s3902_s26 + $0x78] sm:$0xff]  ;;  %v836_v17 = vld [vmem:[%s6011_s1 + $0xc0] sm:$0xff]  ;;  %v452_v20 = vpack.c.bf16 %v430_v16, %v429_v15  ;;  %v838_v21 = vld [vmem:[%s6011_s1 + $0xd0] sm:$0xff] }
  0x2a   : > { %3580 = vmatprep.mubr.msk.bf16.mxu1 %vm3765_vm1, %v3763_v1  ;;  %v820_v18 = vld [vmem:[%s6011_s1 + $0x40] sm:$0xff]  ;;  %v441_v19 = vpack.c.bf16 %v408_v14, %v407_v13  ;;  %v837_v22 = vld [vmem:[%s6011_s1 + $0xc8] sm:$0xff]  ;;  %v431_v25 = vld [vmem:[%s3902_s26 + $0x130] sm:$0xff] }
  0x2b   : > { %v409_v23 = vld [vmem:[%s3902_s26 + $0x80] sm:$0xff]  ;;  %v410_v24 = vld [vmem:[%s3902_s26 + $0x88] sm:$0xff]  ;;  %v432_v26 = vld [vmem:[%s3902_s26 + $0x138] sm:$0xff] }
  0x2c   : > { %1045 = vperm.xlu1 %3682, %v850_v30   ;;  %v817_v27 = vld [vmem:[%s6011_s1 + $0x28] sm:$0xff]  ;;  %v816_v28 = vld [vmem:[%s6011_s1 + $0x20] sm:$0xff]  ;;  %v442_v29 = vpack.c.bf16 %v410_v24, %v409_v23  ;;  %v453_v30 = vpack.c.bf16 %v432_v26, %v431_v25  ;;  %v815_v37 = vld [vmem:[%s6011_s1 + $0x18] sm:$0xff] }
  0x2d   : > { %955 = vperm.xlu0 %3681, %v832_v31   ;;  %v814_v31 = vld [vmem:[%s6011_s1 + $0x10] sm:$0xff]  ;;  %v812_v36 = vld [vmem:[%s6011_s1] sm:$0xff] }
  0x2f   : > { %3537 = vmatmul.mubr.msk.bf16.gmra.mxu0 %vm461_vm2, %v436_v32  ;;  %v835_v32 = vld [vmem:[%s6011_s1 + $0xb8] sm:$0xff] }
  0x30   : > { %3581 = vmatmul.mubr.msk.bf16.gmra.mxu1 %vm461_vm2, %v447_v33  ;;  %925 = vperm.xlu1 %3682, %v826_v34   ;;  %v411_v33 = vld [vmem:[%s3902_s26 + $0x90] sm:$0xff]  ;;  %v412_v34 = vld [vmem:[%s3902_s26 + $0x98] sm:$0xff] }
  0x31   : > { %920 = vperm.xlu0 %3681, %v825_v35   ;;  %3540 = vmatprep.mubr.msk.bf16.mxu0 %vm3765_vm1, %v3763_v1  ;;  %v433_v35 = vld [vmem:[%s3902_s26 + $0x140] sm:$0xf]  ;;  %v443_v38 = vpack.c.bf16 %v412_v34, %v411_v33 }
  0x32   : > { %3584 = vmatprep.mubr.msk.bf16.mxu1 %vm3765_vm1, %v3763_v1  ;;  %v454_v39 = vpack.c.bf16 %v433_v35, %v433_v35 }
  0x34   : > { %1015 = vperm.xlu1 %3682, %v844_v40   ;;  %v813_v40 = vld [vmem:[%s6011_s1 + $0x8] sm:$0xff] }
  0x35   : > { %1010 = vperm.xlu0 %3681, %v843_v41   ;;  %v390_v41 = vld [vmem:[%s6017_s7] sm:$0xff] }
  0x37   : > { %3541 = vmatmul.mubr.msk.bf16.gmra.mxu0 %vm461_vm2, %v437_v42  ;;  %v413_v42 = vld [vmem:[%s3902_s26 + $0xa0] sm:$0xff] }
  0x38   : > { %3585 = vmatmul.mubr.msk.bf16.gmra.mxu1 %vm461_vm2, %v448_v43  ;;  %965 = vperm.xlu1 %3682, %v834_v44   ;;  %v414_v43 = vld [vmem:[%s3902_s26 + $0xa8] sm:$0xff]  ;;  %s3685_s26 = scalar_lea.vmem %s3355_s24, 256 }
  0x39   : > { %960 = vperm.xlu0 %3681, %v833_v45   ;;  %3544 = vmatprep.mubr.msk.bf16.mxu0 %vm3765_vm1, %v3763_v1  ;;  %v444_v44 = vpack.c.bf16 %v414_v43, %v413_v42  ;;  %p3686_p12 = scmp.ne.s32.totalorder %s3355_s24, %s3685_s26 }
  0x3a   : > { %3588 = vmatprep.mubr.msk.bf16.mxu1 %vm3765_vm1, %v3763_v1 }
  0x3b   : > { %p3687_p13 = pnand %p3686_p12, %p3857_p4 }
  0x3c   : > { %1055 = vperm.xlu1 %3682, %v852_v50  }
  0x3d   : > { %1050 = vperm.xlu0 %3681, %v851_v51   ;;  %p3688_p0 = pneg %p3687_p13 }
  0x3f   : > { %3545 = vmatmul.mubr.msk.bf16.gmra.mxu0 %vm461_vm2, %v438_v52 }
  0x40   : > { %3589 = vmatmul.mubr.msk.bf16.gmra.mxu1 %vm461_vm2, %v449_v53  ;;  %915 = vperm.xlu1 %3682, %v824_v54  }
  0x41   : > { %910 = vperm.xlu0 %3681, %v823_v55   ;;  %3548 = vmatprep.mubr.msk.bf16.mxu0 %vm3765_vm1, %v3763_v1 }
  0x42   : > { %3592 = vmatprep.mubr.msk.bf16.mxu1 %vm3765_vm1, %v3763_v1 }
  0x44   : > { %1005 = vperm.xlu1 %3682, %v842_v60  }
  0x45   : > { %1000 = vperm.xlu0 %3681, %v841_v61  }
  0x47   : > { %3549 = vmatmul.mubr.msk.bf16.gmra.mxu0 %vm461_vm2, %v439_v62 }
  0x48   : > { %3593 = vmatmul.mubr.msk.bf16.gmra.mxu1 %vm461_vm2, %v450_v63  ;;  %905 = vperm.xlu1 %3682, %v822_v0  }
  0x49   : > { %900 = vperm.xlu0 %3681, %v821_v2   ;;  %3552 = vmatprep.mubr.msk.bf16.mxu0 %vm3765_vm1, %v3763_v1 }
  0x4a   : > { %3596 = vmatprep.mubr.msk.bf16.mxu1 %vm3765_vm1, %v3763_v1 }
  0x4c   : > { %995 = vperm.xlu1 %3682, %v840_v7  }
  0x4d   : > { %990 = vperm.xlu0 %3681, %v839_v8  }
  0x4f   : > { %3553 = vmatmul.mubr.msk.bf16.gmra.mxu0 %vm461_vm2, %v440_v9 }
  0x50   : > { %3597 = vmatmul.mubr.msk.bf16.gmra.mxu1 %vm461_vm2, %v451_v10  ;;  %890 = vperm.xlu1 %3682, %v819_v11  }
  0x51   : > { %885 = vperm.xlu0 %3681, %v818_v12   ;;  %3556 = vmatprep.mubr.msk.bf16.mxu0 %vm3765_vm1, %v3763_v1 }
  0x52   : > { %3600 = vmatprep.mubr.msk.bf16.mxu1 %vm3765_vm1, %v3763_v1 }
  0x54   : > { %975 = vperm.xlu1 %3682, %v836_v17   ;;  %v1099_v17 = vlaneseq }
  0x55   : > { %895 = vperm.xlu0 %3681, %v820_v18  }
  0x57   : > { %3557 = vmatmul.mubr.msk.bf16.gmra.mxu0 %vm461_vm2, %v441_v19  ;;  %v4195_v19 = vld [vmem:[%s6013_s3] ss:$0 sm:$0xff] }
  0x58   : > { %3601 = vmatmul.mubr.msk.bf16.gmra.mxu1 %vm461_vm2, %v452_v20  ;;  %985 = vperm.xlu1 %3682, %v838_v21   ;;  %v1100_v21 = vshrl.u32 %v1099_v17, 7 }
  0x59   : > { %980 = vperm.xlu0 %3681, %v837_v22   ;;  %3560 = vmatprep.mubr.msk.bf16.mxu0 %vm3765_vm1, %v3763_v1 }
  0x5a   : > { %3604 = vmatprep.mubr.msk.bf16.mxu1 %vm3765_vm1, %v3763_v1 }
  0x5c   : > { %880 = vperm.xlu1 %3682, %v817_v27  }
  0x5d   : > { %875 = vperm.xlu0 %3681, %v816_v28   ;;  %v4203_v28 = vsub.s32 1, %v1100_v21 }
  0x5f   : > { %3561 = vmatmul.mubr.msk.bf16.gmra.mxu0 %vm461_vm2, %v442_v29 }
  0x60   : > { %3605 = vmatmul.mubr.msk.bf16.gmra.mxu1 %vm461_vm2, %v453_v30  ;;  %865 = vperm.xlu1 %3682, %v814_v31   ;;  %v4205_v31 = vsub.s32 2, %v1100_v21 }
  0x61   : > { %970 = vperm.xlu0 %3681, %v835_v32   ;;  %3564 = vmatprep.mubr.msk.bf16.mxu0 %vm3765_vm1, %v3763_v1  ;;  %v385_v32 = vld [vmem:[%s6014_s4] sm:$0x7] }
  0x62   : > { %3608 = vmatprep.mubr.msk.bf16.mxu1 %vm3765_vm1, %v3763_v1 }
  0x64   : > { %855 = vperm.xlu1 %3682, %v812_v36  }
  0x65   : > { %870 = vperm.xlu0 %3681, %v815_v37  }
  0x67   : > { %3565 = vmatmul.mubr.msk.bf16.gmra.mxu0 %vm461_vm2, %v443_v38  ;;  %v1101_v38 = vsub.s32 0, %v1100_v21 }
  0x68   : > { %3609 = vmatmul.mubr.msk.bf16.gmra.mxu1 %vm461_vm2, %v454_v39  ;;  %3568 = vmatprep.mubr.msk.bf16.mxu0 %vm3765_vm1, %v3763_v1 }
  0x69   : > { %860 = vperm.xlu0 %3681, %v813_v40   ;;  %3235 = vperm.xlu1 %3682, %v390_v41   ;;  %v4212_v40 = vrot.slane %v385_v32, %v4203_v28 }
  0x6f   : > { %3569 = vmatmul.mubr.msk.bf16.gmra.mxu0 %vm461_vm2, %v444_v44  ;;  %v4215_v44 = vrot.slane %v385_v32, %v4205_v31 }
  0x93   : > { %v4118_v45 = vpop.permute.xlu1 %940  ;;  %v4120_v46 = vpop.permute.xlu0 %930 }
  0x94   : > { %6099 = vst [vmem:[#allocation5_spill] sm:$0xff] %v4118_v45  ;;  %6100 = vst [vmem:[#allocation6_spill] sm:$0xff] %v4120_v46 }
  0x97   : > { %v4122_v47 = vpop.permute.xlu1 %1020  ;;  %v4124_v48 = vpop.permute.xlu0 %935 }
  0x98   : > { %6101 = vst [vmem:[#allocation7_spill] sm:$0xff] %v4124_v48 }
  0x9b   : > { %v4126_v49 = vpop.permute.xlu1 %1030 }
  0x9c   : > { %v4128_v50 = vpop.permute.xlu0 %1025 }
  0x9f   : > { %v4130_v1 = vpop.permute.xlu1 %950 }
  0xa0   : > { %6102 = vst [vmem:[#allocation8_spill] sm:$0xff] %v4130_v1  ;;  %v4132_v51 = vpop.permute.xlu0 %945 }
  0xa1   : > { %6103 = vst [vmem:[#allocation9_spill] sm:$0xff] %v4132_v51 }
  0xa3   : > { %v4134_v52 = vpop.permute.xlu1 %1040 }
  0xa4   : > { %6104 = vst [vmem:[#allocation10_spill] sm:$0xff] %v4134_v52  ;;  %v4136_v53 = vpop.permute.xlu0 %1035 }
  0xa5   : > { %6105 = vst [vmem:[#allocation11_spill] sm:$0xff] %v4136_v53 }
  0xa7   : > { %v4138_v54 = vpop.permute.xlu1 %1045 }
  0xa8   : > { %6106 = vst [vmem:[#allocation12_spill] sm:$0xff] %v4138_v54  ;;  %v4140_v55 = vpop.permute.xlu0 %955 }
  0xa9   : > { %6107 = vst [vmem:[#allocation13_spill] sm:$0xff] %v4140_v55 }
  0xab   : > { %v4142_v56 = vpop.permute.xlu1 %925 }
  0xac   : > { %6108 = vst [vmem:[#allocation14_spill] sm:$0xff] %v4142_v56  ;;  %v4144_v57 = vpop.permute.xlu0 %920 }
  0xaf   : > { %v4146_v58 = vpop.permute.xlu1 %1015 }
  0xb0   : > { %v4148_v59 = vpop.permute.xlu0 %1010 }
  0xb3   : > { %v4150_v60 = vpop.permute.xlu1 %965 }
  0xb4   : > { %v4152_v61 = vpop.permute.xlu0 %960 }
  0xb5   : > { %6109 = vst [vmem:[#allocation15_spill] sm:$0xff] %v4152_v61 }
  0xb7   : > { %v4154_v62 = vpop.permute.xlu1 %1055 }
  0xb8   : > { %6110 = vst [vmem:[#allocation16_spill] sm:$0xff] %v4154_v62  ;;  %v4156_v63 = vpop.permute.xlu0 %1050 }
  0xb9   : > { %6111 = vst [vmem:[#allocation17_spill] sm:$0xff] %v4156_v63 }
  0xbb   : > { %v4158_v0 = vpop.permute.xlu1 %915 }
  0xbc   : > { %v4160_v2 = vpop.permute.xlu0 %910 }
  0xbf   : > { %v4162_v3 = vpop.permute.xlu1 %1005 }
  0xc0   : > { %v4164_v4 = vpop.permute.xlu0 %1000 }
  0xc3   : > { %v4166_v5 = vpop.permute.xlu1 %905 }
  0xc4   : > { %v4168_v6 = vpop.permute.xlu0 %900 }
  0xc7   : > { %v4170_v7 = vpop.permute.xlu1 %995 }
  0xc8   : > { %v4172_v8 = vpop.permute.xlu0 %990 }
  0xcb   : > { %v4174_v9 = vpop.permute.xlu1 %890 }
  0xcc   : > { %v4176_v10 = vpop.permute.xlu0 %885 }
  0xcf   : > { %v4178_v11 = vpop.permute.xlu1 %975 }
  0xd0   : > { %v4180_v12 = vpop.permute.xlu0 %895 }
  0xd3   : > { %v4182_v13 = vpop.permute.xlu1 %985 }
  0xd4   : > { %v4184_v14 = vpop.permute.xlu0 %980 }
  0xd7   : > { %v4186_v15 = vpop.permute.xlu1 %880 }
  0xd8   : > { %v4188_v16 = vpop.permute.xlu0 %875 }
  0xdb   : > { %v4197_v20 = vpop.permute.xlu1 %865 }
  0xdc   : > { %v4190_v18 = vpop.permute.xlu0 %970 }
  0xdf   : > { %v563_v22 = vpop.f32.mrf.mxu0  ;;  %v856_v34 = vpop.permute.xlu1 %855 }
  0xe0   : > { %v564_v23 = vadd.f32 %v4195_v19, %v563_v22  ;;  %v651_v24 = vpop.f32.mrf.mxu1  ;;  %v4201_v27 = vpop.permute.xlu0 %870 }
  0xe1   : > { %v652_v25 = vadd.f32 %v4195_v19, %v651_v24  ;;  %v3530_v26 = vpop.f32.mrf.mxu0 }
  0xe2   : > { %v729_v29 = vmax.f32 %v564_v23, 0.0  ;;  %v3574_v30 = vpop.f32.mrf.mxu1  ;;  %v386_v23 = vld [vmem:[%s6014_s4 + $0x4] sm:$0x7] }
  0xe3   : > { %v566_v33 = vpop.f32.mrf.mxu0  ;;  %v751_v39 = vmax.f32 %v652_v25, 0.0  ;;  %v4221_v25 = vrot.slane %v385_v32, %v1101_v38  ;;  %v387_v30 = vld [vmem:[%s6014_s4 + $0x8] sm:$0x7] }
  0xe4   : > { %v770_v35 = vmin.f32 %v729_v29, 6.0  ;;  %v567_v36 = vadd.f32 %v4195_v19, %v566_v33  ;;  %v654_v37 = vpop.f32.mrf.mxu1  ;;  %v861_v26 = vpop.permute.xlu0 %860  ;;  %v4232_v62 = vrot.slane %v387_v30, %v1101_v38  ;;  %v4238_v51 = vrot.slane %v387_v30, %v4203_v28 }
  0xe5   : > { %v3531_v41 = vpop.f32.mrf.mxu0  ;;  %v655_v22 = vadd.f32 %v4195_v19, %v654_v37  ;;  %v792_v33 = vmin.f32 %v751_v39, 6.0 }
  0xe6   : > { %v730_v42 = vmax.f32 %v567_v36, 0.0  ;;  %v1058_v43 = vmul.f32 %v856_v34, %v770_v35  ;;  %v3575_v17 = vpop.f32.mrf.mxu1 }
  0xe7   : > { %v571_v24 = vpop.f32.mrf.mxu0  ;;  %v4230_v17 = vrot.slane %v386_v23, %v1101_v38  ;;  %v752_v61 = vmax.f32 %v655_v22, 0.0  ;;  %v4241_v63 = vmul.f32 %v4150_v60, %v792_v33 }
  0xe8   : > { %v771_v21 = vmin.f32 %v730_v42, 6.0  ;;  %v659_v29 = vpop.f32.mrf.mxu1  ;;  %v1109_v34 = vmul.f32 %v4212_v40, %v1058_v43  ;;  %v572_v35 = vadd.f32 %v4195_v19, %v571_v24  ;;  %v1129_v41 = vmul.f32 %v4215_v44, %v1058_v43 }
  0xe9   : > { %v660_v36 = vadd.f32 %v4195_v19, %v659_v29  ;;  %v3534_v37 = vpop.f32.mrf.mxu0  ;;  %6112 = vst [vmem:[#allocation18_spill] sm:$0xff] %v4241_v63  ;;  %v793_v52 = vmin.f32 %v752_v61, 6.0  ;;  %v1103_v46 = vmul.f32 %v4221_v25, %v1058_v43  ;;  %v4247_v56 = vmul.f32 %v4232_v62, %v4241_v63 }
  0xea   : > { %v1059_v32 = vmul.f32 %v861_v26, %v771_v21  ;;  %v3578_v42 = vpop.f32.mrf.mxu1  ;;  %v731_v55 = vmax.f32 %v572_v35, 0.0  ;;  %v1116_v26 = vrot.slane %v1109_v34, 1 }
  0xeb   : > { %v574_v1 = vpop.f32.mrf.mxu0  ;;  %v753_v21 = vmax.f32 %v660_v36, 0.0  ;;  %v1136_v42 = vrot.slane %v1129_v41, 2  ;;  %6113 = vst [vmem:[#allocation19_spill] sm:$0xff] %v4247_v56  ;;  %v4253_v36 = vmul.f32 %v4238_v51, %v4241_v63  ;;  %v4260_v41 = vrot.slane %v387_v30, %v4205_v31 }
  0xec   : > { %v1110_v39 = vmul.f32 %v4212_v40, %v1059_v32  ;;  %v1130_v24 = vmul.f32 %v4215_v44, %v1059_v32  ;;  %v575_v29 = vadd.f32 %v4195_v19, %v574_v1  ;;  %v662_v37 = vpop.f32.mrf.mxu1  ;;  %v772_v22 = vmin.f32 %v731_v55, 6.0 }
  0xed   : > { %v3535_v35 = vpop.f32.mrf.mxu0  ;;  %6114 = vst [vmem:[#allocation20_spill] sm:$0xff] %v4253_v36  ;;  %v794_v61 = vmin.f32 %v753_v21, 6.0 }
  0xee   : > { %v1117_v38 = vrot.slane %v1110_v39, 1  ;;  %v1137_v45 = vrot.slane %v1130_v24, 2  ;;  %v732_v54 = vmax.f32 %v575_v29, 0.0  ;;  %v3579_v48 = vpop.f32.mrf.mxu1  ;;  %v1060_v1 = vmul.f32 %v4197_v20, %v772_v22 }
  0xef   : > { %v579_v53 = vpop.f32.mrf.mxu0  ;;  %v4256_v48 = vrot.slane %v386_v23, %v4203_v28  ;;  %v663_v20 = vadd.f32 %v4195_v19, %v662_v37  ;;  %v4268_v22 = vmul.f32 %v4190_v18, %v793_v52  ;;  %v4271_v28 = vrot.slane %v386_v23, %v4205_v31 }
  0xf0   : > { %v1118_v60 = vsel %vm1115_vm3, %v1116_v26, %v1117_v38  ;;  %v1138_v55 = vsel %vm1135_vm4, %v1136_v42, %v1137_v45  ;;  %v773_v33 = vmin.f32 %v732_v54, 6.0  ;;  %v667_v34 = vpop.f32.mrf.mxu1  ;;  %v1111_v39 = vmul.f32 %v4212_v40, %v1060_v1 }
  0xf1   : > { %v3538_v43 = vpop.f32.mrf.mxu0  ;;  %v1123_v24 = vadd.f32 %v1118_v60, %v1103_v46  ;;  %v1131_v54 = vmul.f32 %v4215_v44, %v1060_v1  ;;  %6115 = vst [vmem:[#allocation21_spill] sm:$0xff] %v4268_v22  ;;  %v1104_v37 = vmul.f32 %v4221_v25, %v1059_v32  ;;  %v754_v18 = vmax.f32 %v663_v20, 0.0 }
  0xf2   : > { %v4265_v29 = vmul.f32 %v4201_v27, %v773_v33  ;;  %v3582_v26 = vpop.f32.mrf.mxu1  ;;  %v1119_v35 = vrot.slane %v1111_v39, 1  ;;  %v4279_v33 = vmul.f32 %v4178_v11, %v794_v61  ;;  %v4287_v23 = vmul.f32 %v4260_v41, %v4241_v63 }
  0xf3   : > { %v582_v21 = vpop.f32.mrf.mxu0  ;;  %v1139_v42 = vrot.slane %v1131_v54, 2  ;;  %v4275_v46 = vadd.f32 %v1138_v55, %v1123_v24  ;;  %v580_v11 = vadd.f32 %v4195_v19, %v579_v53  ;;  %v4297_v39 = vmul.f32 %v4230_v17, %v1060_v1 }
  0xf4   : > { %v670_v60 = vpop.f32.mrf.mxu1  ;;  %6117 = vst [vmem:[#allocation23_spill] sm:$0xff] %v4279_v33  ;;  %v4283_v52 = vmul.f32 %v4212_v40, %v4265_v29  ;;  %6119 = vst [vmem:[#allocation25_spill] sm:$0xff] %v4287_v23  ;;  %v1120_v32 = vsel %vm1115_vm3, %v1117_v38, %v1119_v35  ;;  %v4293_v43 = vmul.f32 %v4215_v44, %v4265_v29 }
  0xf5   : > { %6116 = vst [vmem:[#allocation22_spill] sm:$0xff] %v4275_v46  ;;  %v3539_v31 = vpop.f32.mrf.mxu0  ;;  %v1140_v55 = vsel %vm1135_vm4, %v1137_v45, %v1139_v42  ;;  %6121 = vst [vmem:[#allocation27_spill] sm:$0xff] %v4297_v39  ;;  %v4300_v20 = vmul.f32 %v4256_v48, %v1060_v1  ;;  %v1124_v24 = vadd.f32 %v1120_v32, %v1104_v37 }
  0xf6   : > { %6118 = vst [vmem:[#allocation24_spill] sm:$0xff] %v4283_v52  ;;  %6120 = vst [vmem:[#allocation26_spill] sm:$0xff] %v4293_v43  ;;  %v3583_v61 = vpop.f32.mrf.mxu1  ;;  %v6021_v54 = vrot.slane %v4283_v52, 1  ;;  %v1262_v38 = vmul.f32 %v4221_v25, %v1060_v1  ;;  %v668_v31 = vadd.f32 %v4195_v19, %v667_v34  ;;  %v583_v27 = vadd.f32 %v4195_v19, %v582_v21 }
  0xf7   : > { %6122 = vst [vmem:[#allocation28_spill] sm:$0xff] %v4300_v20  ;;  %v587_v26 = vpop.f32.mrf.mxu0  ;;  %v4307_v61 = vadd.f32 %v1140_v55, %v1124_v24  ;;  %v671_v37 = vadd.f32 %v4195_v19, %v670_v60  ;;  %v4315_v22 = vmul.f32 %v4271_v28, %v1060_v1  ;;  %v6126_v34 = vrot.slane %v4293_v43, 2 }
  0xf8   : > { %v675_v53 = vpop.f32.mrf.mxu1  ;;  %v1270_v30 = vsel %vm1115_vm3, %v1119_v35, %v6021_v54  ;;  %v588_v32 = vadd.f32 %v4195_v19, %v587_v26  ;;  %v733_v55 = vmax.f32 %v580_v11, 0.0  ;;  %v4326_v35 = vmul.f32 %v4230_v17, %v4265_v29 }
  0xf9   : > { %6123 = vst [vmem:[#allocation29_spill] sm:$0xff] %v4307_v61  ;;  %v3542_v46 = vpop.f32.mrf.mxu0  ;;  %6124 = vst [vmem:[#allocation30_spill] sm:$0xff] %v4315_v22  ;;  %v4317_v45 = vadd.f32 %v1270_v30, %v1262_v38  ;;  %v4322_v21 = vsel %vm1135_vm4, %v1139_v42, %v6126_v34  ;;  %v755_v60 = vmax.f32 %v668_v31, 0.0  ;;  %v734_v54 = vmax.f32 %v583_v27, 0.0 }
  0xfa   : > { %6127 = vst [vmem:[#allocation32_spill] sm:$0xff] %v4322_v21  ;;  %v3586_v24 = vpop.f32.mrf.mxu1  ;;  %6128 = vst [vmem:[#allocation33_spill] sm:$0xff] %v4326_v35  ;;  %v676_v46 = vadd.f32 %v4195_v19, %v675_v53  ;;  %v4332_v30 = vmul.f32 %v4256_v48, %v4265_v29  ;;  %v756_v38 = vmax.f32 %v671_v37, 0.0  ;;  %v735_v22 = vmax.f32 %v588_v32, 0.0 }
  0xfb   : > { %6125 = vst [vmem:[#allocation31_spill] sm:$0xff] %v4317_v45  ;;  %v590_v26 = vpop.f32.mrf.mxu0  ;;  %v795_v24 = vmin.f32 %v754_v18, 6.0  ;;  %v4338_v27 = vmul.f32 %v4271_v28, %v4265_v29  ;;  %v774_v53 = vmin.f32 %v733_v55, 6.0  ;;  %v796_v34 = vmin.f32 %v755_v60, 6.0 }
  0xfc   : > { %6129 = vst [vmem:[#allocation34_spill] sm:$0xff] %v4332_v30  ;;  %v591_v42 = vadd.f32 %v4195_v19, %v590_v26  ;;  %v678_v11 = vpop.f32.mrf.mxu1  ;;  %v757_v61 = vmax.f32 %v676_v46, 0.0  ;;  %v4344_v26 = vmul.f32 %v4221_v25, %v4265_v29  ;;  %v775_v18 = vmin.f32 %v734_v54, 6.0 }
  0xfd   : > { %v3543_v31 = vpop.f32.mrf.mxu0  ;;  %6130 = vst [vmem:[#allocation35_spill] sm:$0xff] %v4338_v27  ;;  %v679_v39 = vadd.f32 %v4195_v19, %v678_v11  ;;  %v4353_v29 = vmul.f32 %v4188_v16, %v774_v53 }
  0xfe   : > { %v736_v1 = vmax.f32 %v591_v42, 0.0  ;;  %v3587_v21 = vpop.f32.mrf.mxu1  ;;  %6131 = vst [vmem:[#allocation36_spill] sm:$0xff] %v4344_v26  ;;  %v797_v31 = vmin.f32 %v756_v38, 6.0  ;;  %v4349_v42 = vmul.f32 %v4184_v14, %v795_v24  ;;  %v798_v11 = vmin.f32 %v757_v61, 6.0 }
  0xff   : > { %v595_v32 = vpop.f32.mrf.mxu0  ;;  %v758_v20 = vmax.f32 %v679_v39, 0.0  ;;  %v776_v21 = vmin.f32 %v735_v22, 6.0  ;;  %6133 = vst [vmem:[#allocation38_spill] sm:$0xff] %v4353_v29  ;;  %v4356_v39 = vmul.f32 %v4182_v13, %v796_v34  ;;  %v4359_v38 = vmul.f32 %v4186_v15, %v775_v18 }
 0x100   : > { %v596_v27 = vadd.f32 %v4195_v19, %v595_v32  ;;  %v683_v55 = vpop.f32.mrf.mxu1  ;;  %6132 = vst [vmem:[#allocation37_spill] sm:$0xff] %v4349_v42  ;;  %v777_v54 = vmin.f32 %v736_v1, 6.0  ;;  %v4363_v61 = vmul.f32 %v4172_v8, %v797_v31  ;;  %v4373_v15 = vmul.f32 %v4170_v7, %v798_v11 }
 0x101   : > { %v684_v37 = vadd.f32 %v4195_v19, %v683_v55  ;;  %v3546_v35 = vpop.f32.mrf.mxu0  ;;  %v799_v60 = vmin.f32 %v758_v20, 6.0  ;;  %6134 = vst [vmem:[#allocation39_spill] sm:$0xff] %v4356_v39  ;;  %6135 = vst [vmem:[#allocation40_spill] sm:$0xff] %v4359_v38  ;;  %v4370_v13 = vmul.f32 %v4176_v10, %v776_v21 }
 0x102   : > { %v737_v45 = vmax.f32 %v596_v27, 0.0  ;;  %v3590_v46 = vpop.f32.mrf.mxu1  ;;  %6136 = vst [vmem:[#allocation41_spill] sm:$0xff] %v4363_v61  ;;  %6139 = vst [vmem:[#allocation44_spill] sm:$0xff] %v4373_v15  ;;  %v4377_v8 = vmul.f32 %v4174_v9, %v777_v54 }
 0x103   : > { %v759_v14 = vmax.f32 %v684_v37, 0.0  ;;  %v598_v24 = vpop.f32.mrf.mxu0  ;;  %v4366_v16 = vmul.f32 %v4164_v4, %v799_v60  ;;  %6138 = vst [vmem:[#allocation43_spill] sm:$0xff] %v4370_v13 }
 0x104   : > { %v778_v35 = vmin.f32 %v737_v45, 6.0  ;;  %v599_v20 = vadd.f32 %v4195_v19, %v598_v24  ;;  %v686_v1 = vpop.f32.mrf.mxu1  ;;  %6140 = vst [vmem:[#allocation45_spill] sm:$0xff] %v4377_v8 }
 0x105   : > { %6137 = vst [vmem:[#allocation42_spill] sm:$0xff] %v4366_v16  ;;  %v800_v34 = vmin.f32 %v759_v14, 6.0  ;;  %v687_v27 = vadd.f32 %v4195_v19, %v686_v1  ;;  %v3547_v53 = vpop.f32.mrf.mxu0  ;;  %v4381_v45 = vmul.f32 %v4212_v40, %v4366_v16  ;;  %v4385_v10 = vmul.f32 %v4215_v44, %v4366_v16 }
 0x106   : > { %v738_v37 = vmax.f32 %v599_v20, 0.0  ;;  %v3591_v4 = vpop.f32.mrf.mxu1  ;;  %v4388_v7 = vmul.f32 %v4180_v12, %v778_v35  ;;  %v4395_v9 = vmul.f32 %v4256_v48, %v4366_v16  ;;  %v4401_v54 = vmul.f32 %v4221_v25, %v4366_v16 }
 0x107   : > { %6141 = vst [vmem:[#allocation46_spill] sm:$0xff] %v4381_v45  ;;  %6142 = vst [vmem:[#allocation47_spill] sm:$0xff] %v4385_v10  ;;  %v4391_v18 = vmul.f32 %v4162_v3, %v800_v34  ;;  %v760_v32 = vmax.f32 %v687_v27, 0.0  ;;  %v603_v46 = vpop.f32.mrf.mxu0 }
 0x108   : > { %6143 = vst [vmem:[#allocation48_spill] sm:$0xff] %v4388_v7  ;;  %6145 = vst [vmem:[#allocation50_spill] sm:$0xff] %v4395_v9  ;;  %v779_v31 = vmin.f32 %v738_v37, 6.0  ;;  %v604_v55 = vadd.f32 %v4195_v19, %v603_v46  ;;  %v691_v21 = vpop.f32.mrf.mxu1 }
 0x109   : > { %6144 = vst [vmem:[#allocation49_spill] sm:$0xff] %v4391_v18  ;;  %6146 = vst [vmem:[#allocation51_spill] sm:$0xff] %v4401_v54  ;;  %v801_v12 = vmin.f32 %v760_v32, 6.0  ;;  %v692_v3 = vadd.f32 %v4195_v19, %v691_v21  ;;  %v3550_v60 = vpop.f32.mrf.mxu0  ;;  %v4407_v24 = vmul.f32 %v4212_v40, %v4391_v18  ;;  %v4414_v34 = vmul.f32 %v4221_v25, %v4391_v18 }
 0x10a   : > { %v4410_v35 = vmul.f32 %v4168_v6, %v779_v31  ;;  %v739_v20 = vmax.f32 %v604_v55, 0.0  ;;  %v3594_v1 = vpop.f32.mrf.mxu1  ;;  %v4418_v27 = vmul.f32 %v4215_v44, %v4391_v18  ;;  %v4429_v60 = vmul.f32 %v4271_v28, %v4366_v16 }
 0x10b   : > { %6147 = vst [vmem:[#allocation52_spill] sm:$0xff] %v4407_v24  ;;  %6149 = vst [vmem:[#allocation54_spill] sm:$0xff] %v4414_v34  ;;  %v4421_v53 = vmul.f32 %v4148_v59, %v801_v12  ;;  %v761_v37 = vmax.f32 %v692_v3, 0.0  ;;  %v606_v4 = vpop.f32.mrf.mxu0  ;;  %v6161_v29 = vrot.slane %v4407_v24, 1 }
 0x10c   : > { %6148 = vst [vmem:[#allocation53_spill] sm:$0xff] %v4410_v35  ;;  %6150 = vst [vmem:[#allocation55_spill] sm:$0xff] %v4418_v27  ;;  %v780_v46 = vmin.f32 %v739_v20, 6.0  ;;  %v607_v31 = vadd.f32 %v4195_v19, %v606_v4  ;;  %v694_v55 = vpop.f32.mrf.mxu1 }
 0x10d   : > { %6151 = vst [vmem:[#allocation56_spill] sm:$0xff] %v4421_v53  ;;  %6152 = vst [vmem:[#allocation57_spill] sm:$0xff] %v4429_v60  ;;  %v802_v1 = vmin.f32 %v761_v37, 6.0  ;;  %v695_v59 = vadd.f32 %v4195_v19, %v694_v55  ;;  %v3551_v12 = vpop.f32.mrf.mxu0  ;;  %v4434_v3 = vmul.f32 %v4221_v25, %v4421_v53  ;;  %v2646_v20 = vmul.f32 %v4212_v40, %v4421_v53 }
 0x10e   : > { %v4439_v4 = vmul.f32 %v4166_v5, %v780_v46  ;;  %v740_v6 = vmax.f32 %v607_v31, 0.0  ;;  %v3595_v14 = vpop.f32.mrf.mxu1  ;;  %v2660_v21 = vmul.f32 %v4215_v44, %v4421_v53  ;;  %v4445_v37 = vmul.f32 %v4230_v17, %v4421_v53 }
 0x10f   : > { %6153 = vst [vmem:[#allocation58_spill] sm:$0xff] %v4434_v3  ;;  %v4448_v55 = vmul.f32 %v4146_v58, %v802_v1  ;;  %v762_v12 = vmax.f32 %v695_v59, 0.0  ;;  %v611_v22 = vpop.f32.mrf.mxu0  ;;  %v4450_v11 = vrot.slane %v2646_v20, 1  ;;  %v4454_v5 = vmul.f32 %v4256_v48, %v4421_v53 }
 0x110   : > { %6154 = vst [vmem:[#allocation59_spill] sm:$0xff] %v4439_v4  ;;  %6155 = vst [vmem:[#allocation60_spill] sm:$0xff] %v4445_v37  ;;  %v781_v46 = vmin.f32 %v740_v6, 6.0  ;;  %v612_v14 = vadd.f32 %v4195_v19, %v611_v22  ;;  %v699_v31 = vpop.f32.mrf.mxu1  ;;  %v4457_v32 = vrot.slane %v2660_v21, 2  ;;  %v4478_v38 = vmul.f32 %v4271_v28, %v4421_v53 }
 0x111   : > { %6156 = vst [vmem:[#allocation61_spill] sm:$0xff] %v4448_v55  ;;  %6157 = vst [vmem:[#allocation62_spill] sm:$0xff] %v4450_v11  ;;  %v803_v43 = vmin.f32 %v762_v12, 6.0  ;;  %v700_v58 = vadd.f32 %v4195_v19, %v699_v31  ;;  %v3554_v1 = vpop.f32.mrf.mxu0  ;;  %v2756_v59 = vmul.f32 %v4221_v25, %v4448_v55  ;;  %v2758_v20 = vmul.f32 %v4212_v40, %v4448_v55 }
 0x112   : > { %6158 = vst [vmem:[#allocation63_spill] sm:$0xff] %v4454_v5  ;;  %v4466_v26 = vmul.f32 %v4160_v2, %v781_v46  ;;  %v741_v6 = vmax.f32 %v612_v14, 0.0  ;;  %v3598_v22 = vpop.f32.mrf.mxu1  ;;  %v4470_v21 = vmul.f32 %v4215_v44, %v4448_v55  ;;  %6160 = vst [vmem:[#allocation65_spill] sm:$0xff] %v4478_v38  ;;  %v6162_v12 = vrot.slane %v4381_v45, 1  ;;  %v6172_v55 = vld [vmem:[#allocation10_spill] sm:$0xff] }
 0x113   : > { %v4474_v31 = vmul.f32 %v4122_v47, %v803_v43  ;;  %v763_v1 = vmax.f32 %v700_v58, 0.0  ;;  %v614_v30 = vpop.f32.mrf.mxu0  ;;  %v2762_v52 = vrot.slane %v2758_v20, 1 }
 0x114   : > { %6159 = vst [vmem:[#allocation64_spill] sm:$0xff] %v4466_v26  ;;  %v782_v2 = vmin.f32 %v741_v6, 6.0  ;;  %v615_v46 = vadd.f32 %v4195_v19, %v614_v30  ;;  %v702_v14 = vpop.f32.mrf.mxu1  ;;  %v4487_v47 = vsel %vm1115_vm3, %v6162_v12, %v6161_v29 }
 0x115   : > { %6163 = vst [vmem:[#allocation66_spill] sm:$0xff] %v4487_v47  ;;  %v804_v43 = vmin.f32 %v763_v1, 6.0  ;;  %v703_v58 = vadd.f32 %v4195_v19, %v702_v14  ;;  %v3555_v20 = vpop.f32.mrf.mxu0  ;;  %v4492_v63 = vmul.f32 %v4221_v25, %v4474_v31  ;;  %v2759_v30 = vmul.f32 %v4212_v40, %v4474_v31 }
 0x116   : > { %v4497_v6 = vmul.f32 %v4158_v0, %v782_v2  ;;  %v742_v22 = vmax.f32 %v615_v46, 0.0  ;;  %v3599_v7 = vpop.f32.mrf.mxu1  ;;  %v2674_v29 = vmul.f32 %v4230_v17, %v4474_v31  ;;  %v2688_v12 = vmul.f32 %v4256_v48, %v4474_v31 }
 0x117   : > { %v4504_v1 = vmul.f32 %v4128_v50, %v804_v43  ;;  %v764_v14 = vmax.f32 %v703_v58, 0.0  ;;  %v619_v20 = vpop.f32.mrf.mxu0  ;;  %v4506_v8 = vrot.slane %v2759_v30, 1  ;;  %v2763_v13 = vsel %vm1115_vm3, %v4450_v11, %v2762_v52 }
 0x118   : > { %6164 = vst [vmem:[#allocation67_spill] sm:$0xff] %v4497_v6  ;;  %v783_v0 = vmin.f32 %v742_v22, 6.0  ;;  %v620_v2 = vadd.f32 %v4195_v19, %v619_v20  ;;  %v707_v7 = vpop.f32.mrf.mxu1  ;;  %v4511_v46 = vrot.slane %v2674_v29, 2  ;;  %v4513_v39 = vrot.slane %v2688_v12, 3 }
 0x119   : > { %v805_v42 = vmin.f32 %v764_v14, 6.0  ;;  %v708_v33 = vadd.f32 %v4195_v19, %v707_v7  ;;  %v2876_v50 = vmul.f32 %v4212_v40, %v4504_v1  ;;  %v2890_v43 = vmul.f32 %v4215_v44, %v4504_v1  ;;  %v3558_v58 = vpop.f32.mrf.mxu0 }
 0x11a   : > { %v4521_v30 = vmul.f32 %v4144_v57, %v783_v0  ;;  %v743_v22 = vmax.f32 %v620_v2, 0.0  ;;  %v3602_v20 = vpop.f32.mrf.mxu1  ;;  %v4525_v29 = vmul.f32 %v4221_v25, %v4504_v1  ;;  %v2765_v12 = vsel %vm1115_vm3, %v2762_v52, %v4506_v8 }
 0x11b   : > { %v4530_v14 = vmul.f32 %v4126_v49, %v805_v42  ;;  %v765_v7 = vmax.f32 %v708_v33, 0.0  ;;  %v2880_v4 = vrot.slane %v2876_v50, 1  ;;  %v2894_v35 = vrot.slane %v2890_v43, 2  ;;  %v622_v9 = vpop.f32.mrf.mxu0  ;;  %v6166_v50 = vld [vmem:[#allocation14_spill] sm:$0xff] }
 0x11c   : > { %6165 = vst [vmem:[#allocation68_spill] sm:$0xff] %v4521_v30  ;;  %v784_v58 = vmin.f32 %v743_v22, 6.0  ;;  %v623_v57 = vadd.f32 %v4195_v19, %v622_v9  ;;  %v710_v0 = vpop.f32.mrf.mxu1  ;;  %v4534_v2 = vadd.f32 %v2763_v13, %v4434_v3  ;;  %v4536_v20 = vadd.f32 %v2765_v12, %v2756_v59  ;;  %v6168_v12 = vld [vmem:[#allocation11_spill] sm:$0xff] }
 0x11d   : > { %v806_v45 = vmin.f32 %v765_v7, 6.0  ;;  %v2881_v52 = vsel %vm1115_vm3, %v4506_v8, %v2880_v4  ;;  %v711_v49 = vadd.f32 %v4195_v19, %v710_v0  ;;  %v3559_v42 = vpop.f32.mrf.mxu0  ;;  %v4543_v33 = vmul.f32 %v4212_v40, %v4530_v14 }
 0x11e   : > { %v4546_v43 = vmul.f32 %v6166_v50, %v784_v58  ;;  %v2887_v9 = vadd.f32 %v2881_v52, %v4492_v63  ;;  %v744_v13 = vmax.f32 %v623_v57, 0.0  ;;  %v3603_v22 = vpop.f32.mrf.mxu1  ;;  %v4551_v59 = vmul.f32 %v4215_v44, %v4530_v14 }
 0x11f   : > { %v4554_v7 = vmul.f32 %v6168_v12, %v806_v45  ;;  %v766_v0 = vmax.f32 %v711_v49, 0.0  ;;  %v627_v42 = vpop.f32.mrf.mxu0  ;;  %v4559_v16 = vmul.f32 %v4221_v25, %v4530_v14  ;;  %v6171_v12 = vld [vmem:[#allocation6_spill] sm:$0xff] }
 0x120   : > { %6167 = vst [vmem:[#allocation14_spill] sm:$0xff] %v4546_v43  ;;  %v2900_v58 = vadd.f32 %v2894_v35, %v2887_v9  ;;  %v785_v50 = vmin.f32 %v744_v13, 6.0  ;;  %v628_v57 = vadd.f32 %v4195_v19, %v627_v42  ;;  %v715_v52 = vpop.f32.mrf.mxu1 }
 0x121   : > { %6169 = vst [vmem:[#allocation11_spill] sm:$0xff] %v4554_v7  ;;  %v4565_v15 = vmul.f32 %v4232_v62, %v4554_v7  ;;  %v2903_v45 = vmul.f32 %v4230_v17, %v4554_v7  ;;  %v4571_v49 = vmul.f32 %v4256_v48, %v4554_v7  ;;  %v4575_v9 = vmul.f32 %v4271_v28, %v4554_v7  ;;  %v3562_v13 = vpop.f32.mrf.mxu0  ;;  %v6181_v7 = vld [vmem:[#allocation17_spill] sm:$0xff] }
 0x122   : > { %v4578_v42 = vmul.f32 %v6171_v12, %v785_v50  ;;  %v807_v22 = vmin.f32 %v766_v0, 6.0  ;;  %v745_v18 = vmax.f32 %v628_v57, 0.0  ;;  %v716_v61 = vadd.f32 %v4195_v19, %v715_v52  ;;  %v3606_v53 = vpop.f32.mrf.mxu1 }
 0x123   : > { %6170 = vst [vmem:[#allocation69_spill] sm:$0xff] %v4565_v15  ;;  %v2907_v6 = vrot.slane %v2903_v45, 2  ;;  %v2922_v26 = vrot.slane %v4571_v49, 3  ;;  %v2939_v5 = vrot.slane %v4575_v9, 4  ;;  %v630_v37 = vpop.f32.mrf.mxu0  ;;  %v6173_v53 = vrot.slane %v4543_v33, 1 }
 0x124   : > { %v1095_v10 = vmul.f32 %v6172_v55, %v807_v22  ;;  %v786_v27 = vmin.f32 %v745_v18, 6.0  ;;  %v767_v13 = vmax.f32 %v716_v61, 0.0  ;;  %v631_v50 = vadd.f32 %v4195_v19, %v630_v37  ;;  %v718_v12 = vpop.f32.mrf.mxu1 }
 0x125   : > { %v2913_v0 = vadd.f32 %v2907_v6, %v2900_v58  ;;  %v719_v57 = vadd.f32 %v4195_v19, %v718_v12  ;;  %v2883_v52 = vsel %vm1115_vm3, %v2880_v4, %v6173_v53  ;;  %v6174_v45 = vrot.slane %v4551_v59, 2  ;;  %v3563_v9 = vpop.f32.mrf.mxu0 }
 0x126   : > { %v4594_v60 = vmul.f32 %v4232_v62, %v1095_v10  ;;  %v4597_v61 = vmul.f32 %v4238_v51, %v1095_v10  ;;  %v4600_v18 = vmul.f32 %v4260_v41, %v1095_v10  ;;  %v4603_v37 = vmul.f32 %v4230_v17, %v1095_v10  ;;  %v3607_v55 = vpop.f32.mrf.mxu1 }
 0x127   : > { %v2896_v49 = vsel %vm1135_vm4, %v2894_v35, %v6174_v45  ;;  %v2917_v4 = vmul.f32 %v4256_v48, %v1095_v10  ;;  %v4607_v58 = vmul.f32 %v4271_v28, %v1095_v10  ;;  %v6178_v35 = vld [vmem:[#allocation7_spill] sm:$0xff]  ;;  %v808_v12 = vmin.f32 %v767_v13, 6.0  ;;  %v635_v53 = vpop.f32.mrf.mxu0  ;;  %v6179_v55 = vld [vmem:[#allocation12_spill] sm:$0xff] }
 0x128   : > { %6175 = vst [vmem:[#allocation6_spill] sm:$0xff] %v4594_v60  ;;  %6176 = vst [vmem:[#allocation10_spill] sm:$0xff] %v4597_v61  ;;  %v4610_v22 = vmul.f32 %v6178_v35, %v786_v27  ;;  %v6072_v3 = vrot.slane %v4603_v37, 2  ;;  %v2930_v34 = vadd.f32 %v2922_v26, %v2913_v0  ;;  %v723_v47 = vpop.f32.mrf.mxu1  ;;  %v746_v11 = vmax.f32 %v631_v50, 0.0 }
 0x129   : > { %6177 = vst [vmem:[#allocation70_spill] sm:$0xff] %v4600_v18  ;;  %v2923_v54 = vrot.slane %v2917_v4, 3  ;;  %v1096_v24 = vmul.f32 %v6179_v55, %v808_v12  ;;  %v768_v38 = vmax.f32 %v719_v57, 0.0  ;;  %v3566_v10 = vpop.f32.mrf.mxu0  ;;  %v2888_v27 = vadd.f32 %v2883_v52, %v4525_v29  ;;  %v6180_v18 = vld [vmem:[#allocation5_spill] sm:$0xff] }
 0x12a   : > { %v2947_v43 = vadd.f32 %v2939_v5, %v2930_v34  ;;  %v2909_v13 = vsel %vm1135_vm4, %v2907_v6, %v6072_v3  ;;  %v2940_v35 = vrot.slane %v4607_v58, 4  ;;  %v3610_v9 = vpop.f32.mrf.mxu1  ;;  %v787_v29 = vmin.f32 %v746_v11, 6.0 }
 0x12b   : > { %v2842_v45 = vmul.f32 %v4238_v51, %v1096_v24  ;;  %v2859_v0 = vmul.f32 %v4260_v41, %v1096_v24  ;;  %v2918_v4 = vmul.f32 %v4256_v48, %v1096_v24  ;;  %v2935_v50 = vmul.f32 %v4271_v28, %v1096_v24  ;;  %v638_v57 = vpop.f32.mrf.mxu0 }
 0x12c   : > { %v2950_v34 = vmul.f32 %v4232_v62, %v1096_v24  ;;  %v809_v52 = vmin.f32 %v768_v38, 6.0  ;;  %v2901_v12 = vadd.f32 %v2896_v49, %v2888_v27  ;;  %v726_v6 = vpop.f32.mrf.mxu1  ;;  %v4631_v61 = vmul.f32 %v6180_v18, %v787_v29 }
 0x12d   : > { %v4626_v55 = vrot.slane %v2842_v45, 5  ;;  %v4628_v58 = vrot.slane %v2859_v0, 6  ;;  %v2925_v9 = vrot.slane %v2918_v4, 3  ;;  %v2942_v10 = vrot.slane %v2935_v50, 4  ;;  %v3567_v3 = vpop.f32.mrf.mxu0 }
 0x12e   : > { %v2956_v30 = vrot.slane %v2950_v34, 4  ;;  %v1097_v15 = vmul.f32 %v6181_v7, %v809_v52  ;;  %v2914_v60 = vadd.f32 %v2909_v13, %v2901_v12  ;;  %v3611_v24 = vpop.f32.mrf.mxu1  ;;  %v2924_v38 = vsel %vm1174_vm5, %v2922_v26, %v2923_v54 }
 0x12f   : > { %v2941_v11 = vsel %vm525_vm0, %v2939_v5, %v2940_v35  ;;  %v636_v49 = vadd.f32 %v4195_v19, %v635_v53  ;;  %v724_v45 = vadd.f32 %v4195_v19, %v723_v47  ;;  %v643_v27 = vpop.f32.mrf.mxu0  ;;  %v6182_v26 = vrot.slane %v4543_v33, 1 }
 0x130   : > { %v2964_v0 = vadd.f32 %v2956_v30, %v2947_v43  ;;  %v2931_v4 = vadd.f32 %v2924_v38, %v2914_v60  ;;  %v2951_v3 = vmul.f32 %v4232_v62, %v1097_v15  ;;  %v2967_v18 = vmul.f32 %v4238_v51, %v1097_v15 }
 0x131   : > { %v2981_v50 = vmul.f32 %v4260_v41, %v1097_v15  ;;  %v747_v7 = vmax.f32 %v636_v49, 0.0  ;;  %v769_v13 = vmax.f32 %v724_v45, 0.0  ;;  %v2889_v34 = vadd.f32 %v6182_v26, %v4559_v16  ;;  %v3570_v5 = vpop.f32.mrf.mxu0 }
 0x132   : > { %v2948_v29 = vadd.f32 %v2941_v11, %v2931_v4  ;;  %v2957_v53 = vrot.slane %v2951_v3, 4  ;;  %v2971_v52 = vrot.slane %v2967_v18, 5  ;;  %v2926_v47 = vsel %vm1174_vm5, %v2923_v54, %v2925_v9  ;;  %v6184_v9 = vld [vmem:[#allocation9_spill] sm:$0xff]  ;;  %v6186_v4 = vld [vmem:[#allocation16_spill] sm:$0xff] }
 0x133   : > { %v2985_v43 = vrot.slane %v2981_v50, 6  ;;  %v788_v60 = vmin.f32 %v747_v7, 6.0  ;;  %v810_v12 = vmin.f32 %v769_v13, 6.0  ;;  %v6183_v6 = vrot.slane %v4551_v59, 2  ;;  %v646_v38 = vpop.f32.mrf.mxu0 }
 0x134   : > { %v2958_v15 = vsel %vm525_vm0, %v2956_v30, %v2957_v53  ;;  %v2972_v49 = vsel %vm1232_vm6, %v4626_v55, %v2971_v52  ;;  %v2943_v16 = vsel %vm525_vm0, %v2940_v35, %v2942_v10  ;;  %v639_v33 = vadd.f32 %v4195_v19, %v638_v57 }
 0x135   : > { %v2902_v24 = vadd.f32 %v6183_v6, %v2889_v34  ;;  %v2965_v11 = vadd.f32 %v2958_v15, %v2948_v29  ;;  %v2986_v54 = vsel %vm1252_vm7, %v4628_v58, %v2985_v43  ;;  %v4655_v45 = vmul.f32 %v6184_v9, %v788_v60  ;;  %v3571_v3 = vpop.f32.mrf.mxu0 }
 0x136   : > { %v1098_v59 = vmul.f32 %v6186_v4, %v810_v12  ;;  %v6187_v18 = vrot.slane %v4603_v37, 2  ;;  %v748_v50 = vmax.f32 %v639_v33, 0.0  ;;  %v644_v7 = vadd.f32 %v4195_v19, %v643_v27  ;;  %v6188_v33 = vld [vmem:[#allocation8_spill] sm:$0xff] }
 0x137   : > { %6185 = vst [vmem:[#allocation7_spill] sm:$0xff] %v4655_v45  ;;  %v647_v35 = vadd.f32 %v4195_v19, %v646_v38  ;;  %v2979_v10 = vadd.f32 %v2972_v49, %v2965_v11 }
 0x138   : > { %v2915_v30 = vadd.f32 %v6187_v18, %v2902_v24  ;;  %v2952_v57 = vmul.f32 %v4232_v62, %v1098_v59  ;;  %v2968_v13 = vmul.f32 %v4238_v51, %v1098_v59  ;;  %v2982_v26 = vmul.f32 %v4260_v41, %v1098_v59  ;;  %v6190_v59 = vld [vmem:[#allocation13_spill] sm:$0xff] }
 0x139   : > { %v789_v5 = vmin.f32 %v748_v50, 6.0  ;;  %v749_v29 = vmax.f32 %v644_v7, 0.0  ;;  %v750_v60 = vmax.f32 %v647_v35, 0.0  ;;  %v2993_v12 = vadd.f32 %v2986_v54, %v2979_v10  ;;  %v6191_v54 = vld [vmem:[#allocation15_spill] sm:$0xff] }
 0x13a   : > { %v2932_v34 = vadd.f32 %v2926_v47, %v2915_v30  ;;  %v2959_v6 = vrot.slane %v2952_v57, 4  ;;  %v2973_v37 = vrot.slane %v2968_v13, 5  ;;  %v2987_v24 = vrot.slane %v2982_v26, 6 }
 0x13b   : > { %v4666_v27 = vmul.f32 %v6188_v33, %v789_v5  ;;  %v790_v19 = vmin.f32 %v749_v29, 6.0  ;;  %v791_v38 = vmin.f32 %v750_v60, 6.0  ;;  %v3109_v49 = vrot.slane %v2993_v12, 6  ;;  %v4710_v33 = vld [vmem:[%s6015_s5] ss:$0 sm:$0xff] }
 0x13c   : > { %v2949_v15 = vadd.f32 %v2943_v16, %v2932_v34  ;;  %v2960_v11 = vsel %vm525_vm0, %v2957_v53, %v2959_v6  ;;  %v2974_v9 = vsel %vm1232_vm6, %v2971_v52, %v2973_v37  ;;  %v2988_v47 = vsel %vm1252_vm7, %v2985_v43, %v2987_v24 }
 0x13d   : > { %6189 = vst [vmem:[#allocation12_spill] sm:$0xff] %v4666_v27  ;;  %v4672_v3 = vmul.f32 %v6190_v59, %v790_v19  ;;  %v4675_v18 = vmul.f32 %v6191_v54, %v791_v38  ;;  %v2978_v16 = vadd.f32 %v2964_v0, %v4626_v55  ;;  %v4680_v30 = vmul.f32 %v4221_v25, %v4578_v42 }
 0x13e   : > { %v2966_v4 = vadd.f32 %v2960_v11, %v2949_v15  ;;  %v1839_v53 = vmul.f32 %v4212_v40, %v4578_v42  ;;  %v1954_v52 = vmul.f32 %v4221_v25, %v4610_v22  ;;  %v1955_v43 = vmul.f32 %v4221_v25, %v4631_v61 }
 0x13f   : > { %6192 = vst [vmem:[#allocation5_spill] sm:$0xff] %v4675_v18  ;;  %v2992_v7 = vadd.f32 %v2978_v16, %v4628_v58  ;;  %v1922_v35 = vmul.f32 %v4238_v51, %v4672_v3  ;;  %v1939_v0 = vmul.f32 %v4260_v41, %v4672_v3  ;;  %v1956_v57 = vmul.f32 %v4212_v40, %v4610_v22 }
 0x140   : > { %v2980_v50 = vadd.f32 %v2974_v9, %v2966_v4  ;;  %v4693_v10 = vrot.slane %v1839_v53, 1  ;;  %v1957_v13 = vmul.f32 %v4212_v40, %v4631_v61  ;;  %v1970_v26 = vmul.f32 %v4215_v44, %v4610_v22 }
 0x141   : > { %v3108_v5 = vrot.slane %v2992_v7, 6  ;;  %v4701_v29 = vrot.slane %v1922_v35, 5  ;;  %v4703_v60 = vrot.slane %v1939_v0, 6  ;;  %v1960_v12 = vrot.slane %v1956_v57, 1 }
 0x142   : > { %v2994_v34 = vadd.f32 %v2988_v47, %v2980_v50  ;;  %v1962_v6 = vrot.slane %v1957_v13, 1  ;;  %v1971_v37 = vmul.f32 %v4215_v44, %v4631_v61  ;;  %v1974_v24 = vrot.slane %v1970_v26, 2 }
 0x143   : > { %v3110_v19 = vsel %vm1252_vm7, %v3108_v5, %v3109_v49  ;;  %v1983_v38 = vmul.f32 %v4230_v17, %v4655_v45  ;;  %v1984_v11 = vmul.f32 %v4230_v17, %v4666_v27  ;;  %v1961_v47 = vsel %vm1115_vm3, %v4693_v10, %v1960_v12 }
 0x144   : > { %v3111_v15 = vrot.slane %v2994_v34, 6  ;;  %v3151_v9 = vadd.f32 %v4710_v33, %v3110_v19  ;;  %v1963_v4 = vsel %vm1115_vm3, %v1960_v12, %v1962_v6  ;;  %v1969_v59 = vadd.f32 %v1962_v6, %v1955_v43 }
 0x145   : > { %v1967_v16 = vadd.f32 %v1961_v47, %v4680_v30  ;;  %v1968_v53 = vadd.f32 %v1963_v4, %v1954_v52  ;;  %v1975_v50 = vrot.slane %v1971_v37, 2  ;;  %v1987_v0 = vrot.slane %v1983_v38, 2 }
 0x146   : > { %v3112_v54 = vsel %vm1252_vm7, %v3109_v49, %v3111_v15  ;;  %v3183_v35 = vmax.f32 %v3151_v9, 0.0  ;;  %v1988_v57 = vrot.slane %v1984_v11, 2  ;;  %v1996_v5 = vmul.f32 %v4256_v48, %v4655_v45 }
 0x147   : > { %v3152_v7 = vadd.f32 %v4710_v33, %v3112_v54  ;;  %v1976_v13 = vsel %vm1135_vm4, %v1974_v24, %v1975_v50  ;;  %v1980_v26 = vadd.f32 %v1974_v24, %v1967_v16  ;;  %v1982_v34 = vadd.f32 %v1975_v50, %v1969_v59 }
 0x148   : > { %v3215_v12 = vmin.f32 %v3183_v35, 6.0  ;;  %v1981_v49 = vadd.f32 %v1976_v13, %v1968_v53  ;;  %v1989_v6 = vsel %vm1135_vm4, %v1987_v0, %v1988_v57  ;;  %v1997_v37 = vmul.f32 %v4256_v48, %v4666_v27 }
 0x149   : > { %v3184_v43 = vmax.f32 %v3152_v7, 0.0  ;;  %v1993_v15 = vadd.f32 %v1987_v0, %v1980_v26  ;;  %v1995_v52 = vadd.f32 %v1988_v57, %v1982_v34  ;;  %v4732_v19 = vmul.f32 %v4256_v48, %v4672_v3 }
 0x14a   : > { %v1994_v24 = vadd.f32 %v1989_v6, %v1981_v49  ;;  %v2002_v11 = vrot.slane %v1996_v5, 3  ;;  %v2013_v9 = vmul.f32 %v4271_v28, %v4655_v45  ;;  %v2003_v47 = vrot.slane %v1997_v37, 3 }
 0x14b   : > { %6193 = vst [vmem:[#allocation17_spill] sm:$0xff] %v4732_v19  ;;  %v3216_v38 = vmin.f32 %v3184_v43, 6.0  ;;  %v6083_v4 = vrot.slane %v4732_v19, 3  ;;  %v2014_v59 = vmul.f32 %v4271_v28, %v4666_v27  ;;  %v4741_v54 = vmul.f32 %v4271_v28, %v4672_v3 }
 0x14c   : > { %v2010_v53 = vadd.f32 %v2002_v11, %v1993_v15  ;;  %v2019_v50 = vrot.slane %v2013_v9, 4  ;;  %v2030_v7 = vmul.f32 %v4232_v62, %v4672_v3  ;;  %v2004_v35 = vsel %vm1174_vm5, %v2002_v11, %v2003_v47 }
 0x14d   : > { %6194 = vst [vmem:[#allocation9_spill] sm:$0xff] %v4741_v54  ;;  %v3232_v16 = vpack.c.bf16 %v3216_v38, %v3215_v12  ;;  %v2006_v0 = vsel %vm1174_vm5, %v2003_v47, %v6083_v4  ;;  %v2020_v57 = vrot.slane %v2014_v59, 4  ;;  %v6082_v13 = vrot.slane %v4741_v54, 4 }
 0x14e   : > { %v2011_v26 = vadd.f32 %v2004_v35, %v1994_v24  ;;  %v2012_v34 = vadd.f32 %v2006_v0, %v1995_v52  ;;  %v2027_v5 = vadd.f32 %v2019_v50, %v2010_v53  ;;  %v2031_v43 = vmul.f32 %v4232_v62, %v4675_v18 }
 0x14f   : > { %3614 = vmatprep.subr.msk.bf16.mxu1 %vm3238_vm8, %v3232_v16  ;;  %v2021_v12 = vsel %vm525_vm0, %v2019_v50, %v2020_v57  ;;  %v2023_v49 = vsel %vm525_vm0, %v2020_v57, %v6082_v13  ;;  %v2036_v6 = vrot.slane %v2030_v7, 4  ;;  %v2047_v15 = vmul.f32 %v4238_v51, %v4675_v18 }
 0x150   : > { %v2028_v37 = vadd.f32 %v2021_v12, %v2011_v26  ;;  %v2029_v38 = vadd.f32 %v2023_v49, %v2012_v34  ;;  %v2037_v11 = vrot.slane %v2031_v43, 4  ;;  %v2061_v52 = vmul.f32 %v4260_v41, %v4675_v18 }
 0x151   : > { %v2044_v24 = vadd.f32 %v2036_v6, %v2027_v5  ;;  %v2051_v9 = vrot.slane %v2047_v15, 5  ;;  %v2771_v47 = vadd.f32 %v4506_v8, %v4492_v63  ;;  %v2773_v59 = vmul.f32 %v4215_v44, %v4474_v31 }
 0x152   : > { %v2038_v16 = vsel %vm525_vm0, %v2036_v6, %v2037_v11  ;;  %v6195_v53 = vrot.slane %v4247_v56, 4  ;;  %v2065_v7 = vrot.slane %v2061_v52, 6  ;;  %v6196_v35 = vrot.slane %v4470_v21, 2 }
 0x153   : > { %v2045_v57 = vadd.f32 %v2038_v16, %v2028_v37  ;;  %v2052_v63 = vsel %vm1232_vm6, %v4701_v29, %v2051_v9  ;;  %v6197_v8 = vrot.slane %v4253_v36, 5  ;;  %v2058_v5 = vadd.f32 %v2044_v24, %v4701_v29 }
 0x154   : > { %v2040_v50 = vsel %vm525_vm0, %v2037_v11, %v6195_v53  ;;  %v2777_v0 = vsel %vm1135_vm4, %v4457_v32, %v6196_v35  ;;  %v2066_v43 = vsel %vm1252_vm7, %v4703_v60, %v2065_v7  ;;  %v6198_v12 = vrot.slane %v4287_v23, 6 }
 0x155   : > { %v2046_v26 = vadd.f32 %v2040_v50, %v2029_v38  ;;  %v2054_v34 = vsel %vm1232_vm6, %v2051_v9, %v6197_v8  ;;  %v2778_v6 = vrot.slane %v2773_v59, 2  ;;  %v2059_v15 = vadd.f32 %v2052_v63, %v2045_v57 }
 0x156   : > { %v2068_v49 = vsel %vm1252_vm7, %v2065_v7, %v6198_v12  ;;  %v2783_v38 = vadd.f32 %v2777_v0, %v4534_v2  ;;  %v2786_v11 = vmul.f32 %v4230_v17, %v4504_v1  ;;  %v2072_v52 = vadd.f32 %v2058_v5, %v4703_v60 }
 0x157   : > { %v2060_v37 = vadd.f32 %v2054_v34, %v2046_v26  ;;  %v6199_v9 = vmov %v6196_v35  ;;  %v2785_v16 = vadd.f32 %v2778_v6, %v2771_v47  ;;  %v2787_v53 = vmul.f32 %v4230_v17, %v4530_v14 }
 0x158   : > { %v2779_v24 = vsel %vm1135_vm4, %v6199_v9, %v2778_v6  ;;  %v2073_v50 = vadd.f32 %v2066_v43, %v2059_v15  ;;  %v2790_v35 = vrot.slane %v2786_v11, 2  ;;  %v3048_v57 = vrot.slane %v2072_v52, 6 }
 0x159   : > { %v2074_v7 = vadd.f32 %v2068_v49, %v2060_v37  ;;  %v2784_v59 = vadd.f32 %v2779_v24, %v4536_v20  ;;  %v2792_v2 = vrot.slane %v2787_v53, 2  ;;  %v2800_v0 = vmul.f32 %v4256_v48, %v4504_v1 }
 0x15a   : > { %v2801_v26 = vmul.f32 %v4256_v48, %v4530_v14  ;;  %v3049_v21 = vrot.slane %v2073_v50, 6  ;;  %v2791_v47 = vsel %vm1135_vm4, %v4511_v46, %v2790_v35  ;;  %v2814_v8 = vmul.f32 %v4271_v28, %v4504_v1 }
 0x15b   : > { %v3051_v63 = vrot.slane %v2074_v7, 6  ;;  %v2793_v34 = vsel %vm1135_vm4, %v2790_v35, %v2792_v2  ;;  %v2797_v20 = vadd.f32 %v2791_v47, %v2783_v38  ;;  %v2799_v5 = vadd.f32 %v2792_v2, %v2785_v16  ;;  %v6200_v2 = vld [vmem:[#allocation6_spill] sm:$0xff]  ;;  %v6204_v47 = vld [vmem:[#allocation11_spill] sm:$0xff] }
 0x15c   : > { %v2804_v43 = vrot.slane %v2800_v0, 3  ;;  %v3050_v12 = vsel %vm1252_vm7, %v3048_v57, %v3049_v21  ;;  %v2798_v6 = vadd.f32 %v2793_v34, %v2784_v59  ;;  %v2806_v15 = vrot.slane %v2801_v26, 3  ;;  %v6202_v26 = vld [vmem:[#allocation69_spill] sm:$0xff] }
 0x15d   : > { %v3052_v49 = vsel %vm1252_vm7, %v3049_v21, %v3051_v63  ;;  %v3135_v37 = vadd.f32 %v4710_v33, %v3050_v12  ;;  %v2815_v9 = vmul.f32 %v4271_v28, %v4530_v14  ;;  %v2818_v53 = vrot.slane %v2814_v8, 4  ;;  %v6205_v12 = vld [vmem:[#allocation10_spill] sm:$0xff] }
 0x15e   : > { %v3136_v11 = vadd.f32 %v4710_v33, %v3052_v49  ;;  %v2805_v52 = vsel %vm1174_vm5, %v4513_v39, %v2804_v43  ;;  %v2807_v38 = vsel %vm1174_vm5, %v2804_v43, %v2806_v15  ;;  %v2813_v16 = vadd.f32 %v2806_v15, %v2799_v5 }
 0x15f   : > { %v2811_v24 = vadd.f32 %v2805_v52, %v2797_v20  ;;  %v3167_v50 = vmax.f32 %v3135_v37, 0.0  ;;  %v2812_v35 = vadd.f32 %v2807_v38, %v2798_v6  ;;  %v2819_v59 = vrot.slane %v2815_v9, 4 }
 0x160   : > { %v3168_v7 = vmax.f32 %v3136_v11, 0.0  ;;  %v6201_v0 = vrot.slane %v6200_v2, 4  ;;  %v6203_v21 = vrot.slane %v6202_v26, 4  ;;  %v2840_v34 = vmul.f32 %v4238_v51, %v6204_v47 }
 0x161   : > { %v2824_v57 = vadd.f32 %v2818_v53, %v2811_v24  ;;  %v6206_v43 = vrot.slane %v6205_v12, 5  ;;  %v3199_v8 = vmin.f32 %v3167_v50, 6.0  ;;  %v2820_v49 = vsel %vm525_vm0, %v2818_v53, %v2819_v59 }
 0x162   : > { %v2833_v63 = vsel %vm525_vm0, %v6203_v21, %v6201_v0  ;;  %v3200_v5 = vmin.f32 %v3168_v7, 6.0  ;;  %v2826_v6 = vadd.f32 %v2819_v59, %v2813_v16  ;;  %v2825_v15 = vadd.f32 %v2820_v49, %v2812_v35 }
 0x163   : > { %v2850_v20 = vsel %vm1232_vm6, %v6206_v43, %v4626_v55  ;;  %v6207_v37 = vmov %v6203_v21  ;;  %v2846_v52 = vrot.slane %v2840_v34, 5  ;;  %v2857_v9 = vmul.f32 %v4260_v41, %v6204_v47  ;;  %v6209_v21 = vld [vmem:[#allocation70_spill] sm:$0xff]  ;;  %v6210_v55 = vld [vmem:[#allocation68_spill] sm:$0xff] }
 0x164   : > { %v2837_v11 = vadd.f32 %v6207_v37, %v2824_v57  ;;  %v3224_v38 = vpack.c.bf16 %v3200_v5, %v3199_v8  ;;  %v6208_v24 = vmov %v6201_v0  ;;  %v2864_v13 = vrot.slane %v6209_v21, 6  ;;  %v6212_v37 = vld [vmem:[#allocation14_spill] sm:$0xff] }
 0x165   : > { %v2839_v0 = vadd.f32 %v6208_v24, %v2826_v6  ;;  %v4833_v50 = vmul.f32 %v4221_v25, %v6210_v55  ;;  %v2838_v53 = vadd.f32 %v2833_v63, %v2825_v15  ;;  %v6211_v16 = vmov %v6206_v43 }
 0x166   : > { %v2848_v7 = vsel %vm1232_vm6, %v2846_v52, %v6211_v16  ;;  %v2854_v35 = vadd.f32 %v2846_v52, %v2837_v11  ;;  %v2863_v59 = vrot.slane %v2857_v9, 6  ;;  %v3264_v57 = vsel %vm3238_vm8, %v3224_v38, 0 }
 0x167   : > { %v2856_v26 = vadd.f32 %v2850_v20, %v2839_v0  ;;  %v2867_v2 = vsel %vm1252_vm7, %v2864_v13, %v4628_v58  ;;  %v1726_v47 = vmul.f32 %v4212_v40, %v6210_v55  ;;  %3509 = vmatpush3.bf16.xpose.msra.mxu1 %v3264_v57  ;;  %v2855_v34 = vadd.f32 %v2848_v7, %v2838_v53 }
 0x168   : > { %v2865_v43 = vsel %vm1252_vm7, %v2863_v59, %v2864_v13  ;;  %v2871_v63 = vadd.f32 %v2863_v59, %v2854_v35  ;;  %v1740_v12 = vmul.f32 %v4215_v44, %v6210_v55  ;;  %v1754_v20 = vmul.f32 %v4230_v17, %v4578_v42 }
 0x169   : > { %v2873_v8 = vadd.f32 %v2867_v2, %v2856_v26  ;;  %v4846_v5 = vrot.slane %v1726_v47, 1  ;;  %v1768_v58 = vmul.f32 %v4256_v48, %v4578_v42  ;;  %v2872_v49 = vadd.f32 %v2865_v43, %v2855_v34 }
 0x16a   : > { %v3098_v6 = vrot.slane %v2871_v63, 4  ;;  %v4852_v15 = vrot.slane %v1740_v12, 2  ;;  %v1836_v13 = vmul.f32 %v4221_v25, %v6212_v37  ;;  %v4856_v52 = vrot.slane %v1754_v20, 2 }
 0x16b   : > { %v3101_v11 = vrot.slane %v2873_v8, 4  ;;  %v4858_v9 = vrot.slane %v1768_v58, 3  ;;  %v1838_v38 = vmul.f32 %v4212_v40, %v6212_v37  ;;  %v3099_v24 = vrot.slane %v2872_v49, 4 }
 0x16c   : > { %v1851_v0 = vadd.f32 %v4693_v10, %v4680_v30  ;;  %v1852_v21 = vmul.f32 %v4215_v44, %v6212_v37  ;;  %v1853_v53 = vmul.f32 %v4215_v44, %v4578_v42  ;;  %v1866_v7 = vmul.f32 %v4230_v17, %v4610_v22 }
 0x16d   : > { %v1842_v16 = vrot.slane %v1838_v38, 1  ;;  %v1867_v35 = vmul.f32 %v4230_v17, %v4631_v61  ;;  %v1880_v59 = vmul.f32 %v4256_v48, %v4610_v22  ;;  %v3100_v57 = vsel %vm525_vm0, %v3098_v6, %v3099_v24 }
 0x16e   : > { %v3102_v30 = vsel %vm525_vm0, %v3099_v24, %v3101_v11  ;;  %v1856_v26 = vrot.slane %v1852_v21, 2  ;;  %v1858_v2 = vrot.slane %v1853_v53, 2  ;;  %v3149_v47 = vadd.f32 %v4710_v33, %v3100_v57 }
 0x16f   : > { %v3150_v34 = vadd.f32 %v4710_v33, %v3102_v30  ;;  %v1843_v43 = vsel %vm1115_vm3, %v4846_v5, %v1842_v16  ;;  %v1845_v63 = vsel %vm1115_vm3, %v1842_v16, %v4693_v10  ;;  %v1870_v38 = vrot.slane %v1866_v7, 2 }
 0x170   : > { %v1849_v12 = vadd.f32 %v1843_v43, %v4833_v50  ;;  %v1850_v8 = vadd.f32 %v1845_v63, %v1836_v13  ;;  %v1857_v20 = vsel %vm1135_vm4, %v4852_v15, %v1856_v26  ;;  %v1859_v58 = vsel %vm1135_vm4, %v1856_v26, %v1858_v2 }
 0x171   : > { %v3181_v49 = vmax.f32 %v3149_v47, 0.0  ;;  %v3182_v6 = vmax.f32 %v3150_v34, 0.0  ;;  %v1865_v11 = vadd.f32 %v1858_v2, %v1851_v0  ;;  %v1872_v53 = vrot.slane %v1867_v35, 2 }
 0x172   : > { %v1863_v24 = vadd.f32 %v1857_v20, %v1849_v12  ;;  %v1864_v21 = vadd.f32 %v1859_v58, %v1850_v8  ;;  %v1881_v57 = vmul.f32 %v4256_v48, %v4631_v61  ;;  %v1871_v13 = vsel %vm1135_vm4, %v4856_v52, %v1870_v38 }
 0x173   : > { %v3213_v30 = vmin.f32 %v3181_v49, 6.0  ;;  %v3214_v10 = vmin.f32 %v3182_v6, 6.0  ;;  %v1884_v16 = vrot.slane %v1880_v59, 3  ;;  %v1873_v43 = vsel %vm1135_vm4, %v1870_v38, %v1872_v53 }
 0x174   : > { %v1877_v63 = vadd.f32 %v1871_v13, %v1863_v24  ;;  %v1879_v26 = vadd.f32 %v1872_v53, %v1865_v11  ;;  %v1886_v47 = vrot.slane %v1881_v57, 3  ;;  %v1878_v0 = vadd.f32 %v1873_v43, %v1864_v21 }
 0x175   : > { %v3231_v34 = vpack.c.bf16 %v3214_v10, %v3213_v30  ;;  %v1885_v7 = vsel %vm1174_vm5, %v4858_v9, %v1884_v16  ;;  %v1894_v35 = vmul.f32 %v4271_v28, %v4610_v22  ;;  %v1895_v59 = vmul.f32 %v4271_v28, %v4631_v61 }
 0x176   : > { %v1887_v2 = vsel %vm1174_vm5, %v1884_v16, %v1886_v47  ;;  %v1891_v12 = vadd.f32 %v1885_v7, %v1877_v63  ;;  %v1893_v8 = vadd.f32 %v1886_v47, %v1879_v26  ;;  %v1907_v49 = vmul.f32 %v4232_v62, %v4655_v45 }
 0x177   : > { %3615 = vmatprep.subr.msk.bf16.mxu1 %vm3238_vm8, %v3231_v34  ;;  %v1892_v20 = vadd.f32 %v1887_v2, %v1878_v0  ;;  %v1898_v58 = vrot.slane %v1894_v35, 4  ;;  %v1908_v6 = vmul.f32 %v4232_v62, %v4666_v27  ;;  %v1899_v11 = vrot.slane %v1895_v59, 4 }
 0x178   : > { %v1920_v38 = vmul.f32 %v4238_v51, %v4655_v45  ;;  %v1921_v24 = vmul.f32 %v4238_v51, %v4666_v27  ;;  %v1937_v21 = vmul.f32 %v4260_v41, %v4655_v45  ;;  %v1911_v57 = vrot.slane %v1907_v49, 4 }
 0x179   : > { %v1904_v53 = vadd.f32 %v1898_v58, %v1891_v12  ;;  %v1912_v30 = vrot.slane %v1908_v6, 4  ;;  %v1938_v10 = vmul.f32 %v4260_v41, %v4666_v27  ;;  %v1900_v13 = vsel %vm525_vm0, %v1898_v58, %v1899_v11  ;;  %v6213_v6 = vld [vmem:[#allocation65_spill] sm:$0xff] }
 0x17a   : > { %v1906_v16 = vadd.f32 %v1899_v11, %v1893_v8  ;;  %v1926_v43 = vrot.slane %v1920_v38, 5  ;;  %v1927_v63 = vrot.slane %v1921_v24, 5  ;;  %v1905_v26 = vadd.f32 %v1900_v13, %v1892_v20 }
 0x17b   : > { %v1913_v47 = vsel %vm525_vm0, %v1911_v57, %v1912_v30  ;;  %v1917_v34 = vadd.f32 %v1911_v57, %v1904_v53  ;;  %v1943_v0 = vrot.slane %v1937_v21, 6  ;;  %v1944_v12 = vrot.slane %v1938_v10, 6  ;;  %v6214_v53 = vld [vmem:[#allocation62_spill] sm:$0xff]  ;;  %v6215_v57 = vld [vmem:[#allocation52_spill] sm:$0xff]  ;;  %v6229_v21 = vld [vmem:[#allocation63_spill] sm:$0xff] }
 0x17c   : > { %v1919_v7 = vadd.f32 %v1912_v30, %v1906_v16  ;;  %v1928_v35 = vsel %vm1232_vm6, %v1926_v43, %v1927_v63  ;;  %v1930_v2 = vsel %vm1232_vm6, %v1927_v63, %v4701_v29  ;;  %v1918_v59 = vadd.f32 %v1913_v47, %v1905_v26  ;;  %v6218_v63 = vld [vmem:[#allocation66_spill] sm:$0xff] }
 0x17d   : > { %v1934_v49 = vadd.f32 %v1926_v43, %v1917_v34  ;;  %v4919_v8 = vmul.f32 %v4232_v62, %v4474_v31  ;;  %v1945_v58 = vsel %vm1252_vm7, %v1943_v0, %v1944_v12  ;;  %v1947_v11 = vsel %vm1252_vm7, %v1944_v12, %v4703_v60  ;;  %v6217_v43 = vld [vmem:[#allocation51_spill] sm:$0xff]  ;;  %v6219_v60 = vld [vmem:[#allocation54_spill] sm:$0xff] }
 0x17e   : > { %v1936_v20 = vadd.f32 %v1930_v2, %v1919_v7  ;;  %v4926_v38 = vmul.f32 %v4238_v51, %v4474_v31  ;;  %v1935_v29 = vadd.f32 %v1928_v35, %v1918_v59  ;;  %v6216_v30 = vrot.slane %v6215_v57, 1  ;;  %v6220_v2 = vld [vmem:[#allocation58_spill] sm:$0xff]  ;;  %v6221_v35 = vld [vmem:[#allocation55_spill] sm:$0xff] }
 0x17f   : > { %v1951_v24 = vadd.f32 %v1943_v0, %v1934_v49  ;;  %v2656_v26 = vadd.f32 %v6218_v63, %v6217_v43  ;;  %v2658_v0 = vadd.f32 %v6214_v53, %v6220_v2  ;;  %v6222_v12 = vrot.slane %v6221_v35, 2  ;;  %v6223_v59 = vld [vmem:[#allocation47_spill] sm:$0xff]  ;;  %v6226_v63 = vld [vmem:[#allocation61_spill] sm:$0xff] }
 0x180   : > { %v2652_v10 = vsel %vm1115_vm3, %v6216_v30, %v6214_v53  ;;  %v1953_v13 = vadd.f32 %v1947_v11, %v1936_v20  ;;  %v1952_v34 = vadd.f32 %v1945_v58, %v1935_v29  ;;  %v6224_v49 = vrot.slane %v6223_v59, 2 }
 0x181   : > { %v2657_v47 = vadd.f32 %v2652_v10, %v6219_v60  ;;  %v3038_v7 = vrot.slane %v1951_v24, 4  ;;  %v6225_v20 = vmov %v6222_v12  ;;  %v2673_v58 = vmul.f32 %v4230_v17, %v6226_v63 }
 0x182   : > { %v2664_v57 = vsel %vm1135_vm4, %v6224_v49, %v6222_v12  ;;  %v3041_v30 = vrot.slane %v1953_v13, 4  ;;  %v2666_v11 = vsel %vm1135_vm4, %v6225_v20, %v4457_v32  ;;  %v3039_v29 = vrot.slane %v1952_v34, 4  ;;  %v6227_v49 = vld [vmem:[#allocation60_spill] sm:$0xff] }
 0x183   : > { %v2670_v43 = vadd.f32 %v2664_v57, %v2656_v26  ;;  %v2671_v24 = vadd.f32 %v2666_v11, %v2657_v47  ;;  %v2672_v53 = vadd.f32 %v4457_v32, %v2658_v0  ;;  %v2687_v10 = vmul.f32 %v4256_v48, %v6226_v63 }
 0x184   : > { %v2677_v60 = vrot.slane %v2673_v58, 2  ;;  %v2701_v13 = vmul.f32 %v4271_v28, %v6226_v63  ;;  %v2702_v2 = vmul.f32 %v4271_v28, %v4474_v31  ;;  %v2715_v26 = vmul.f32 %v4232_v62, %v4504_v1 }
 0x185   : > { %v3040_v35 = vsel %vm525_vm0, %v3038_v7, %v3039_v29  ;;  %v3042_v34 = vsel %vm525_vm0, %v3039_v29, %v3041_v30  ;;  %v2686_v47 = vadd.f32 %v4511_v46, %v2672_v53  ;;  %v2691_v32 = vrot.slane %v2687_v10, 3 }
 0x186   : > { %v3133_v0 = vadd.f32 %v4710_v33, %v3040_v35  ;;  %v3134_v12 = vadd.f32 %v4710_v33, %v3042_v34  ;;  %v6228_v57 = vrot.slane %v6227_v49, 2  ;;  %v2680_v11 = vsel %vm1135_vm4, %v2677_v60, %v4511_v46 }
 0x187   : > { %v2685_v16 = vadd.f32 %v2680_v11, %v2671_v24  ;;  %v6230_v7 = vrot.slane %v6229_v21, 3  ;;  %v2694_v29 = vsel %vm1174_vm5, %v2691_v32, %v4513_v39  ;;  %v2700_v35 = vadd.f32 %v4513_v39, %v2686_v47 }
 0x188   : > { %v2678_v20 = vsel %vm1135_vm4, %v6228_v57, %v2677_v60  ;;  %v3165_v53 = vmax.f32 %v3133_v0, 0.0  ;;  %v3166_v10 = vmax.f32 %v3134_v12, 0.0  ;;  %v2705_v34 = vrot.slane %v2701_v13, 4 }
 0x189   : > { %v2684_v58 = vadd.f32 %v2678_v20, %v2670_v43  ;;  %v2692_v30 = vsel %vm1174_vm5, %v6230_v7, %v2691_v32  ;;  %v2699_v23 = vadd.f32 %v2694_v29, %v2685_v16  ;;  %v2707_v57 = vrot.slane %v2702_v2, 4 }
 0x18a   : > { %v2716_v46 = vmul.f32 %v4232_v62, %v4530_v14  ;;  %v3197_v43 = vmin.f32 %v3165_v53, 6.0  ;;  %v3198_v24 = vmin.f32 %v3166_v10, 6.0  ;;  %v6231_v60 = vrot.slane %v6213_v6, 4 }
 0x18b   : > { %v2698_v4 = vadd.f32 %v2692_v30, %v2684_v58  ;;  %v2719_v11 = vrot.slane %v2715_v26, 4  ;;  %v2708_v32 = vsel %vm525_vm0, %v2705_v34, %v2707_v57  ;;  %v2714_v12 = vadd.f32 %v2707_v57, %v2700_v35  ;;  %v6233_v57 = vld [vmem:[#allocation64_spill] sm:$0xff] }
 0x18c   : > { %v2706_v20 = vsel %vm525_vm0, %v6231_v60, %v2705_v34  ;;  %v2721_v7 = vrot.slane %v2716_v46, 4  ;;  %v3223_v39 = vpack.c.bf16 %v3198_v24, %v3197_v43  ;;  %v2713_v13 = vadd.f32 %v2708_v32, %v2699_v23 }
 0x18d   : > { %v2712_v0 = vadd.f32 %v2706_v20, %v2698_v4  ;;  %v6232_v16 = vrot.slane %v4919_v8, 4  ;;  %v2729_v47 = vmul.f32 %v4238_v51, %v4504_v1  ;;  %v2730_v26 = vmul.f32 %v4238_v51, %v4530_v14 }
 0x18e   : > { %v2722_v58 = vsel %vm525_vm0, %v2719_v11, %v2721_v7  ;;  %v2728_v29 = vadd.f32 %v2721_v7, %v2714_v12  ;;  %v3261_v4 = vsel %vm3238_vm8, %v3223_v39, 0  ;;  %v2743_v23 = vmul.f32 %v4260_v41, %v4504_v1 }
 0x18f   : > { %v2720_v2 = vsel %vm525_vm0, %v6232_v16, %v2719_v11  ;;  %v2727_v53 = vadd.f32 %v2722_v58, %v2713_v13  ;;  %v2733_v10 = vrot.slane %v2729_v47, 5  ;;  %3511 = vmatpush3.bf16.xpose.msra.mxu1 %v3261_v4  ;;  %v2735_v35 = vrot.slane %v2730_v26, 5 }
 0x190   : > { %v2726_v30 = vadd.f32 %v2720_v2, %v2712_v0  ;;  %v2744_v34 = vmul.f32 %v4260_v41, %v4530_v14  ;;  %v4996_v46 = vmul.f32 %v4212_v40, %v6233_v57  ;;  %v5000_v43 = vmul.f32 %v4215_v44, %v6233_v57 }
 0x191   : > { %v6234_v24 = vrot.slane %v4926_v38, 5  ;;  %v2747_v20 = vrot.slane %v2743_v23, 6  ;;  %v5007_v1 = vmul.f32 %v4230_v17, %v6210_v55  ;;  %v5011_v14 = vmul.f32 %v4256_v48, %v6210_v55 }
 0x192   : > { %v2736_v11 = vsel %vm1232_vm6, %v2733_v10, %v2735_v35  ;;  %v2742_v0 = vadd.f32 %v2735_v35, %v2728_v29  ;;  %v2748_v12 = vrot.slane %v2744_v34, 6  ;;  %v5029_v29 = vmul.f32 %v4238_v51, %v4578_v42  ;;  %v6235_v34 = vld [vmem:[#allocation67_spill] sm:$0xff] }
 0x193   : > { %v2734_v60 = vsel %vm1232_vm6, %v6234_v24, %v2733_v10  ;;  %v2741_v7 = vadd.f32 %v2736_v11, %v2727_v53  ;;  %v5021_v10 = vmul.f32 %v4271_v28, %v6210_v55  ;;  %v1722_v35 = vmul.f32 %v4221_v25, %v6233_v57 }
 0x194   : > { %v2740_v32 = vadd.f32 %v2734_v60, %v2726_v30  ;;  %v2749_v2 = vsel %vm1252_vm7, %v2747_v20, %v2748_v12  ;;  %v2755_v58 = vadd.f32 %v2748_v12, %v2742_v0  ;;  %v5025_v30 = vmul.f32 %v4232_v62, %v4578_v42 }
 0x195   : > { %v2754_v4 = vadd.f32 %v2749_v2, %v2741_v7  ;;  %v1723_v24 = vmul.f32 %v4221_v25, %v6235_v34  ;;  %v1725_v0 = vmul.f32 %v4212_v40, %v6235_v34  ;;  %v1738_v12 = vadd.f32 %v4846_v5, %v4833_v50 }
 0x196   : > { %v2753_v47 = vadd.f32 %v2747_v20, %v2740_v32  ;;  %v3091_v23 = vrot.slane %v2755_v58, 2  ;;  %v1739_v7 = vmul.f32 %v4215_v44, %v6235_v34  ;;  %v1753_v2 = vmul.f32 %v4230_v17, %v6212_v37 }
 0x197   : > { %v3089_v60 = vrot.slane %v2754_v4, 2  ;;  %v1767_v4 = vmul.f32 %v4256_v48, %v6212_v37  ;;  %v1781_v32 = vmul.f32 %v4271_v28, %v6212_v37  ;;  %v1729_v20 = vrot.slane %v1725_v0, 1 }
 0x198   : > { %v3088_v53 = vrot.slane %v2753_v47, 2  ;;  %v1743_v26 = vrot.slane %v1739_v7, 2  ;;  %v1752_v16 = vadd.f32 %v4852_v15, %v1738_v12  ;;  %v1757_v13 = vrot.slane %v1753_v2, 2 }
 0x199   : > { %v3092_v58 = vsel %vm1135_vm4, %v3089_v60, %v3091_v23  ;;  %v1771_v39 = vrot.slane %v1767_v4, 3  ;;  %v6236_v36 = vrot.slane %v4996_v46, 1  ;;  %v6237_v0 = vrot.slane %v5000_v43, 2 }
 0x19a   : > { %v3090_v47 = vsel %vm1135_vm4, %v3088_v53, %v3089_v60  ;;  %v3148_v50 = vadd.f32 %v4710_v33, %v3092_v58  ;;  %v1782_v53 = vmul.f32 %v4271_v28, %v4578_v42  ;;  %v1746_v7 = vsel %vm1135_vm4, %v1743_v26, %v4852_v15 }
 0x19b   : > { %v3147_v11 = vadd.f32 %v4710_v33, %v3090_v47  ;;  %v1730_v56 = vsel %vm1115_vm3, %v6236_v36, %v1729_v20  ;;  %v1732_v47 = vsel %vm1115_vm3, %v1729_v20, %v4846_v5  ;;  %v1744_v12 = vsel %vm1135_vm4, %v6237_v0, %v1743_v26 }
 0x19c   : > { %v3180_v60 = vmax.f32 %v3148_v50, 0.0  ;;  %v1736_v54 = vadd.f32 %v1730_v56, %v1722_v35  ;;  %v1737_v58 = vadd.f32 %v1732_v47, %v1723_v24  ;;  %v1760_v36 = vsel %vm1135_vm4, %v1757_v13, %v4856_v52 }
 0x19d   : > { %v3179_v23 = vmax.f32 %v3147_v11, 0.0  ;;  %v6238_v11 = vrot.slane %v5007_v1, 2  ;;  %v1766_v56 = vadd.f32 %v4856_v52, %v1752_v16  ;;  %v6239_v35 = vrot.slane %v5011_v14, 3 }
 0x19e   : > { %v3212_v4 = vmin.f32 %v3180_v60, 6.0  ;;  %v1750_v19 = vadd.f32 %v1744_v12, %v1736_v54  ;;  %v1751_v5 = vadd.f32 %v1746_v7, %v1737_v58  ;;  %v1774_v15 = vsel %vm1174_vm5, %v1771_v39, %v4858_v9 }
 0x19f   : > { %v3211_v2 = vmin.f32 %v3179_v23, 6.0  ;;  %v1758_v50 = vsel %vm1135_vm4, %v6238_v11, %v1757_v13  ;;  %v1772_v24 = vsel %vm1174_vm5, %v6239_v35, %v1771_v39  ;;  %v1785_v26 = vrot.slane %v1781_v32, 4 }
 0x1a0   : > { %v1787_v23 = vrot.slane %v1782_v53, 4  ;;  %v1764_v60 = vadd.f32 %v1758_v50, %v1750_v19  ;;  %v1765_v47 = vadd.f32 %v1760_v36, %v1751_v5  ;;  %v1780_v0 = vadd.f32 %v4858_v9, %v1766_v56 }
 0x1a1   : > { %v3230_v20 = vpack.c.bf16 %v3212_v4, %v3211_v2  ;;  %v1795_v54 = vmul.f32 %v4232_v62, %v4610_v22  ;;  %v6240_v52 = vrot.slane %v5021_v10, 4  ;;  %v1796_v39 = vmul.f32 %v4232_v62, %v4631_v61 }
 0x1a2   : > { %v1788_v16 = vsel %vm525_vm0, %v1785_v26, %v1787_v23  ;;  %v1809_v19 = vmul.f32 %v4238_v51, %v4610_v22  ;;  %v1778_v32 = vadd.f32 %v1772_v24, %v1764_v60  ;;  %v1779_v53 = vadd.f32 %v1774_v15, %v1765_v47 }
 0x1a3   : > { %3616 = vmatprep.subr.msk.bf16.mxu1 %vm3238_vm8, %v3230_v20  ;;  %v1786_v13 = vsel %vm525_vm0, %v6240_v52, %v1785_v26  ;;  %v1794_v9 = vadd.f32 %v1787_v23, %v1780_v0  ;;  %v1799_v58 = vrot.slane %v1795_v54, 4  ;;  %v1801_v12 = vrot.slane %v1796_v39, 4  ;;  %v6243_v52 = vld [vmem:[#allocation57_spill] sm:$0xff] }
 0x1a4   : > { %v1810_v7 = vmul.f32 %v4238_v51, %v4631_v61  ;;  %v1813_v2 = vrot.slane %v1809_v19, 5  ;;  %v1823_v4 = vmul.f32 %v4260_v41, %v4610_v22  ;;  %v1792_v11 = vadd.f32 %v1786_v13, %v1778_v32 }
 0x1a5   : > { %v1793_v50 = vadd.f32 %v1788_v16, %v1779_v53  ;;  %v6241_v36 = vrot.slane %v5025_v30, 4  ;;  %v1824_v56 = vmul.f32 %v4260_v41, %v4631_v61  ;;  %v1802_v35 = vsel %vm525_vm0, %v1799_v58, %v1801_v12  ;;  %v6244_v16 = vld [vmem:[#allocation56_spill] sm:$0xff] }
 0x1a6   : > { %v1808_v24 = vadd.f32 %v1801_v12, %v1794_v9  ;;  %v6242_v20 = vrot.slane %v5029_v29, 5  ;;  %v1815_v26 = vrot.slane %v1810_v7, 5  ;;  %v1827_v22 = vrot.slane %v1823_v4, 6  ;;  %v6245_v7 = vld [vmem:[#allocation41_spill] sm:$0xff] }
 0x1a7   : > { %v1800_v5 = vsel %vm525_vm0, %v6241_v36, %v1799_v58  ;;  %v1807_v60 = vadd.f32 %v1802_v35, %v1793_v50  ;;  %v1828_v47 = vrot.slane %v1824_v56, 6  ;;  %v5107_v61 = vmul.f32 %v4232_v62, %v6244_v16  ;;  %v6246_v36 = vld [vmem:[#allocation44_spill] sm:$0xff] }
 0x1a8   : > { %v1814_v15 = vsel %vm1232_vm6, %v6242_v20, %v1813_v2  ;;  %v1806_v23 = vadd.f32 %v1800_v5, %v1792_v11  ;;  %v1816_v0 = vsel %vm1232_vm6, %v1813_v2, %v1815_v26  ;;  %v1822_v54 = vadd.f32 %v1815_v26, %v1808_v24 }
 0x1a9   : > { %v1821_v19 = vadd.f32 %v1816_v0, %v1807_v60  ;;  %v1829_v32 = vsel %vm1252_vm7, %v1827_v22, %v1828_v47  ;;  %v5112_v53 = vmul.f32 %v4238_v51, %v6244_v16  ;;  %v5117_v12 = vmul.f32 %v4260_v41, %v6244_v16  ;;  %v6247_v0 = vld [vmem:[#allocation42_spill] sm:$0xff]  ;;  %v6248_v16 = vld [vmem:[#allocation49_spill] sm:$0xff] }
 0x1aa   : > { %v1820_v39 = vadd.f32 %v1814_v15, %v1806_v23  ;;  %v1835_v9 = vadd.f32 %v1828_v47, %v1822_v54  ;;  %v2535_v2 = vmul.f32 %v4221_v25, %v6245_v7  ;;  %v2536_v5 = vmul.f32 %v4221_v25, %v6246_v36 }
 0x1ab   : > { %v1834_v11 = vadd.f32 %v1829_v32, %v1821_v19  ;;  %v2537_v24 = vmul.f32 %v4212_v40, %v6245_v7  ;;  %v2538_v20 = vmul.f32 %v4212_v40, %v6246_v36  ;;  %v2552_v23 = vmul.f32 %v4215_v44, %v6245_v7 }
 0x1ac   : > { %v1833_v4 = vadd.f32 %v1827_v22, %v1820_v39  ;;  %v3031_v56 = vrot.slane %v1835_v9, 2  ;;  %v2553_v60 = vmul.f32 %v4215_v44, %v6246_v36  ;;  %v2567_v54 = vmul.f32 %v4230_v17, %v6247_v0 }
 0x1ad   : > { %v3029_v26 = vrot.slane %v1834_v11, 2  ;;  %v2543_v22 = vrot.slane %v2537_v24, 1  ;;  %v2544_v47 = vrot.slane %v2538_v20, 1  ;;  %v2568_v39 = vmul.f32 %v4230_v17, %v6248_v16  ;;  %v6249_v24 = vld [vmem:[#allocation46_spill] sm:$0xff] }
 0x1ae   : > { %v3028_v15 = vrot.slane %v1833_v4, 2  ;;  %v2558_v9 = vrot.slane %v2552_v23, 2  ;;  %v2559_v4 = vrot.slane %v2553_v60, 2  ;;  %v6250_v20 = vrot.slane %v6249_v24, 1 }
 0x1af   : > { %v3032_v32 = vsel %vm1135_vm4, %v3029_v26, %v3031_v56  ;;  %v2545_v50 = vsel %vm1115_vm3, %v2543_v22, %v2544_v47  ;;  %v2573_v60 = vrot.slane %v2567_v54, 2  ;;  %v2582_v22 = vmul.f32 %v4256_v48, %v6248_v16 }
 0x1b0   : > { %v3030_v19 = vsel %vm1135_vm4, %v3028_v15, %v3029_v26  ;;  %v3132_v35 = vadd.f32 %v4710_v33, %v3032_v32  ;;  %v2547_v58 = vsel %vm1115_vm3, %v2544_v47, %v6250_v20  ;;  %v2550_v13 = vadd.f32 %v2545_v50, %v2535_v2 }
 0x1b1   : > { %v3131_v11 = vadd.f32 %v4710_v33, %v3030_v19  ;;  %v2551_v27 = vadd.f32 %v2547_v58, %v2536_v5  ;;  %v2560_v45 = vsel %vm1135_vm4, %v2558_v9, %v2559_v4  ;;  %v6251_v15 = vrot.slane %v6223_v59, 2 }
 0x1b2   : > { %v3164_v23 = vmax.f32 %v3132_v35, 0.0  ;;  %v2574_v19 = vrot.slane %v2568_v39, 2  ;;  %v2565_v18 = vadd.f32 %v2560_v45, %v2550_v13  ;;  %v2594_v47 = vmul.f32 %v4271_v28, %v6248_v16 }
 0x1b3   : > { %v2562_v56 = vsel %vm1135_vm4, %v2559_v4, %v6251_v15  ;;  %v3163_v26 = vmax.f32 %v3131_v11, 0.0  ;;  %v6252_v59 = vrot.slane %v6227_v49, 2  ;;  %v2586_v54 = vrot.slane %v2582_v22, 3  ;;  %v6253_v11 = vld [vmem:[#allocation50_spill] sm:$0xff] }
 0x1b4   : > { %v2566_v32 = vadd.f32 %v2562_v56, %v2551_v27  ;;  %v3196_v58 = vmin.f32 %v3164_v23, 6.0  ;;  %v2575_v50 = vsel %vm1135_vm4, %v2573_v60, %v2574_v19  ;;  %v2598_v39 = vrot.slane %v2594_v47, 4 }
 0x1b5   : > { %v3195_v2 = vmin.f32 %v3163_v26, 6.0  ;;  %v2577_v5 = vsel %vm1135_vm4, %v2574_v19, %v6252_v59  ;;  %v2580_v9 = vadd.f32 %v2575_v50, %v2565_v18  ;;  %v2606_v27 = vmul.f32 %v4232_v62, %v6226_v63 }
 0x1b6   : > { %v2581_v35 = vadd.f32 %v2577_v5, %v2566_v32  ;;  %v2618_v13 = vmul.f32 %v4238_v51, %v6226_v63  ;;  %v2630_v4 = vmul.f32 %v4260_v41, %v6226_v63  ;;  %v6254_v24 = vrot.slane %v6253_v11, 3 }
 0x1b7   : > { %v3222_v45 = vpack.c.bf16 %v3196_v58, %v3195_v2  ;;  %v6255_v20 = vrot.slane %v6229_v21, 3  ;;  %v6256_v15 = vrot.slane %v6243_v52, 4  ;;  %v6257_v26 = vrot.slane %v6213_v6, 4 }
 0x1b8   : > { %v2587_v49 = vsel %vm1174_vm5, %v6254_v24, %v2586_v54  ;;  %v2610_v32 = vrot.slane %v2606_v27, 4  ;;  %v2622_v22 = vrot.slane %v2618_v13, 5  ;;  %v2631_v21 = vmul.f32 %v4260_v41, %v4474_v31 }
 0x1b9   : > { %v2589_v18 = vsel %vm1174_vm5, %v2586_v54, %v6255_v20  ;;  %v2599_v56 = vsel %vm525_vm0, %v6256_v15, %v2598_v39  ;;  %v2601_v23 = vsel %vm525_vm0, %v2598_v39, %v6257_v26  ;;  %v3258_v60 = vsel %vm3238_vm8, %v3222_v45, 0 }
 0x1ba   : > { %v2592_v19 = vadd.f32 %v2587_v49, %v2580_v9  ;;  %v2593_v63 = vadd.f32 %v2589_v18, %v2581_v35  ;;  %3513 = vmatpush3.bf16.xpose.msra.mxu1 %v3258_v60  ;;  %v2634_v47 = vrot.slane %v2630_v4, 6  ;;  %v5180_v2 = vmul.f32 %v4256_v48, %v6233_v57  ;;  %v6263_v60 = vld [vmem:[#allocation53_spill] sm:$0xff] }
 0x1bb   : > { %v6258_v6 = vrot.slane %v5107_v61, 4  ;;  %v6259_v5 = vrot.slane %v4919_v8, 4  ;;  %v6260_v35 = vrot.slane %v5112_v53, 5  ;;  %v6261_v31 = vrot.slane %v4926_v38, 5 }
 0x1bc   : > { %v2604_v58 = vadd.f32 %v2599_v56, %v2592_v19  ;;  %v2605_v50 = vadd.f32 %v2601_v23, %v2593_v63  ;;  %v6262_v45 = vrot.slane %v5117_v12, 6  ;;  %v2636_v13 = vrot.slane %v2631_v21, 6  ;;  %v6264_v21 = vld [vmem:[#allocation59_spill] sm:$0xff] }
 0x1bd   : > { %v2611_v59 = vsel %vm525_vm0, %v6258_v6, %v2610_v32  ;;  %v2613_v9 = vsel %vm525_vm0, %v2610_v32, %v6259_v5  ;;  %v2623_v54 = vsel %vm1232_vm6, %v6260_v35, %v2622_v22  ;;  %v2625_v39 = vsel %vm1232_vm6, %v2622_v22, %v6261_v31 }
 0x1be   : > { %v2635_v27 = vsel %vm1252_vm7, %v6262_v45, %v2634_v47  ;;  %v2616_v4 = vadd.f32 %v2611_v59, %v2604_v58  ;;  %v2617_v24 = vadd.f32 %v2613_v9, %v2605_v50  ;;  %v1545_v49 = vrot.slane %v5180_v2, 3 }
 0x1bf   : > { %v5200_v8 = vmul.f32 %v4271_v28, %v6233_v57  ;;  %v2637_v20 = vsel %vm1252_vm7, %v2634_v47, %v2636_v13  ;;  %v5205_v38 = vmul.f32 %v4232_v62, %v6210_v55  ;;  %v5209_v18 = vmul.f32 %v4238_v51, %v6210_v55 }
 0x1c0   : > { %v5213_v15 = vmul.f32 %v4260_v41, %v6210_v55  ;;  %v2628_v56 = vadd.f32 %v2623_v54, %v2616_v4  ;;  %v2629_v26 = vadd.f32 %v2625_v39, %v2617_v24  ;;  %v1615_v19 = vmul.f32 %v4221_v25, %v6263_v60 }
 0x1c1   : > { %v1616_v47 = vmul.f32 %v4221_v25, %v6264_v21  ;;  %v1617_v55 = vmul.f32 %v4212_v40, %v6263_v60  ;;  %v1618_v6 = vmul.f32 %v4212_v40, %v6264_v21  ;;  %v1632_v59 = vmul.f32 %v4215_v44, %v6263_v60 }
 0x1c2   : > { %v2640_v58 = vadd.f32 %v2635_v27, %v2628_v56  ;;  %v2641_v50 = vadd.f32 %v2637_v20, %v2629_v26  ;;  %v1633_v5 = vmul.f32 %v4215_v44, %v6264_v21  ;;  %v1647_v9 = vmul.f32 %v4230_v17, %v6233_v57 }
 0x1c3   : > { %v1648_v35 = vmul.f32 %v4230_v17, %v6235_v34  ;;  %v1623_v39 = vrot.slane %v1617_v55, 1  ;;  %v1624_v45 = vrot.slane %v1618_v6, 1  ;;  %v1638_v27 = vrot.slane %v1632_v59, 2 }
 0x1c4   : > { %v3145_v54 = vadd.f32 %v4710_v33, %v2640_v58  ;;  %v3146_v31 = vadd.f32 %v4710_v33, %v2641_v50  ;;  %v1639_v13 = vrot.slane %v1633_v5, 2  ;;  %v1653_v4 = vrot.slane %v1647_v9, 2 }
 0x1c5   : > { %v1654_v24 = vrot.slane %v1648_v35, 2  ;;  %v1625_v26 = vsel %vm1115_vm3, %v1623_v39, %v1624_v45  ;;  %v6265_v22 = vrot.slane %v4996_v46, 1  ;;  %v6266_v33 = vrot.slane %v5000_v43, 2 }
 0x1c6   : > { %v3177_v20 = vmax.f32 %v3145_v54, 0.0  ;;  %v3178_v56 = vmax.f32 %v3146_v31, 0.0  ;;  %v1630_v63 = vadd.f32 %v1625_v26, %v1615_v19  ;;  %v1640_v58 = vsel %vm1135_vm4, %v1638_v27, %v1639_v13 }
 0x1c7   : > { %v1627_v32 = vsel %vm1115_vm3, %v1624_v45, %v6265_v22  ;;  %v1642_v50 = vsel %vm1135_vm4, %v1639_v13, %v6266_v33  ;;  %v1655_v59 = vsel %vm1135_vm4, %v1653_v4, %v1654_v24  ;;  %v6267_v5 = vrot.slane %v5007_v1, 2 }
 0x1c8   : > { %v1631_v23 = vadd.f32 %v1627_v32, %v1616_v47  ;;  %v3209_v55 = vmin.f32 %v3177_v20, 6.0  ;;  %v3210_v6 = vmin.f32 %v3178_v56, 6.0  ;;  %v1645_v35 = vadd.f32 %v1640_v58, %v1630_v63 }
 0x1c9   : > { %v1657_v9 = vsel %vm1135_vm4, %v1654_v24, %v6267_v5  ;;  %v1662_v19 = vmul.f32 %v4256_v48, %v6235_v34  ;;  %v1674_v32 = vmul.f32 %v4271_v28, %v6235_v34  ;;  %v1686_v43 = vmul.f32 %v4232_v62, %v6212_v37 }
 0x1ca   : > { %v1646_v46 = vadd.f32 %v1642_v50, %v1631_v23  ;;  %v3229_v22 = vpack.c.bf16 %v3210_v6, %v3209_v55  ;;  %v1698_v47 = vmul.f32 %v4238_v51, %v6212_v37  ;;  %v1710_v1 = vmul.f32 %v4260_v41, %v6212_v37 }
 0x1cb   : > { %v1660_v54 = vadd.f32 %v1655_v59, %v1645_v35  ;;  %v1666_v63 = vrot.slane %v1662_v19, 3  ;;  %v1678_v23 = vrot.slane %v1674_v32, 4  ;;  %v1690_v39 = vrot.slane %v1686_v43, 4  ;;  %v6276_v43 = vld [vmem:[#allocation23_spill] sm:$0xff] }
 0x1cc   : > { %v1661_v31 = vadd.f32 %v1657_v9, %v1646_v46  ;;  %3617 = vmatprep.subr.msk.bf16.mxu1 %vm3238_vm8, %v3229_v22  ;;  %v1702_v45 = vrot.slane %v1698_v47, 5  ;;  %v1711_v27 = vmul.f32 %v4260_v41, %v4578_v42  ;;  %v1714_v13 = vrot.slane %v1710_v1, 6 }
 0x1cd   : > { %v1667_v4 = vsel %vm1174_vm5, %v1545_v49, %v1666_v63  ;;  %v6268_v24 = vrot.slane %v5011_v14, 3  ;;  %v6269_v20 = vrot.slane %v5200_v8, 4  ;;  %v6270_v26 = vrot.slane %v5021_v10, 4 }
 0x1ce   : > { %v1672_v33 = vadd.f32 %v1667_v4, %v1660_v54  ;;  %v6271_v42 = vrot.slane %v5205_v38, 4  ;;  %v6272_v6 = vrot.slane %v5025_v30, 4  ;;  %v6273_v59 = vrot.slane %v5209_v18, 5 }
 0x1cf   : > { %v1669_v37 = vsel %vm1174_vm5, %v1666_v63, %v6268_v24  ;;  %v1679_v56 = vsel %vm525_vm0, %v6269_v20, %v1678_v23  ;;  %v1681_v58 = vsel %vm525_vm0, %v1678_v23, %v6270_v26  ;;  %v6274_v9 = vrot.slane %v5029_v29, 5 }
 0x1d0   : > { %v1673_v50 = vadd.f32 %v1669_v37, %v1661_v31  ;;  %v1691_v55 = vsel %vm525_vm0, %v6271_v42, %v1690_v39  ;;  %v1693_v14 = vsel %vm525_vm0, %v1690_v39, %v6272_v6  ;;  %v1703_v5 = vsel %vm1232_vm6, %v6273_v59, %v1702_v45  ;;  %v6277_v31 = vld [vmem:[#allocation37_spill] sm:$0xff] }
 0x1d1   : > { %v1705_v10 = vsel %vm1232_vm6, %v1702_v45, %v6274_v9  ;;  %v6275_v35 = vrot.slane %v5213_v15, 6  ;;  %v1716_v19 = vrot.slane %v1711_v27, 6  ;;  %v1684_v32 = vadd.f32 %v1679_v56, %v1672_v33  ;;  %v6278_v27 = vld [vmem:[#allocation39_spill] sm:$0xff] }
 0x1d2   : > { %v1685_v22 = vadd.f32 %v1681_v58, %v1673_v50  ;;  %v5291_v30 = vmul.f32 %v4221_v25, %v6276_v43  ;;  %v2299_v47 = vmul.f32 %v4212_v40, %v6276_v43  ;;  %v2382_v29 = vmul.f32 %v4238_v51, %v6247_v0 }
 0x1d3   : > { %v1715_v46 = vsel %vm1252_vm7, %v6275_v35, %v1714_v13  ;;  %v1717_v1 = vsel %vm1252_vm7, %v1714_v13, %v1716_v19  ;;  %v2399_v54 = vmul.f32 %v4260_v41, %v6247_v0  ;;  %v2414_v63 = vmul.f32 %v4221_v25, %v6277_v31 }
 0x1d4   : > { %v1696_v23 = vadd.f32 %v1691_v55, %v1684_v32  ;;  %v1697_v39 = vadd.f32 %v1693_v14, %v1685_v22  ;;  %v5302_v45 = vrot.slane %v2299_v47, 1  ;;  %v2415_v4 = vmul.f32 %v4221_v25, %v6278_v27  ;;  %v5328_v22 = vld [vmem:[%s6015_s5] ss:$0 sm:$0xff] }
 0x1d5   : > { %v5306_v24 = vrot.slane %v2382_v29, 5  ;;  %v5308_v37 = vrot.slane %v2399_v54, 6  ;;  %v2416_v13 = vmul.f32 %v4212_v40, %v6277_v31  ;;  %v2417_v20 = vmul.f32 %v4212_v40, %v6278_v27 }
 0x1d6   : > { %v1708_v56 = vadd.f32 %v1703_v5, %v1696_v23  ;;  %v1709_v26 = vadd.f32 %v1705_v10, %v1697_v39  ;;  %v2430_v58 = vmul.f32 %v4215_v44, %v6277_v31  ;;  %v2431_v33 = vmul.f32 %v4215_v44, %v6278_v27 }
 0x1d7   : > { %v2420_v50 = vrot.slane %v2416_v13, 1  ;;  %v2422_v42 = vrot.slane %v2417_v20, 1  ;;  %v2443_v55 = vmul.f32 %v4230_v17, %v6245_v7  ;;  %v2444_v6 = vmul.f32 %v4230_v17, %v6246_v36 }
 0x1d8   : > { %v1720_v14 = vadd.f32 %v1715_v46, %v1708_v56  ;;  %v1721_v59 = vadd.f32 %v1717_v1, %v1709_v26  ;;  %v2434_v9 = vrot.slane %v2430_v58, 2  ;;  %v2435_v35 = vrot.slane %v2431_v33, 2 }
 0x1d9   : > { %v2421_v5 = vsel %vm1115_vm3, %v5302_v45, %v2420_v50  ;;  %v2423_v10 = vsel %vm1115_vm3, %v2420_v50, %v2422_v42  ;;  %v2429_v19 = vadd.f32 %v2422_v42, %v2415_v4  ;;  %v2447_v32 = vrot.slane %v2443_v55, 2 }
 0x1da   : > { %v3129_v47 = vadd.f32 %v5328_v22, %v1720_v14  ;;  %v3130_v29 = vadd.f32 %v5328_v22, %v1721_v59  ;;  %v2427_v46 = vadd.f32 %v2421_v5, %v5291_v30  ;;  %v2428_v1 = vadd.f32 %v2423_v10, %v2414_v63 }
 0x1db   : > { %v2436_v54 = vsel %vm1135_vm4, %v2434_v9, %v2435_v35  ;;  %v2442_v23 = vadd.f32 %v2435_v35, %v2429_v19  ;;  %v2448_v39 = vrot.slane %v2444_v6, 2  ;;  %v2456_v4 = vmul.f32 %v4256_v48, %v6245_v7 }
 0x1dc   : > { %v3161_v13 = vmax.f32 %v3129_v47, 0.0  ;;  %v3162_v20 = vmax.f32 %v3130_v29, 0.0  ;;  %v2440_v56 = vadd.f32 %v2434_v9, %v2427_v46  ;;  %v2441_v26 = vadd.f32 %v2436_v54, %v2428_v1 }
 0x1dd   : > { %v2449_v58 = vsel %vm1135_vm4, %v2447_v32, %v2448_v39  ;;  %v2455_v33 = vadd.f32 %v2448_v39, %v2442_v23  ;;  %v2457_v50 = vmul.f32 %v4256_v48, %v6246_v36  ;;  %v2462_v42 = vrot.slane %v2456_v4, 3 }
 0x1de   : > { %v3193_v55 = vmin.f32 %v3161_v13, 6.0  ;;  %v3194_v63 = vmin.f32 %v3162_v20, 6.0  ;;  %v2453_v14 = vadd.f32 %v2447_v32, %v2440_v56  ;;  %v2454_v59 = vadd.f32 %v2449_v58, %v2441_v26 }
 0x1df   : > { %v2463_v35 = vrot.slane %v2457_v50, 3  ;;  %v2473_v6 = vmul.f32 %v4271_v28, %v6245_v7  ;;  %v2474_v5 = vmul.f32 %v4271_v28, %v6246_v36  ;;  %v2490_v9 = vmul.f32 %v4232_v62, %v6247_v0 }
 0x1e0   : > { %v3221_v10 = vpack.c.bf16 %v3194_v63, %v3193_v55  ;;  %v2470_v19 = vadd.f32 %v2462_v42, %v2453_v14  ;;  %v2491_v47 = vmul.f32 %v4232_v62, %v6248_v16  ;;  %v2507_v29 = vmul.f32 %v4238_v51, %v6248_v16 }
 0x1e1   : > { %v2464_v32 = vsel %vm1174_vm5, %v2462_v42, %v2463_v35  ;;  %v6279_v46 = vrot.slane %v6253_v11, 3  ;;  %v2479_v54 = vrot.slane %v2473_v6, 4  ;;  %v2480_v23 = vrot.slane %v2474_v5, 4  ;;  %v6282_v6 = vld [vmem:[#allocation43_spill] sm:$0xff] }
 0x1e2   : > { %v3255_v39 = vsel %vm3238_vm8, %v3221_v10, 0  ;;  %v2471_v4 = vadd.f32 %v2464_v32, %v2454_v59  ;;  %v2496_v13 = vrot.slane %v2490_v9, 4  ;;  %v6280_v56 = vrot.slane %v6243_v52, 4 }
 0x1e3   : > { %v2466_v1 = vsel %vm1174_vm5, %v2463_v35, %v6279_v46  ;;  %3515 = vmatpush3.bf16.xpose.msra.mxu1 %v3255_v39  ;;  %v2481_v20 = vsel %vm525_vm0, %v2479_v54, %v2480_v23  ;;  %v2487_v58 = vadd.f32 %v2479_v54, %v2470_v19  ;;  %v2497_v50 = vrot.slane %v2491_v47, 4 }
 0x1e4   : > { %v2472_v0 = vadd.f32 %v2466_v1, %v2455_v33  ;;  %v2483_v26 = vsel %vm525_vm0, %v2480_v23, %v6280_v56  ;;  %v2488_v42 = vadd.f32 %v2481_v20, %v2471_v4  ;;  %v2511_v55 = vrot.slane %v2507_v29, 5  ;;  %v6284_v23 = vld [vmem:[#allocation45_spill] sm:$0xff] }
 0x1e5   : > { %v2521_v63 = vmul.f32 %v4260_v41, %v6248_v16  ;;  %v2498_v14 = vsel %vm525_vm0, %v2496_v13, %v2497_v50  ;;  %v6281_v33 = vrot.slane %v5107_v61, 4  ;;  %v2504_v35 = vadd.f32 %v2496_v13, %v2487_v58 }
 0x1e6   : > { %v2489_v11 = vadd.f32 %v2483_v26, %v2472_v0  ;;  %v5366_v52 = vmul.f32 %v4221_v25, %v6282_v6  ;;  %v2505_v5 = vadd.f32 %v2498_v14, %v2488_v42  ;;  %v2512_v10 = vsel %vm1232_vm6, %v5306_v24, %v2511_v55 }
 0x1e7   : > { %v2500_v59 = vsel %vm525_vm0, %v2497_v50, %v6281_v33  ;;  %v6283_v19 = vrot.slane %v5112_v53, 5  ;;  %v2518_v47 = vadd.f32 %v2504_v35, %v5306_v24  ;;  %v2525_v29 = vrot.slane %v2521_v63, 6 }
 0x1e8   : > { %v2506_v9 = vadd.f32 %v2500_v59, %v2489_v11  ;;  %v1379_v61 = vmul.f32 %v4212_v40, %v6282_v6  ;;  %v1462_v32 = vmul.f32 %v4238_v51, %v6233_v57  ;;  %v2519_v46 = vadd.f32 %v2512_v10, %v2505_v5  ;;  %v6286_v11 = vld [vmem:[#allocation48_spill] sm:$0xff] }
 0x1e9   : > { %v2514_v16 = vsel %vm1232_vm6, %v2511_v55, %v6283_v19  ;;  %v1479_v54 = vmul.f32 %v4260_v41, %v6233_v57  ;;  %v1494_v39 = vmul.f32 %v4221_v25, %v6284_v23  ;;  %v2526_v53 = vsel %vm1252_vm7, %v5308_v37, %v2525_v29 }
 0x1ea   : > { %v2520_v1 = vadd.f32 %v2514_v16, %v2506_v9  ;;  %v6285_v4 = vrot.slane %v5117_v12, 6  ;;  %v2532_v13 = vadd.f32 %v2518_v47, %v5308_v37  ;;  %v5388_v20 = vrot.slane %v1379_v61, 1 }
 0x1eb   : > { %v2533_v56 = vadd.f32 %v2526_v53, %v2519_v46  ;;  %v5390_v58 = vrot.slane %v1462_v32, 5  ;;  %v5392_v50 = vrot.slane %v1479_v54, 6  ;;  %v1495_v55 = vmul.f32 %v4221_v25, %v6286_v11 }
 0x1ec   : > { %v2528_v0 = vsel %vm1252_vm7, %v2525_v29, %v6285_v4  ;;  %v3078_v42 = vrot.slane %v2532_v13, 6  ;;  %v1496_v63 = vmul.f32 %v4212_v40, %v6284_v23  ;;  %v1497_v12 = vmul.f32 %v4212_v40, %v6286_v11 }
 0x1ed   : > { %v2534_v26 = vadd.f32 %v2528_v0, %v2520_v1  ;;  %v3079_v14 = vrot.slane %v2533_v56, 6  ;;  %v1510_v59 = vmul.f32 %v4215_v44, %v6284_v23  ;;  %v1511_v35 = vmul.f32 %v4215_v44, %v6286_v11 }
 0x1ee   : > { %v1500_v5 = vrot.slane %v1496_v63, 1  ;;  %v1502_v9 = vrot.slane %v1497_v12, 1  ;;  %v1523_v10 = vmul.f32 %v4230_v17, %v6263_v60  ;;  %v1524_v19 = vmul.f32 %v4230_v17, %v6264_v21 }
 0x1ef   : > { %v3081_v33 = vrot.slane %v2534_v26, 6  ;;  %v3080_v16 = vsel %vm1252_vm7, %v3078_v42, %v3079_v14  ;;  %v1514_v29 = vrot.slane %v1510_v59, 2  ;;  %v1515_v61 = vrot.slane %v1511_v35, 2 }
 0x1f0   : > { %v3143_v32 = vadd.f32 %v5328_v22, %v3080_v16  ;;  %v1501_v1 = vsel %vm1115_vm3, %v5388_v20, %v1500_v5  ;;  %v1503_v54 = vsel %vm1115_vm3, %v1500_v5, %v1502_v9  ;;  %v1509_v0 = vadd.f32 %v1502_v9, %v1495_v55 }
 0x1f1   : > { %v3082_v47 = vsel %vm1252_vm7, %v3079_v14, %v3081_v33  ;;  %v1507_v53 = vadd.f32 %v1501_v1, %v5366_v52  ;;  %v1508_v4 = vadd.f32 %v1503_v54, %v1494_v39  ;;  %v1516_v13 = vsel %vm1135_vm4, %v1514_v29, %v1515_v61 }
 0x1f2   : > { %v3144_v46 = vadd.f32 %v5328_v22, %v3082_v47  ;;  %v3175_v56 = vmax.f32 %v3143_v32, 0.0  ;;  %v1527_v42 = vrot.slane %v1523_v10, 2  ;;  %v1528_v63 = vrot.slane %v1524_v19, 2 }
 0x1f3   : > { %v1520_v12 = vadd.f32 %v1514_v29, %v1507_v53  ;;  %v1521_v14 = vadd.f32 %v1516_v13, %v1508_v4  ;;  %v1522_v33 = vadd.f32 %v1515_v61, %v1509_v0  ;;  %v1536_v59 = vmul.f32 %v4256_v48, %v6263_v60 }
 0x1f4   : > { %v3176_v26 = vmax.f32 %v3144_v46, 0.0  ;;  %v3207_v35 = vmin.f32 %v3175_v56, 6.0  ;;  %v1529_v5 = vsel %vm1135_vm4, %v1527_v42, %v1528_v63  ;;  %v1537_v39 = vmul.f32 %v4256_v48, %v6264_v21 }
 0x1f5   : > { %v1533_v55 = vadd.f32 %v1527_v42, %v1520_v12  ;;  %v1534_v9 = vadd.f32 %v1529_v5, %v1521_v14  ;;  %v1535_v47 = vadd.f32 %v1528_v63, %v1522_v33  ;;  %v1542_v32 = vrot.slane %v1536_v59, 3 }
 0x1f6   : > { %v3208_v16 = vmin.f32 %v3176_v26, 6.0  ;;  %v1543_v10 = vrot.slane %v1537_v39, 3  ;;  %v1553_v19 = vmul.f32 %v4271_v28, %v6263_v60  ;;  %v1554_v29 = vmul.f32 %v4271_v28, %v6264_v21 }
 0x1f7   : > { %v1550_v61 = vadd.f32 %v1542_v32, %v1533_v55  ;;  %v1570_v1 = vmul.f32 %v4232_v62, %v6233_v57  ;;  %v1571_v54 = vmul.f32 %v4232_v62, %v6235_v34  ;;  %v1587_v53 = vmul.f32 %v4238_v51, %v6235_v34 }
 0x1f8   : > { %v3228_v46 = vpack.c.bf16 %v3208_v16, %v3207_v35  ;;  %v1544_v4 = vsel %vm1174_vm5, %v1542_v32, %v1543_v10  ;;  %v1546_v0 = vsel %vm1174_vm5, %v1543_v10, %v1545_v49  ;;  %v1559_v13 = vrot.slane %v1553_v19, 4  ;;  %v6290_v19 = vld [vmem:[#allocation18_spill] sm:$0xff] }
 0x1f9   : > { %v1560_v56 = vrot.slane %v1554_v29, 4  ;;  %v1551_v26 = vadd.f32 %v1544_v4, %v1534_v9  ;;  %v1552_v42 = vadd.f32 %v1546_v0, %v1535_v47  ;;  %v1576_v63 = vrot.slane %v1570_v1, 4 }
 0x1fa   : > { %3618 = vmatprep.subr.msk.bf16.mxu1 %vm3238_vm8, %v3228_v46  ;;  %v1577_v57 = vrot.slane %v1571_v54, 4  ;;  %v6287_v14 = vrot.slane %v5200_v8, 4  ;;  %v1567_v59 = vadd.f32 %v1559_v13, %v1550_v61  ;;  %v1591_v35 = vrot.slane %v1587_v53, 5 }
 0x1fb   : > { %v1561_v12 = vsel %vm525_vm0, %v1559_v13, %v1560_v56  ;;  %v6288_v49 = vrot.slane %v5205_v38, 4  ;;  %v6289_v47 = vrot.slane %v5209_v18, 5  ;;  %v1601_v32 = vmul.f32 %v4260_v41, %v6235_v34 }
 0x1fc   : > { %v1563_v33 = vsel %vm525_vm0, %v1560_v56, %v6287_v14  ;;  %v1568_v16 = vadd.f32 %v1561_v12, %v1551_v26  ;;  %v1578_v2 = vsel %vm525_vm0, %v1576_v63, %v1577_v57  ;;  %v1584_v55 = vadd.f32 %v1576_v63, %v1567_v59  ;;  %v5482_v59 = vld [vmem:[%s6016_s6] sm:$0xf] }
 0x1fd   : > { %v1569_v5 = vadd.f32 %v1563_v33, %v1552_v42  ;;  %v1580_v39 = vsel %vm525_vm0, %v1577_v57, %v6288_v49  ;;  %v1592_v9 = vsel %vm1232_vm6, %v5390_v58, %v1591_v35  ;;  %v1594_v8 = vsel %vm1232_vm6, %v1591_v35, %v6289_v47  ;;  %3524 = vmatprep.mubr.msk.bf16.mxu1 %vm3238_vm8, %v5482_v59 }
 0x1fe   : > { %v1585_v46 = vadd.f32 %v1578_v2, %v1568_v16  ;;  %v5454_v29 = vmul.f32 %v4221_v25, %v6290_v19  ;;  %v2186_v38 = vmul.f32 %v4212_v40, %v6290_v19  ;;  %v1598_v61 = vadd.f32 %v1584_v55, %v5390_v58  ;;  %v6292_v16 = vld [vmem:[#allocation21_spill] sm:$0xff] }
 0x1ff   : > { %v1586_v10 = vadd.f32 %v1580_v39, %v1569_v5  ;;  %v1605_v1 = vrot.slane %v1601_v32, 6  ;;  %v2200_v18 = vmul.f32 %v4215_v44, %v6290_v19  ;;  %v2214_v54 = vmul.f32 %v4230_v17, %v6276_v43 }
 0x200   : > { %v1599_v53 = vadd.f32 %v1592_v9, %v1585_v46  ;;  %v5463_v4 = vrot.slane %v2186_v38, 1  ;;  %v2228_v0 = vmul.f32 %v4256_v48, %v6276_v43  ;;  %v6291_v56 = vrot.slane %v5213_v15, 6 }
 0x201   : > { %v1600_v34 = vadd.f32 %v1594_v8, %v1586_v10  ;;  %v1606_v13 = vsel %vm1252_vm7, %v5392_v50, %v1605_v1  ;;  %v1612_v42 = vadd.f32 %v1598_v61, %v5392_v50  ;;  %v5473_v63 = vrot.slane %v2200_v18, 2 }
 0x202   : > { %v1608_v26 = vsel %vm1252_vm7, %v1605_v1, %v6291_v56  ;;  %v1613_v57 = vadd.f32 %v1606_v13, %v1599_v53  ;;  %v5475_v14 = vrot.slane %v2214_v54, 2  ;;  %v5477_v33 = vrot.slane %v2228_v0, 3 }
 0x203   : > { %v1614_v12 = vadd.f32 %v1608_v26, %v1600_v34  ;;  %v3018_v35 = vrot.slane %v1612_v42, 6  ;;  %v2296_v15 = vmul.f32 %v4221_v25, %v6292_v16  ;;  %v2298_v5 = vmul.f32 %v4212_v40, %v6292_v16 }
 0x204   : > { %v2311_v2 = vadd.f32 %v5302_v45, %v5291_v30  ;;  %v3019_v49 = vrot.slane %v1613_v57, 6  ;;  %v2312_v55 = vmul.f32 %v4215_v44, %v6292_v16  ;;  %v2313_v9 = vmul.f32 %v4215_v44, %v6276_v43 }
 0x205   : > { %v3021_v39 = vrot.slane %v1614_v12, 6  ;;  %v2302_v47 = vrot.slane %v2298_v5, 1  ;;  %v2326_v8 = vmul.f32 %v4230_v17, %v6277_v31  ;;  %v2327_v32 = vmul.f32 %v4230_v17, %v6278_v27 }
 0x206   : > { %v2340_v30 = vmul.f32 %v4256_v48, %v6277_v31  ;;  %v3020_v46 = vsel %vm1252_vm7, %v3018_v35, %v3019_v49  ;;  %v2316_v38 = vrot.slane %v2312_v55, 2  ;;  %v2318_v61 = vrot.slane %v2313_v9, 2 }
 0x207   : > { %v3022_v10 = vsel %vm1252_vm7, %v3019_v49, %v3021_v39  ;;  %v3127_v1 = vadd.f32 %v5328_v22, %v3020_v46  ;;  %v2303_v54 = vsel %vm1115_vm3, %v5463_v4, %v2302_v47  ;;  %v2305_v53 = vsel %vm1115_vm3, %v2302_v47, %v5302_v45 }
 0x208   : > { %v3128_v18 = vadd.f32 %v5328_v22, %v3022_v10  ;;  %v2309_v34 = vadd.f32 %v2303_v54, %v5454_v29  ;;  %v2310_v0 = vadd.f32 %v2305_v53, %v2296_v15  ;;  %v2317_v13 = vsel %vm1135_vm4, %v5473_v63, %v2316_v38 }
 0x209   : > { %v2319_v56 = vsel %vm1135_vm4, %v2316_v38, %v2318_v61  ;;  %v3159_v26 = vmax.f32 %v3127_v1, 0.0  ;;  %v2325_v57 = vadd.f32 %v2318_v61, %v2311_v2  ;;  %v2330_v12 = vrot.slane %v2326_v8, 2 }
 0x20a   : > { %v3160_v42 = vmax.f32 %v3128_v18, 0.0  ;;  %v2323_v35 = vadd.f32 %v2317_v13, %v2309_v34  ;;  %v2324_v5 = vadd.f32 %v2319_v56, %v2310_v0  ;;  %v2332_v49 = vrot.slane %v2327_v32, 2 }
 0x20b   : > { %v2341_v39 = vmul.f32 %v4256_v48, %v6278_v27  ;;  %v3191_v55 = vmin.f32 %v3159_v26, 6.0  ;;  %v2331_v15 = vsel %vm1135_vm4, %v5475_v14, %v2330_v12  ;;  %v2344_v9 = vrot.slane %v2340_v30, 3 }
 0x20c   : > { %v3192_v45 = vmin.f32 %v3160_v42, 6.0  ;;  %v2333_v47 = vsel %vm1135_vm4, %v2330_v12, %v2332_v49  ;;  %v2337_v46 = vadd.f32 %v2331_v15, %v2323_v35  ;;  %v2339_v10 = vadd.f32 %v2332_v49, %v2325_v57 }
 0x20d   : > { %v2346_v38 = vrot.slane %v2341_v39, 3  ;;  %v2338_v2 = vadd.f32 %v2333_v47, %v2324_v5  ;;  %v2345_v8 = vsel %vm1174_vm5, %v5477_v33, %v2344_v9  ;;  %v2354_v32 = vmul.f32 %v4271_v28, %v6277_v31 }
 0x20e   : > { %v3220_v1 = vpack.c.bf16 %v3192_v45, %v3191_v55  ;;  %v2351_v18 = vadd.f32 %v2345_v8, %v2337_v46  ;;  %v2355_v30 = vmul.f32 %v4271_v28, %v6278_v27  ;;  %v2367_v13 = vmul.f32 %v4232_v62, %v6245_v7  ;;  %v6293_v8 = vld [vmem:[#allocation38_spill] sm:$0xff] }
 0x20f   : > { %v2347_v61 = vsel %vm1174_vm5, %v2344_v9, %v2346_v38  ;;  %v2353_v54 = vadd.f32 %v2346_v38, %v2339_v10  ;;  %v2358_v0 = vrot.slane %v2354_v32, 4  ;;  %v2368_v26 = vmul.f32 %v4232_v62, %v6246_v36 }
 0x210   : > { %v3252_v53 = vsel %vm3238_vm8, %v3220_v1, 0  ;;  %v2352_v34 = vadd.f32 %v2347_v61, %v2338_v2  ;;  %v2359_v56 = vrot.slane %v2355_v30, 4  ;;  %v2380_v42 = vmul.f32 %v4238_v51, %v6245_v7 }
 0x211   : > { %3517 = vmatpush3.bf16.xpose.msra.mxu1 %v3252_v53  ;;  %v2381_v57 = vmul.f32 %v4238_v51, %v6246_v36  ;;  %v2364_v12 = vadd.f32 %v2358_v0, %v2351_v18  ;;  %v2371_v35 = vrot.slane %v2367_v13, 4  ;;  %v2397_v5 = vmul.f32 %v4260_v41, %v6245_v7 }
 0x212   : > { %v2398_v49 = vmul.f32 %v4260_v41, %v6246_v36  ;;  %v2360_v39 = vsel %vm525_vm0, %v2358_v0, %v2359_v56  ;;  %v2366_v55 = vadd.f32 %v2359_v56, %v2353_v54  ;;  %v2372_v45 = vrot.slane %v2368_v26, 4 }
 0x213   : > { %v2386_v15 = vrot.slane %v2380_v42, 5  ;;  %v2365_v9 = vadd.f32 %v2360_v39, %v2352_v34  ;;  %v2377_v47 = vadd.f32 %v2371_v35, %v2364_v12  ;;  %v2387_v46 = vrot.slane %v2381_v57, 5  ;;  %v6294_v12 = vld [vmem:[#allocation40_spill] sm:$0xff] }
 0x214   : > { %v2403_v10 = vrot.slane %v2397_v5, 6  ;;  %v2373_v38 = vsel %vm525_vm0, %v2371_v35, %v2372_v45  ;;  %v2379_v1 = vadd.f32 %v2372_v45, %v2366_v55  ;;  %v2404_v2 = vrot.slane %v2398_v49, 6 }
 0x215   : > { %v5543_v32 = vmul.f32 %v4221_v25, %v6293_v8  ;;  %v2378_v7 = vadd.f32 %v2373_v38, %v2365_v9  ;;  %v2388_v36 = vsel %vm1232_vm6, %v2386_v15, %v2387_v46  ;;  %v2390_v61 = vsel %vm1232_vm6, %v2387_v46, %v5306_v24 }
 0x216   : > { %v2394_v18 = vadd.f32 %v2386_v15, %v2377_v47  ;;  %v2396_v54 = vadd.f32 %v2390_v61, %v2379_v1  ;;  %v2405_v30 = vsel %vm1252_vm7, %v2403_v10, %v2404_v2  ;;  %v2407_v53 = vsel %vm1252_vm7, %v2404_v2, %v5308_v37 }
 0x217   : > { %v1266_v34 = vmul.f32 %v4212_v40, %v6293_v8  ;;  %v2395_v0 = vadd.f32 %v2388_v36, %v2378_v7  ;;  %v1280_v56 = vmul.f32 %v4215_v44, %v6293_v8  ;;  %v1294_v26 = vmul.f32 %v4230_v17, %v6282_v6 }
 0x218   : > { %v2411_v13 = vadd.f32 %v2403_v10, %v2394_v18  ;;  %v2413_v42 = vadd.f32 %v2407_v53, %v2396_v54  ;;  %v1308_v57 = vmul.f32 %v4256_v48, %v6282_v6  ;;  %v1376_v37 = vmul.f32 %v4221_v25, %v6294_v12 }
 0x219   : > { %v5557_v24 = vrot.slane %v1266_v34, 1  ;;  %v2412_v35 = vadd.f32 %v2405_v30, %v2395_v0  ;;  %v5563_v49 = vrot.slane %v1280_v56, 2  ;;  %v5565_v39 = vrot.slane %v1294_v26, 2 }
 0x21a   : > { %v3068_v5 = vrot.slane %v2411_v13, 4  ;;  %v3071_v55 = vrot.slane %v2413_v42, 4  ;;  %v5567_v45 = vrot.slane %v1308_v57, 3  ;;  %v1378_v15 = vmul.f32 %v4212_v40, %v6294_v12 }
 0x21b   : > { %v1391_v9 = vadd.f32 %v5388_v20, %v5366_v52  ;;  %v3069_v47 = vrot.slane %v2412_v35, 4  ;;  %v1392_v46 = vmul.f32 %v4215_v44, %v6294_v12  ;;  %v1393_v10 = vmul.f32 %v4215_v44, %v6282_v6 }
 0x21c   : > { %v1406_v38 = vmul.f32 %v4230_v17, %v6284_v23  ;;  %v1382_v1 = vrot.slane %v1378_v15, 1  ;;  %v1407_v2 = vmul.f32 %v4230_v17, %v6286_v11  ;;  %v1420_v7 = vmul.f32 %v4256_v48, %v6284_v23 }
 0x21d   : > { %v1421_v52 = vmul.f32 %v4256_v48, %v6286_v11  ;;  %v3070_v36 = vsel %vm525_vm0, %v3068_v5, %v3069_v47  ;;  %v3072_v61 = vsel %vm525_vm0, %v3069_v47, %v3071_v55  ;;  %v1396_v18 = vrot.slane %v1392_v46, 2 }
 0x21e   : > { %v1398_v54 = vrot.slane %v1393_v10, 2  ;;  %v3141_v30 = vadd.f32 %v5328_v22, %v3070_v36  ;;  %v3142_v53 = vadd.f32 %v5328_v22, %v3072_v61  ;;  %v1383_v34 = vsel %vm1115_vm3, %v5557_v24, %v1382_v1 }
 0x21f   : > { %v1385_v0 = vsel %vm1115_vm3, %v1382_v1, %v5388_v20  ;;  %v1389_v13 = vadd.f32 %v1383_v34, %v5543_v32  ;;  %v1397_v26 = vsel %vm1135_vm4, %v5563_v49, %v1396_v18  ;;  %v1410_v55 = vrot.slane %v1406_v38, 2 }
 0x220   : > { %v1390_v56 = vadd.f32 %v1385_v0, %v1376_v37  ;;  %v1399_v42 = vsel %vm1135_vm4, %v1396_v18, %v1398_v54  ;;  %v3173_v57 = vmax.f32 %v3141_v30, 0.0  ;;  %v3174_v35 = vmax.f32 %v3142_v53, 0.0 }
 0x221   : > { %v1405_v5 = vadd.f32 %v1398_v54, %v1391_v9  ;;  %v1403_v15 = vadd.f32 %v1397_v26, %v1389_v13  ;;  %v1412_v46 = vrot.slane %v1407_v2, 2  ;;  %v1424_v10 = vrot.slane %v1420_v7, 3 }
 0x222   : > { %v1404_v47 = vadd.f32 %v1399_v42, %v1390_v56  ;;  %v3205_v36 = vmin.f32 %v3173_v57, 6.0  ;;  %v3206_v61 = vmin.f32 %v3174_v35, 6.0  ;;  %v1411_v20 = vsel %vm1135_vm4, %v5565_v39, %v1410_v55 }
 0x223   : > { %v1426_v1 = vrot.slane %v1421_v52, 3  ;;  %v1413_v37 = vsel %vm1135_vm4, %v1410_v55, %v1412_v46  ;;  %v1417_v34 = vadd.f32 %v1411_v20, %v1403_v15  ;;  %v1419_v0 = vadd.f32 %v1412_v46, %v1405_v5 }
 0x224   : > { %v1425_v18 = vsel %vm1174_vm5, %v5567_v45, %v1424_v10  ;;  %v3227_v30 = vpack.c.bf16 %v3206_v61, %v3205_v36  ;;  %v1418_v9 = vadd.f32 %v1413_v37, %v1404_v47  ;;  %v1434_v2 = vmul.f32 %v4271_v28, %v6284_v23 }
 0x225   : > { %v1427_v38 = vsel %vm1174_vm5, %v1424_v10, %v1426_v1  ;;  %v1431_v7 = vadd.f32 %v1425_v18, %v1417_v34  ;;  %v1433_v54 = vadd.f32 %v1426_v1, %v1419_v0  ;;  %v1435_v53 = vmul.f32 %v4271_v28, %v6286_v11 }
 0x226   : > { %v1447_v52 = vmul.f32 %v4232_v62, %v6263_v60  ;;  %3619 = vmatprep.subr.msk.bf16.mxu1 %vm3238_vm8, %v3227_v30  ;;  %v1432_v13 = vadd.f32 %v1427_v38, %v1418_v9  ;;  %v1438_v56 = vrot.slane %v1434_v2, 4  ;;  %v1448_v26 = vmul.f32 %v4232_v62, %v6264_v21 }
 0x227   : > { %v1460_v42 = vmul.f32 %v4238_v51, %v6263_v60  ;;  %v1439_v57 = vrot.slane %v1435_v53, 4  ;;  %v1461_v5 = vmul.f32 %v4238_v51, %v6264_v21  ;;  %v1477_v55 = vmul.f32 %v4260_v41, %v6263_v60 }
 0x228   : > { %v1451_v35 = vrot.slane %v1447_v52, 4  ;;  %v1444_v15 = vadd.f32 %v1438_v56, %v1431_v7  ;;  %v1452_v47 = vrot.slane %v1448_v26, 4  ;;  %v1478_v10 = vmul.f32 %v4260_v41, %v6264_v21 }
 0x229   : > { %v1466_v46 = vrot.slane %v1460_v42, 5  ;;  %v1440_v36 = vsel %vm525_vm0, %v1438_v56, %v1439_v57  ;;  %v1446_v61 = vadd.f32 %v1439_v57, %v1433_v54  ;;  %v1467_v20 = vrot.slane %v1461_v5, 5 }
 0x22a   : > { %v1483_v1 = vrot.slane %v1477_v55, 6  ;;  %v1445_v37 = vadd.f32 %v1440_v36, %v1432_v13  ;;  %v1453_v34 = vsel %vm525_vm0, %v1451_v35, %v1452_v47  ;;  %v1457_v0 = vadd.f32 %v1451_v35, %v1444_v15 }
 0x22b   : > { %v1484_v18 = vrot.slane %v1478_v10, 6  ;;  %v1459_v30 = vadd.f32 %v1452_v47, %v1446_v61  ;;  %v1468_v9 = vsel %vm1232_vm6, %v1466_v46, %v1467_v20  ;;  %v1470_v60 = vsel %vm1232_vm6, %v1467_v20, %v5390_v58 }
 0x22c   : > { %v5627_v38 = vmul.f32 %v4212_v40, %v4672_v3  ;;  %v1458_v21 = vadd.f32 %v1453_v34, %v1445_v37  ;;  %v1474_v2 = vadd.f32 %v1466_v46, %v1457_v0  ;;  %v5635_v13 = vmul.f32 %v4215_v44, %v4672_v3  ;;  %v6295_v37 = vld [vmem:[#allocation5_spill] sm:$0xff] }
 0x22d   : > { %v1485_v7 = vsel %vm1252_vm7, %v1483_v1, %v1484_v18  ;;  %v1487_v54 = vsel %vm1252_vm7, %v1484_v18, %v5392_v50  ;;  %v1476_v53 = vadd.f32 %v1470_v60, %v1459_v30  ;;  %v5639_v58 = vmul.f32 %v4230_v17, %v6290_v19 }
 0x22e   : > { %v2086_v52 = vrot.slane %v5627_v38, 1  ;;  %v1475_v56 = vadd.f32 %v1468_v9, %v1458_v21  ;;  %v1491_v26 = vadd.f32 %v1483_v1, %v1474_v2  ;;  %v5643_v42 = vmul.f32 %v4256_v48, %v6290_v19  ;;  %v5854_v38 = vld [vmem:[%s6015_s5] ss:$0 sm:$0xff] }
 0x22f   : > { %v5647_v50 = vmul.f32 %v4271_v28, %v6290_v19  ;;  %v1493_v57 = vadd.f32 %v1487_v54, %v1476_v53  ;;  %v2101_v35 = vrot.slane %v5635_v13, 2  ;;  %v2116_v5 = vrot.slane %v5639_v58, 2 }
 0x230   : > { %v5653_v55 = vmul.f32 %v4232_v62, %v6276_v43  ;;  %v1492_v15 = vadd.f32 %v1485_v7, %v1475_v56  ;;  %v3008_v47 = vrot.slane %v1491_v26, 4  ;;  %v2128_v46 = vrot.slane %v5643_v42, 3 }
 0x231   : > { %v2140_v10 = vrot.slane %v5647_v50, 4  ;;  %v3011_v36 = vrot.slane %v1493_v57, 4  ;;  %v5660_v19 = vmul.f32 %v4238_v51, %v6276_v43  ;;  %v2182_v20 = vmul.f32 %v4221_v25, %v4672_v3 }
 0x232   : > { %v3009_v1 = vrot.slane %v1492_v15, 4  ;;  %v2183_v34 = vmul.f32 %v4221_v25, %v6295_v37  ;;  %v2185_v0 = vmul.f32 %v4212_v40, %v6295_v37  ;;  %v2198_v18 = vadd.f32 %v5463_v4, %v5454_v29 }
 0x233   : > { %v2199_v9 = vmul.f32 %v4215_v44, %v6295_v37  ;;  %v2213_v60 = vmul.f32 %v4230_v17, %v6292_v16  ;;  %v2227_v21 = vmul.f32 %v4256_v48, %v6292_v16  ;;  %v2146_v58 = vmul.f32 %v4232_v62, %v6292_v16 }
 0x234   : > { %v3010_v2 = vsel %vm525_vm0, %v3008_v47, %v3009_v1  ;;  %v3012_v7 = vsel %vm525_vm0, %v3009_v1, %v3011_v36  ;;  %v2189_v54 = vrot.slane %v2185_v0, 1  ;;  %v2212_v53 = vadd.f32 %v5473_v63, %v2198_v18 }
 0x235   : > { %v3125_v29 = vadd.f32 %v5328_v22, %v3010_v2  ;;  %v3126_v56 = vadd.f32 %v5328_v22, %v3012_v7  ;;  %v2203_v26 = vrot.slane %v2199_v9, 2  ;;  %v2217_v57 = vrot.slane %v2213_v60, 2 }
 0x236   : > { %v2190_v15 = vsel %vm1115_vm3, %v2086_v52, %v2189_v54  ;;  %v2192_v30 = vsel %vm1115_vm3, %v2189_v54, %v5463_v4  ;;  %v2226_v47 = vadd.f32 %v5475_v14, %v2212_v53  ;;  %v2231_v61 = vrot.slane %v2227_v21, 3 }
 0x237   : > { %v3157_v36 = vmax.f32 %v3125_v29, 0.0  ;;  %v3158_v1 = vmax.f32 %v3126_v56, 0.0  ;;  %v2196_v0 = vadd.f32 %v2190_v15, %v2182_v20  ;;  %v2197_v18 = vadd.f32 %v2192_v30, %v2183_v34 }
 0x238   : > { %v2204_v2 = vsel %vm1135_vm4, %v2101_v35, %v2203_v26  ;;  %v2206_v9 = vsel %vm1135_vm4, %v2203_v26, %v5473_v63  ;;  %v2218_v60 = vsel %vm1135_vm4, %v2116_v5, %v2217_v57  ;;  %v2220_v4 = vsel %vm1135_vm4, %v2217_v57, %v5475_v14 }
 0x239   : > { %v3189_v7 = vmin.f32 %v3157_v36, 6.0  ;;  %v3190_v21 = vmin.f32 %v3158_v1, 6.0  ;;  %v2210_v54 = vadd.f32 %v2204_v2, %v2196_v0  ;;  %v2211_v53 = vadd.f32 %v2206_v9, %v2197_v18 }
 0x23a   : > { %v2232_v20 = vsel %vm1174_vm5, %v2128_v46, %v2231_v61  ;;  %v2234_v34 = vsel %vm1174_vm5, %v2231_v61, %v5477_v33  ;;  %v2240_v63 = vadd.f32 %v5477_v33, %v2226_v47  ;;  %v2241_v30 = vmul.f32 %v4271_v28, %v6292_v16 }
 0x23b   : > { %v3219_v29 = vpack.c.bf16 %v3190_v21, %v3189_v7  ;;  %v2224_v56 = vadd.f32 %v2218_v60, %v2210_v54  ;;  %v2225_v26 = vadd.f32 %v2220_v4, %v2211_v53  ;;  %v2242_v14 = vmul.f32 %v4271_v28, %v6276_v43 }
 0x23c   : > { %v2245_v57 = vrot.slane %v2241_v30, 4  ;;  %v2255_v15 = vmul.f32 %v4232_v62, %v6277_v31  ;;  %v2256_v36 = vmul.f32 %v4232_v62, %v6278_v27  ;;  %v2269_v61 = vmul.f32 %v4238_v51, %v6277_v31 }
 0x23d   : > { %v3249_v33 = vsel %vm3238_vm8, %v3219_v29, 0  ;;  %v2238_v47 = vadd.f32 %v2232_v20, %v2224_v56  ;;  %v2239_v1 = vadd.f32 %v2234_v34, %v2225_v26  ;;  %v2247_v0 = vrot.slane %v2242_v14, 4 }
 0x23e   : > { %3519 = vmatpush3.bf16.xpose.msra.mxu1 %v3249_v33  ;;  %v2246_v18 = vsel %vm525_vm0, %v2140_v10, %v2245_v57  ;;  %v2259_v2 = vrot.slane %v2255_v15, 4  ;;  %v2261_v9 = vrot.slane %v2256_v36, 4  ;;  %v2270_v60 = vmul.f32 %v4238_v51, %v6278_v27 }
 0x23f   : > { %v2248_v4 = vsel %vm525_vm0, %v2245_v57, %v2247_v0  ;;  %v2252_v7 = vadd.f32 %v2246_v18, %v2238_v47  ;;  %v2254_v21 = vadd.f32 %v2247_v0, %v2240_v63  ;;  %v2273_v54 = vrot.slane %v2269_v61, 5 }
 0x240   : > { %v2253_v53 = vadd.f32 %v2248_v4, %v2239_v1  ;;  %v6296_v20 = vrot.slane %v5653_v55, 4  ;;  %v2262_v30 = vsel %vm525_vm0, %v2259_v2, %v2261_v9  ;;  %v2275_v29 = vrot.slane %v2270_v60, 5 }
 0x241   : > { %v2268_v26 = vadd.f32 %v2261_v9, %v2254_v21  ;;  %v6297_v14 = vrot.slane %v5660_v19, 5  ;;  %v2283_v57 = vmul.f32 %v4260_v41, %v6277_v31  ;;  %v2284_v61 = vmul.f32 %v4260_v41, %v6278_v27 }
 0x242   : > { %v2260_v34 = vsel %vm525_vm0, %v6296_v20, %v2259_v2  ;;  %v2267_v36 = vadd.f32 %v2262_v30, %v2253_v53  ;;  %v2276_v63 = vsel %vm1232_vm6, %v2273_v54, %v2275_v29  ;;  %v5735_v33 = vmul.f32 %v4230_v17, %v6293_v8 }
 0x243   : > { %v2266_v56 = vadd.f32 %v2260_v34, %v2252_v7  ;;  %v2274_v15 = vsel %vm1232_vm6, %v6297_v14, %v2273_v54  ;;  %v2282_v1 = vadd.f32 %v2275_v29, %v2268_v26  ;;  %v2287_v0 = vrot.slane %v2283_v57, 6  ;;  %v6298_v34 = vld [vmem:[#allocation24_spill] sm:$0xff] }
 0x244   : > { %v5739_v18 = vmul.f32 %v4256_v48, %v6293_v8  ;;  %v2281_v2 = vadd.f32 %v2276_v63, %v2267_v36  ;;  %v2288_v9 = vrot.slane %v2284_v61, 6  ;;  %v6096_v31 = vrot.slane %v5735_v33, 2  ;;  %v6300_v36 = vld [vmem:[#allocation36_spill] sm:$0xff] }
 0x245   : > { %v2280_v47 = vadd.f32 %v2274_v15, %v2266_v56  ;;  %v5744_v60 = vmul.f32 %v4271_v28, %v6293_v8  ;;  %v5749_v7 = vmul.f32 %v4232_v62, %v6282_v6  ;;  %v5753_v21 = vmul.f32 %v4238_v51, %v6282_v6 }
 0x246   : > { %v6095_v4 = vrot.slane %v5739_v18, 3  ;;  %v2289_v54 = vsel %vm1252_vm7, %v2287_v0, %v2288_v9  ;;  %v2295_v53 = vadd.f32 %v2288_v9, %v2282_v1  ;;  %v6299_v30 = vrot.slane %v6298_v34, 1  ;;  %v6303_v34 = vld [vmem:[#allocation31_spill] sm:$0xff] }
 0x247   : > { %v2293_v27 = vadd.f32 %v2287_v0, %v2280_v47  ;;  %v1197_v20 = vrot.slane %v5744_v60, 4  ;;  %v2294_v56 = vadd.f32 %v2289_v54, %v2281_v2  ;;  %v1216_v14 = vrot.slane %v5749_v7, 4  ;;  %v6301_v47 = vld [vmem:[#allocation26_spill] sm:$0xff] }
 0x248   : > { %v1272_v29 = vsel %vm1115_vm3, %v6299_v30, %v5557_v24  ;;  %v1236_v15 = vrot.slane %v5753_v21, 5  ;;  %v3061_v57 = vrot.slane %v2295_v53, 2  ;;  %v1278_v61 = vadd.f32 %v5557_v24, %v5543_v32  ;;  %v6304_v30 = vld [vmem:[#allocation32_spill] sm:$0xff] }
 0x249   : > { %v3058_v26 = vrot.slane %v2293_v27, 2  ;;  %v1277_v63 = vadd.f32 %v1272_v29, %v6300_v36  ;;  %v6302_v1 = vrot.slane %v6301_v47, 2  ;;  %v3059_v9 = vrot.slane %v2294_v56, 2 }
 0x24a   : > { %v1290_v2 = vadd.f32 %v6304_v30, %v6303_v34  ;;  %v1293_v27 = vmul.f32 %v4230_v17, %v6294_v12  ;;  %v1307_v54 = vmul.f32 %v4256_v48, %v6294_v12  ;;  %v1292_v29 = vadd.f32 %v5563_v49, %v1278_v61 }
 0x24b   : > { %v1286_v0 = vsel %vm1135_vm4, %v6302_v1, %v5563_v49  ;;  %v1321_v32 = vmul.f32 %v4271_v28, %v6294_v12  ;;  %v1322_v24 = vmul.f32 %v4271_v28, %v6282_v6  ;;  %v3060_v56 = vsel %vm1135_vm4, %v3058_v26, %v3059_v9 }
 0x24c   : > { %v1291_v53 = vadd.f32 %v1286_v0, %v1277_v63  ;;  %v3062_v36 = vsel %vm1135_vm4, %v3059_v9, %v3061_v57  ;;  %v1297_v47 = vrot.slane %v1293_v27, 2  ;;  %v1311_v1 = vrot.slane %v1307_v54, 3 }
 0x24d   : > { %v3139_v34 = vadd.f32 %v5328_v22, %v3060_v56  ;;  %v3140_v30 = vadd.f32 %v5328_v22, %v3062_v36  ;;  %v1306_v63 = vadd.f32 %v5565_v39, %v1292_v29  ;;  %v1325_v0 = vrot.slane %v1321_v32, 4 }
 0x24e   : > { %v1298_v49 = vsel %vm1135_vm4, %v6096_v31, %v1297_v47  ;;  %v1300_v61 = vsel %vm1135_vm4, %v1297_v47, %v5565_v39  ;;  %v1312_v26 = vsel %vm1174_vm5, %v6095_v4, %v1311_v1  ;;  %v1314_v57 = vsel %vm1174_vm5, %v1311_v1, %v5567_v45 }
 0x24f   : > { %v3171_v9 = vmax.f32 %v3139_v34, 0.0  ;;  %v3172_v27 = vmax.f32 %v3140_v30, 0.0  ;;  %v1304_v22 = vadd.f32 %v1298_v49, %v1290_v2  ;;  %v1305_v54 = vadd.f32 %v1300_v61, %v1291_v53 }
 0x250   : > { %v1320_v29 = vadd.f32 %v5567_v45, %v1306_v63  ;;  %v1326_v32 = vsel %vm525_vm0, %v1197_v20, %v1325_v0  ;;  %v1327_v56 = vrot.slane %v1322_v24, 4  ;;  %v1335_v39 = vmul.f32 %v4232_v62, %v6284_v23 }
 0x251   : > { %v3203_v36 = vmin.f32 %v3171_v9, 6.0  ;;  %v3204_v47 = vmin.f32 %v3172_v27, 6.0  ;;  %v1318_v4 = vadd.f32 %v1312_v26, %v1304_v22  ;;  %v1319_v31 = vadd.f32 %v1314_v57, %v1305_v54 }
 0x252   : > { %v1328_v1 = vsel %vm525_vm0, %v1325_v0, %v1327_v56  ;;  %v1334_v34 = vadd.f32 %v1327_v56, %v1320_v29  ;;  %v1336_v2 = vmul.f32 %v4232_v62, %v6286_v11  ;;  %v1339_v53 = vrot.slane %v1335_v39, 4 }
 0x253   : > { %v3226_v45 = vpack.c.bf16 %v3204_v47, %v3203_v36  ;;  %v1332_v30 = vadd.f32 %v1326_v32, %v1318_v4  ;;  %v1333_v63 = vadd.f32 %v1328_v1, %v1319_v31  ;;  %v1349_v24 = vmul.f32 %v4238_v51, %v6284_v23  ;;  %v6305_v4 = vld [vmem:[#allocation7_spill] sm:$0xff]  ;;  %v6306_v36 = vld [vmem:[#allocation12_spill] sm:$0xff] }
 0x254   : > { %v1340_v49 = vsel %vm525_vm0, %v1216_v14, %v1339_v53  ;;  %v1341_v61 = vrot.slane %v1336_v2, 4  ;;  %v1350_v26 = vmul.f32 %v4238_v51, %v6286_v11  ;;  %v1363_v0 = vmul.f32 %v4260_v41, %v6284_v23 }
 0x255   : > { %3620 = vmatprep.subr.msk.bf16.mxu1 %vm3238_vm8, %v3226_v45  ;;  %v1346_v57 = vadd.f32 %v1340_v49, %v1332_v30  ;;  %v1353_v9 = vrot.slane %v1349_v24, 5  ;;  %v1364_v31 = vmul.f32 %v4260_v41, %v6286_v11  ;;  %v2075_v27 = vmul.f32 %v4221_v25, %v6305_v4 }
 0x256   : > { %v1342_v22 = vsel %vm525_vm0, %v1339_v53, %v1341_v61  ;;  %v1348_v54 = vadd.f32 %v1341_v61, %v1334_v34  ;;  %v1355_v29 = vrot.slane %v1350_v26, 5  ;;  %v1367_v32 = vrot.slane %v1363_v0, 6 }
 0x257   : > { %v1347_v56 = vadd.f32 %v1342_v22, %v1333_v63  ;;  %v1354_v23 = vsel %vm1232_vm6, %v1236_v15, %v1353_v9  ;;  %v1368_v39 = vrot.slane %v1364_v31, 6  ;;  %v2076_v47 = vmul.f32 %v4221_v25, %v6306_v36 }
 0x258   : > { %v1356_v1 = vsel %vm1232_vm6, %v1353_v9, %v1355_v29  ;;  %v1360_v11 = vadd.f32 %v1354_v23, %v1346_v57  ;;  %v1362_v2 = vadd.f32 %v1355_v29, %v1348_v54  ;;  %v2077_v45 = vmul.f32 %v4212_v40, %v6305_v4 }
 0x259   : > { %v1361_v53 = vadd.f32 %v1356_v1, %v1347_v56  ;;  %v1369_v34 = vsel %vm1252_vm7, %v1367_v32, %v1368_v39  ;;  %v2078_v30 = vmul.f32 %v4212_v40, %v6306_v36  ;;  %v2092_v63 = vmul.f32 %v4215_v44, %v6305_v4 }
 0x25a   : > { %v1373_v24 = vadd.f32 %v1367_v32, %v1360_v11  ;;  %v1375_v49 = vadd.f32 %v1368_v39, %v1362_v2  ;;  %v2083_v61 = vrot.slane %v2077_v45, 1  ;;  %v2093_v25 = vmul.f32 %v4215_v44, %v6306_v36 }
 0x25b   : > { %v1374_v26 = vadd.f32 %v1369_v34, %v1361_v53  ;;  %v2084_v0 = vrot.slane %v2078_v30, 1  ;;  %v2098_v57 = vrot.slane %v2092_v63, 2  ;;  %v2107_v9 = vmul.f32 %v4230_v17, %v4672_v3 }
 0x25c   : > { %v2998_v31 = vrot.slane %v1373_v24, 2  ;;  %v3001_v22 = vrot.slane %v1375_v49, 2  ;;  %v2099_v54 = vrot.slane %v2093_v25, 2  ;;  %v2108_v40 = vmul.f32 %v4230_v17, %v6295_v37  ;;  %v6307_v24 = vld [vmem:[#allocation17_spill] sm:$0xff] }
 0x25d   : > { %v2999_v29 = vrot.slane %v1374_v26, 2  ;;  %v2085_v4 = vsel %vm1115_vm3, %v2083_v61, %v2084_v0  ;;  %v2087_v32 = vsel %vm1115_vm3, %v2084_v0, %v2086_v52  ;;  %v2113_v44 = vrot.slane %v2107_v9, 2 }
 0x25e   : > { %v2090_v56 = vadd.f32 %v2085_v4, %v2075_v27  ;;  %v2091_v23 = vadd.f32 %v2087_v32, %v2076_v47  ;;  %v2100_v39 = vsel %vm1135_vm4, %v2098_v57, %v2099_v54  ;;  %v2102_v3 = vsel %vm1135_vm4, %v2099_v54, %v2101_v35  ;;  %v6311_v32 = vld [vmem:[#allocation19_spill] sm:$0xff] }
 0x25f   : > { %v3000_v36 = vsel %vm1135_vm4, %v2998_v31, %v2999_v29  ;;  %v3002_v17 = vsel %vm1135_vm4, %v2999_v29, %v3001_v22  ;;  %v2114_v1 = vrot.slane %v2108_v40, 2  ;;  %v2122_v11 = vmul.f32 %v4256_v48, %v6295_v37 }
 0x260   : > { %v3123_v52 = vadd.f32 %v5854_v38, %v3000_v36  ;;  %v3124_v27 = vadd.f32 %v5854_v38, %v3002_v17  ;;  %v2105_v13 = vadd.f32 %v2100_v39, %v2090_v56  ;;  %v2106_v47 = vadd.f32 %v2102_v3, %v2091_v23 }
 0x261   : > { %v2115_v35 = vsel %vm1135_vm4, %v2113_v44, %v2114_v1  ;;  %v2117_v2 = vsel %vm1135_vm4, %v2114_v1, %v2116_v5  ;;  %v2126_v45 = vrot.slane %v2122_v11, 3  ;;  %v2134_v48 = vmul.f32 %v4271_v28, %v6295_v37  ;;  %v6309_v37 = vld [vmem:[#allocation9_spill] sm:$0xff]  ;;  %v6314_v11 = vld [vmem:[#allocation20_spill] sm:$0xff] }
 0x262   : > { %v3155_v53 = vmax.f32 %v3123_v52, 0.0  ;;  %v3156_v34 = vmax.f32 %v3124_v27, 0.0  ;;  %v2120_v30 = vadd.f32 %v2115_v35, %v2105_v13  ;;  %v2121_v63 = vadd.f32 %v2117_v2, %v2106_v47  ;;  %v6317_v47 = vld [vmem:[#allocation33_spill] sm:$0xff]  ;;  %v6319_v2 = vld [vmem:[#allocation27_spill] sm:$0xff] }
 0x263   : > { %v6308_v49 = vrot.slane %v6307_v24, 3  ;;  %v2129_v25 = vsel %vm1174_vm5, %v2126_v45, %v2128_v46  ;;  %v2138_v26 = vrot.slane %v2134_v48, 4  ;;  %v6310_v9 = vrot.slane %v6309_v37, 4 }
 0x264   : > { %v3187_v5 = vmin.f32 %v3155_v53, 6.0  ;;  %v3188_v0 = vmin.f32 %v3156_v34, 6.0  ;;  %v2133_v28 = vadd.f32 %v2129_v25, %v2121_v63  ;;  %v2150_v54 = vrot.slane %v2146_v58, 4  ;;  %v6321_v34 = vld [vmem:[#allocation25_spill] sm:$0xff]  ;;  %v6325_v25 = vld [vmem:[#allocation22_spill] sm:$0xff] }
 0x265   : > { %v2127_v61 = vsel %vm1174_vm5, %v6308_v49, %v2126_v45  ;;  %v2139_v31 = vsel %vm525_vm0, %v6310_v9, %v2138_v26  ;;  %v2141_v22 = vsel %vm525_vm0, %v2138_v26, %v2140_v10  ;;  %v2158_v42 = vmul.f32 %v4238_v51, %v6292_v16  ;;  %v6326_v58 = vld [vmem:[#allocation29_spill] sm:$0xff] }
 0x266   : > { %v2132_v57 = vadd.f32 %v2127_v61, %v2120_v30  ;;  %v3218_v46 = vpack.c.bf16 %v3188_v0, %v3187_v5  ;;  %v2145_v29 = vadd.f32 %v2141_v22, %v2133_v28  ;;  %v2170_v4 = vmul.f32 %v4260_v41, %v6292_v16  ;;  %v6327_v0 = vld [vmem:[#allocation34_spill] sm:$0xff]  ;;  %v6329_v28 = vld [vmem:[#allocation28_spill] sm:$0xff] }
 0x267   : > { %v6312_v44 = vrot.slane %v6311_v32, 4  ;;  %v6313_v23 = vrot.slane %v5653_v55, 4  ;;  %v2162_v39 = vrot.slane %v2158_v42, 5  ;;  %v2171_v10 = vmul.f32 %v4260_v41, %v6276_v43  ;;  %v6334_v32 = vld [vmem:[#allocation35_spill] sm:$0xff] }
 0x268   : > { %v2144_v40 = vadd.f32 %v2139_v31, %v2132_v57  ;;  %v3246_v3 = vsel %vm3238_vm8, %v3218_v46, 0  ;;  %v2174_v1 = vrot.slane %v2170_v4, 6  ;;  %v6315_v16 = vrot.slane %v6314_v11, 5  ;;  %v6333_v46 = vld [vmem:[#allocation30_spill] sm:$0xff] }
 0x269   : > { %v2151_v56 = vsel %vm525_vm0, %v6312_v44, %v2150_v54  ;;  %v2153_v50 = vsel %vm525_vm0, %v2150_v54, %v6313_v23  ;;  %3521 = vmatpush3.bf16.xpose.msra.mxu1 %v3246_v3  ;;  %v6316_v27 = vrot.slane %v5660_v19, 5  ;;  %v2176_v13 = vrot.slane %v2171_v10, 6 }
 0x26a   : > { %v2156_v36 = vadd.f32 %v2151_v56, %v2144_v40  ;;  %v2157_v17 = vadd.f32 %v2153_v50, %v2145_v29  ;;  %v2163_v52 = vsel %vm1232_vm6, %v6315_v16, %v2162_v39  ;;  %v6318_v35 = vrot.slane %v6317_v47, 2 }
 0x26b   : > { %v2165_v55 = vsel %vm1232_vm6, %v2162_v39, %v6316_v27  ;;  %v6320_v45 = vrot.slane %v6319_v2, 2  ;;  %v6322_v30 = vrot.slane %v6321_v34, 6  ;;  %v6323_v24 = vrot.slane %v5735_v33, 2 }
 0x26c   : > { %v2168_v48 = vadd.f32 %v2163_v52, %v2156_v36  ;;  %v2169_v53 = vadd.f32 %v2165_v55, %v2157_v17  ;;  %v6324_v49 = vmov %v6318_v35  ;;  %v2177_v61 = vsel %vm1252_vm7, %v2174_v1, %v2176_v13 }
 0x26d   : > { %v1157_v43 = vsel %vm1135_vm4, %v6320_v45, %v6318_v35  ;;  %v2175_v63 = vsel %vm1252_vm7, %v6322_v30, %v2174_v1  ;;  %v1159_v19 = vsel %vm1135_vm4, %v6324_v49, %v6323_v24  ;;  %v6328_v57 = vrot.slane %v6327_v0, 3  ;;  %v3331_v0 = vld [vmem:[%s379_s18] sm:$0xff] }
 0x26e   : > { %v1162_v26 = vadd.f32 %v1157_v43, %v6325_v25  ;;  %v1163_v5 = vadd.f32 %v1159_v19, %v6326_v58  ;;  %v6330_v37 = vrot.slane %v6329_v28, 3  ;;  %v2180_v31 = vadd.f32 %v2175_v63, %v2168_v48 }
 0x26f   : > { %v2181_v22 = vadd.f32 %v2177_v61, %v2169_v53  ;;  %v6331_v33 = vrot.slane %v5739_v18, 3  ;;  %v6332_v54 = vmov %v6328_v57  ;;  %v1194_v40 = vrot.slane %v6333_v46, 4 }
 0x270   : > { %v1177_v9 = vsel %vm1174_vm5, %v6330_v37, %v6328_v57  ;;  %v1195_v44 = vrot.slane %v6334_v32, 4  ;;  %v1207_v56 = vmul.f32 %v4232_v62, %v6293_v8  ;;  %v3137_v23 = vadd.f32 %v5854_v38, %v2180_v31  ;;  %v3332_v37 = vld [vmem:[%s379_s18 + $0x8] sm:$0xff]  ;;  %s3691_s18 = scalar_lea.vmem %s3690_s15, 512 }
 0x271   : > { %v1179_v42 = vsel %vm1174_vm5, %v6332_v54, %v6331_v33  ;;  %v1182_v29 = vadd.f32 %v1177_v9, %v1162_v26  ;;  %v3138_v50 = vadd.f32 %v5854_v38, %v2181_v22  ;;  %v1208_v18 = vmul.f32 %v4232_v62, %v6294_v12  ;;  %p3693_p2 = scmp.lt.s32.totalorder %s3691_s18, %s3685_s26 }
 0x272   : > { %v1183_v4 = vadd.f32 %v1179_v42, %v1163_v5  ;;  %v1226_v39 = vmul.f32 %v4238_v51, %v6293_v8  ;;  %v1196_v10 = vsel %vm525_vm0, %v1194_v40, %v1195_v44  ;;  %v1198_v3 = vsel %vm525_vm0, %v1195_v44, %v1197_v20 }
 0x273   : > { %v1213_v36 = vrot.slane %v1207_v56, 4  ;;  %v1227_v17 = vmul.f32 %v4238_v51, %v6294_v12  ;;  %v3169_v1 = vmax.f32 %v3137_v23, 0.0  ;;  %v3170_v11 = vmax.f32 %v3138_v50, 0.0  ;;  %p3694_p3 = por %p3693_p2, %p3692_p1 }
 0x274   : > { %v1201_v16 = vadd.f32 %v1196_v10, %v1182_v29  ;;  %v1202_v52 = vadd.f32 %v1198_v3, %v1183_v4  ;;  %v1214_v27 = vrot.slane %v1208_v18, 4  ;;  %v1233_v55 = vrot.slane %v1226_v39, 5 }
 0x275   : > { %v1234_v62 = vrot.slane %v1227_v17, 5  ;;  %v1246_v13 = vmul.f32 %v4260_v41, %v6293_v8  ;;  %v3201_v47 = vmin.f32 %v3169_v1, 6.0  ;;  %v3202_v35 = vmin.f32 %v3170_v11, 6.0  ;;  %p3695_p5 = pnand %p3694_p3, %p3688_p0 }
 0x276   : > { %v1247_v60 = vmul.f32 %v4260_v41, %v6294_v12  ;;  %v1248_v20 = vmul.f32 %v4260_v41, %v6282_v6  ;;  %v1215_v51 = vsel %vm525_vm0, %v1213_v36, %v1214_v27  ;;  %v1217_v2 = vsel %vm525_vm0, %v1214_v27, %v1216_v14 }
 0x277   : > { %v3225_v45 = vpack.c.bf16 %v3202_v35, %v3201_v47  ;;  %v1220_v43 = vadd.f32 %v1215_v51, %v1201_v16  ;;  %v1221_v48 = vadd.f32 %v1217_v2, %v1202_v52  ;;  %v1235_v53 = vsel %vm1232_vm6, %v1233_v55, %v1234_v62 }
 0x278   : > { %v1237_v8 = vsel %vm1232_vm6, %v1234_v62, %v1236_v15  ;;  %v1253_v34 = vrot.slane %v1246_v13, 6  ;;  %v1254_v12 = vrot.slane %v1247_v60, 6  ;;  %v1256_v30 = vrot.slane %v1248_v20, 6 }
 0x279   : > { %3621 = vmatprep.subr.msk.bf16.mxu1 %vm3238_vm8, %v3225_v45  ;;  %v1240_v41 = vadd.f32 %v1235_v53, %v1220_v43  ;;  %v1241_v6 = vadd.f32 %v1237_v8, %v1221_v48 }
 0x27a   : > { %v1255_v7 = vsel %vm1252_vm7, %v1253_v34, %v1254_v12  ;;  %v1257_v14 = vsel %vm1252_vm7, %v1254_v12, %v1256_v30 }
 0x27b   : > { %v1260_v63 = vadd.f32 %v1255_v7, %v1240_v41  ;;  %v1261_v24 = vadd.f32 %v1257_v14, %v1241_v6 }
 0x27d   : > { %v3121_v49 = vadd.f32 %v5854_v38, %v1260_v63  ;;  %v3122_v21 = vadd.f32 %v5854_v38, %v1261_v24  ;;  %v3236_v38 = vpop.permute.xlu1 %3235 }
 0x27f   : > { %v3153_v15 = vmax.f32 %v3121_v49, 0.0  ;;  %v3154_v19 = vmax.f32 %v3122_v21, 0.0 }
 0x281   : > { %v3185_v61 = vmin.f32 %v3153_v15, 6.0  ;;  %v3186_v25 = vmin.f32 %v3154_v19, 6.0 }
 0x283   : > { %v3217_v26 = vpack.c.bf16 %v3186_v25, %v3185_v61 }
 0x285   : > { %v3243_v58 = vsel %vm3238_vm8, %v3217_v26, 0 }
 0x286   : > { %3523 = vmatpush3.bf16.xpose.msra.mxu1 %v3243_v58 }
 0x28d   : > { %3525 = vmatmul.mubr.msk.bf16.vlgmr.msra.gmra.mxu1 %vm3238_vm8, %v5482_v59 }
 0x34d   : > { %v3324_v5 = vpop.f32.mrf.mxu1 }
 0x34e   : > { %v3325_v57 = vadd.f32 %v3324_v5, %v3236_v38 }
 0x34f   : > { %v3326_v28 = vpop.f32.mrf.mxu1 }
 0x350   : > { %v3333_v9 = vadd.f32 %v3331_v0, %v3325_v57  ;;  %v3327_v31 = vadd.f32 %v3326_v28, %v3236_v38 }
 0x351   : > { %v3328_v59 = vpop.f32.mrf.mxu1 }
 0x352   : > { %3335 = vst [vmem:[%s365_s23] sm:$0xff] %v3333_v9  ;;  %v3334_v22 = vadd.f32 %v3332_v37, %v3327_v31 }
 0x353   : > { %v3329_v33 = vpop.f32.mrf.mxu1 }
 0x354   : > { %3336 = vst [vmem:[%s365_s23 + $0x8] sm:$0xff] %v3334_v22 }
 0x355   : > { %3698 = shalt.err (!%p3695_p5)
}
 0x356   : > { %s3699_s20 = scalar_lea.hbm %s5970_s16, 256  ;;  %s3703_s29 = scalar_lea.hbm %s6019_s9, 512 }
 0x357   : > { %p3700_p6 = scmp.ne.s32.totalorder %s5970_s16, %s3699_s20  ;;  %p3704_p10 = scmp.lt.s32.totalorder %s5970_s16, %s6019_s9 }
 0x358   : > { %p3705_p11 = scmp.lt.s32.totalorder %s3703_s29, %s3699_s20 }
 0x359   : > { %p3701_p7 = pnand %p3700_p6, %p3857_p4 }
 0x35a   : > { %p3706_p12 = por %p3705_p11, %p3704_p10 }
 0x35b   : > { %p3702_p9 = pneg %p3701_p7 }
 0x35d   : > { %p3707_p13 = pnand %p3706_p12, %p3702_p9 }
 0x35f   : > { %3710 = shalt.err (!%p3707_p13)
}
 0x360   : > { %3623 = dma.vmem_to_hbm [thread:$0]  (%p3857_p4), %s3355_s24, 256, %s5970_s16, %s3338_s28  }
 0x361 PF: > { %p3629_p0 = scmp.ge.s32.totalorder %s3761_s14, 2  ;;  %s3366_s26 = sand.u32 1, %s3741_s30  }
 0x362   : > { %s3367_s15 = scalar_lea.sflag [#allocation3], %s3366_s26 }
 0x363   : > { %p3626_p1 = pnand %p3629_p0, %p3864_p8 }
 0x365   : > { %p3627_p2 = pneg %p3626_p1 }
 0x367   : > { %3736 = dma.done.wait (%p3627_p2), %s3367_s15, 256  }
 0x368   : > { %3738 = vsyncadd (%p3627_p2), %s3367_s15, 4294967040  ;;  %s22_s14 = sadd.s32 1, %s3761_s14   ;;  %s6335_s30 = smov %s3745_s10 }
 0x369   : > { %p19_p3 = scmp.ge.s32.totalorder %s22_s14, 4   ;;  %s6336_s10 = smov %s3749_s11 }
 0x36a   : > { %s6337_s11 = smov %s3870_s22  ;;  %s6338_s12 = smov %s3757_s13 }
 0x36b   : > { %s6339_s13 = smov %s6341_s17  ;;  %21 = sbr.rel (!%p19_p3) target bundleno = 4 (0x4), region = 96 }
 0x370   :  { %3372 = vsyncpa [#allocation3], 1 }
 0x371   :  { %3374 = vsyncpa [#allocation3 + $0x1], 1 }

</bundles_post_ra>
